<compile_context>
chip_gen: v7x
topology: tpu7x:2x2x1
jax: 0.10.0
libtpu: 0.0.40
codegen_flags: <defaults>
</compile_context>

<pallas_src>
import functools
import math

import jax
import jax.numpy as jnp
from jax.experimental import pallas as pl
from jax.experimental.pallas import tpu as pltpu

_LN_EPS = 1e-5


# ---------------------------------------------------------------------------
# tiling helpers: blocks are either (8,128)-aligned or full-dim, so wrappers
# never pad/slice operands inside the jitted forward.
# ---------------------------------------------------------------------------
def _row_tile(m, cap=512):
    return min(m, cap) if m % 8 == 0 else m


def _col_tile(n, cap=512):
    return min(n, cap) if n % 128 == 0 else n


# ---------------------------------------------------------------------------
# Pallas kernels
# ---------------------------------------------------------------------------
def _linear_kernel(x_ref, w_ref, b_ref, o_ref, *, activation):
    """o = act(x @ w + b); bf16 MXU inputs, f32 accumulation (K untiled)."""
    y = jnp.dot(x_ref[...].astype(jnp.bfloat16), w_ref[...].astype(jnp.bfloat16),
                preferred_element_type=jnp.float32)
    y = y + b_ref[...]
    if activation == "relu":
        y = jnp.maximum(y, 0.0)
    o_ref[...] = y.astype(o_ref.dtype)


def _oproj_add_ln_kernel(x_ref, w_ref, b_ref, res_ref, ln_ref, o_ref, *, n_ln):
    """Attention-output projection fused with residual add + LayerNorm(s).

    n_ln == 1 : out = LN1(res + x@w + b)                 (decoder norm1 / norm2)
    n_ln == 2 : out = LN2(res + LN1(res + x@w + b))      (encoder MHA-LN + lnorm)
    """
    h = jnp.dot(x_ref[...].astype(jnp.bfloat16), w_ref[...].astype(jnp.bfloat16),
                preferred_element_type=jnp.float32) + b_ref[...]
    res = res_ref[...].astype(jnp.float32)
    t = res + h
    for i in range(n_ln):
        mu = jnp.mean(t, axis=-1, keepdims=True)
        tc = t - mu
        var = jnp.mean(tc * tc, axis=-1, keepdims=True)
        t = tc * jax.lax.rsqrt(var + _LN_EPS) * ln_ref[2 * i] + ln_ref[2 * i + 1]
        if i + 1 < n_ln:
            t = res + t
    o_ref[...] = t


def _ffn_ln_kernel(x_ref, w1_ref, b1_ref, w2_ref, b2_ref, g_ref, be_ref, o_ref):
    """out = LayerNorm(x + FF2(relu(FF1(x)))) - whole FFN sub-layer fused."""
    x = x_ref[...].astype(jnp.float32)
    h = jnp.dot(x.astype(jnp.bfloat16), w1_ref[...].astype(jnp.bfloat16),
                preferred_element_type=jnp.float32) + b1_ref[...]
    h = jnp.maximum(h, 0.0)
    y = jnp.dot(h.astype(jnp.bfloat16), w2_ref[...].astype(jnp.bfloat16),
                preferred_element_type=jnp.float32) + b2_ref[...]
    t = x + y
    mu = jnp.mean(t, axis=-1, keepdims=True)
    tc = t - mu
    var = jnp.mean(tc * tc, axis=-1, keepdims=True)
    o_ref[...] = tc * jax.lax.rsqrt(var + _LN_EPS) * g_ref[...] + be_ref[...]


def _attn_finish(s, v_ref, o_ref):
    m = jnp.max(s, axis=-1, keepdims=True)
    p = jnp.exp(s - m)
    l = jnp.sum(p, axis=-1, keepdims=True)
    o = jnp.dot(p.astype(jnp.bfloat16), v_ref[0].astype(jnp.bfloat16),
                preferred_element_type=jnp.float32)
    inv = pl.reciprocal(l, approx=True)       # EUP reciprocal (free slot) ...
    inv = inv * (2.0 - l * inv)               # ... + one Newton step -> f32 exact
    o_ref[0] = (o * inv).astype(o_ref.dtype)


def _attn_kernel(q_ref, kT_ref, v_ref, o_ref, *, scale):
    """softmax(q kT * scale) v - no bias (decoder self / cross attention)."""
    s = jnp.dot(q_ref[0].astype(jnp.bfloat16), kT_ref[0].astype(jnp.bfloat16),
                preferred_element_type=jnp.float32) * scale
    _attn_finish(s, v_ref, o_ref)


def _attn_geo_kernel(q_ref, kT_ref, v_ref, g_ref, o_ref, *, scale):
    """softmax(q kT * scale - w_g) v - encoder geometry attention."""
    s = jnp.dot(q_ref[0].astype(jnp.bfloat16), kT_ref[0].astype(jnp.bfloat16),
                preferred_element_type=jnp.float32) * scale
    s = s - g_ref[...]
    _attn_finish(s, v_ref, o_ref)


def _geo_bias_kernel(emb_ref, wg_ref, bg_ref, o_ref):
    """relu(emb @ wg + bg) as a VPU broadcast-mul + lane reduce (no 1-wide GEMV)."""
    e = emb_ref[...]
    o_ref[...] = jnp.maximum(jnp.sum(e * wg_ref[...], axis=-1) + bg_ref[...], 0.0)


def _l2norm_kernel(x_ref, o_ref, *, eps):
    x = x_ref[...]
    s = jnp.sum(x * x, axis=-1, keepdims=True)
    o_ref[...] = x * jax.lax.rsqrt(jnp.maximum(s, eps * eps))


def _rowdot_score_kernel(t_ref, m_ref, attT_ref, vb_ref, o_ref):
    """embed[b,a] = sum_d t[b,a,d] m[a,d];  scores = embed @ att^T + vec_bias."""
    emb = jnp.sum(t_ref[...] * m_ref[...], axis=-1)
    s = jnp.dot(emb.astype(jnp.bfloat16), attT_ref[...].astype(jnp.bfloat16),
                preferred_element_type=jnp.float32)
    o_ref[...] = s + vb_ref[...]


# ---------------------------------------------------------------------------
# Pallas wrappers
# ---------------------------------------------------------------------------
def pallas_linear(x, w, b=None, activation=None, out_dtype=jnp.float32):
    """y = act(x @ w + b).  x: (..., K), w: (K, N) bf16, b: (N,)."""
    *lead, K = x.shape
    N = w.shape[1]
    M = math.prod(lead)
    x2 = x.reshape(M, K)
    if b is None:
        b = jnp.zeros((N,), jnp.float32)
    b2 = b.reshape(1, N).astype(jnp.float32)
    tm, tn = _row_tile(M), _col_tile(N)
    out = pl.pallas_call(
        functools.partial(_linear_kernel, activation=activation),
        out_shape=jax.ShapeDtypeStruct((M, N), out_dtype),
        grid=(pl.cdiv(M, tm), pl.cdiv(N, tn)),
        in_specs=[
            pl.BlockSpec((tm, K), lambda i, j: (i, 0)),
            pl.BlockSpec((K, tn), lambda i, j: (0, j)),
            pl.BlockSpec((1, tn), lambda i, j: (0, j)),
        ],
        out_specs=pl.BlockSpec((tm, tn), lambda i, j: (i, j)),
        compiler_params=pltpu.CompilerParams(
            dimension_semantics=("parallel", "parallel")),
    )(x2, w, b2)
    return out.reshape(*lead, N)


def pallas_oproj_add_ln(x, w, b, res, ln, n_ln):
    """LayerNorm(s) of (res + x @ w + b); ln stacked (2*n_ln, D)."""
    *lead, K = x.shape
    D = w.shape[1]
    M = math.prod(lead)
    tm = _row_tile(M)
    out = pl.pallas_call(
        functools.partial(_oproj_add_ln_kernel, n_ln=n_ln),
        out_shape=jax.ShapeDtypeStruct((M, D), jnp.float32),
        grid=(pl.cdiv(M, tm),),
        in_specs=[
            pl.BlockSpec((tm, K), lambda i: (i, 0)),
            pl.BlockSpec((K, D), lambda i: (0, 0)),
            pl.BlockSpec((1, D), lambda i: (0, 0)),
            pl.BlockSpec((tm, D), lambda i: (i, 0)),
            pl.BlockSpec((2 * n_ln, D), lambda i: (0, 0)),
        ],
        out_specs=pl.BlockSpec((tm, D), lambda i: (i, 0)),
        compiler_params=pltpu.CompilerParams(dimension_semantics=("parallel",)),
    )(x.reshape(M, K), w, b.reshape(1, D).astype(jnp.float32),
      res.reshape(M, D), ln)
    return out.reshape(*lead, D)


def pallas_ffn_ln(x, w1, b1, w2, b2, g, be):
    """LayerNorm(x + FF2(relu(FF1(x)))) fused over the row dimension."""
    *lead, D = x.shape
    F = w1.shape[1]
    M = math.prod(lead)
    tm = _row_tile(M)
    out = pl.pallas_call(
        _ffn_ln_kernel,
        out_shape=jax.ShapeDtypeStruct((M, D), jnp.float32),
        grid=(pl.cdiv(M, tm),),
        in_specs=[
            pl.BlockSpec((tm, D), lambda i: (i, 0)),
            pl.BlockSpec((D, F), lambda i: (0, 0)),
            pl.BlockSpec((1, F), lambda i: (0, 0)),
            pl.BlockSpec((F, D), lambda i: (0, 0)),
            pl.BlockSpec((1, D), lambda i: (0, 0)),
            pl.BlockSpec((1, D), lambda i: (0, 0)),
            pl.BlockSpec((1, D), lambda i: (0, 0)),
        ],
        out_specs=pl.BlockSpec((tm, D), lambda i: (i, 0)),
        compiler_params=pltpu.CompilerParams(dimension_semantics=("parallel",)),
    )(x.reshape(M, D), w1, b1.reshape(1, F).astype(jnp.float32), w2,
      b2.reshape(1, D).astype(jnp.float32), g.reshape(1, D).astype(jnp.float32),
      be.reshape(1, D).astype(jnp.float32))
    return out.reshape(*lead, D)


def pallas_attention(q, kT, v, scale, geo=None):
    """Single-head attention.  q:(B,nq,d), kT:(B,d,nk), v:(B,nk,d), geo:(nq,nk)|None."""
    B, nq, d = q.shape
    nk = v.shape[1]
    tq = min(nq, 256) if nq % 8 == 0 else nq
    in_specs = [
        pl.BlockSpec((1, tq, d), lambda b, i: (b, i, 0)),
        pl.BlockSpec((1, d, nk), lambda b, i: (b, 0, 0)),   # K^T resident over nq tiles
        pl.BlockSpec((1, nk, d), lambda b, i: (b, 0, 0)),   # V   resident over nq tiles
    ]
    args = [q, kT, v]
    if geo is None:
        kernel = functools.partial(_attn_kernel, scale=scale)
    else:
        kernel = functools.partial(_attn_geo_kernel, scale=scale)
        # batch-invariant geometry bias: same block for every b
        in_specs.append(pl.BlockSpec((tq, nk), lambda b, i: (i, 0)))
        args.append(geo)
    return pl.pallas_call(
        kernel,
        out_shape=jax.ShapeDtypeStruct((B, nq, d), jnp.bfloat16),
        grid=(B, pl.cdiv(nq, tq)),
        in_specs=in_specs,
        out_specs=pl.BlockSpec((1, tq, d), lambda b, i: (b, i, 0)),
        compiler_params=pltpu.CompilerParams(
            dimension_semantics=("parallel", "parallel")),
    )(*args)


def pallas_geo_bias(emb, wg, bg):
    """relu(WG(emb)) -> (R, R) geometry bias; emb:(R,R,64), wg:(1,64), bg:(1,1)."""
    R, _, G = emb.shape
    tr = min(R, 64) if R % 8 == 0 else R
    return pl.pallas_call(
        _geo_bias_kernel,
        out_shape=jax.ShapeDtypeStruct((R, R), jnp.float32),
        grid=(pl.cdiv(R, tr),),
        in_specs=[
            pl.BlockSpec((tr, R, G), lambda i: (i, 0, 0)),
            pl.BlockSpec((1, G), lambda i: (0, 0)),
            pl.BlockSpec((1, 1), lambda i: (0, 0)),
        ],
        out_specs=pl.BlockSpec((tr, R), lambda i: (i, 0)),
        compiler_params=pltpu.CompilerParams(dimension_semantics=("parallel",)),
    )(emb, wg, bg)


def pallas_l2_normalize(x, eps=1e-12):
    *lead, C = x.shape
    M = math.prod(lead)
    tm = _row_tile(M)
    out = pl.pallas_call(
        functools.partial(_l2norm_kernel, eps=eps),
        out_shape=jax.ShapeDtypeStruct((M, C), jnp.float32),
        grid=(pl.cdiv(M, tm),),
        in_specs=[pl.BlockSpec((tm, C), lambda i: (i, 0))],
        out_specs=pl.BlockSpec((tm, C), lambda i: (i, 0)),
        compiler_params=pltpu.CompilerParams(dimension_semantics=("parallel",)),
    )(x.reshape(M, C).astype(jnp.float32))
    return out.reshape(*lead, C)


def pallas_rowdot_score(t, m, attT, vb):
    """Fused einsum('iv,vf,bif->bi') tail + class scoring + vec_bias."""
    B, A, D = t.shape
    C = attT.shape[1]
    return pl.pallas_call(
        _rowdot_score_kernel,
        out_shape=jax.ShapeDtypeStruct((B, C), jnp.float32),
        grid=(1,),
        in_specs=[
            pl.BlockSpec((B, A, D), lambda i: (0, 0, 0)),
            pl.BlockSpec((A, D), lambda i: (0, 0)),
            pl.BlockSpec((A, C), lambda i: (0, 0)),
            pl.BlockSpec((1, C), lambda i: (0, 0)),
        ],
        out_specs=pl.BlockSpec((B, C), lambda i: (0, 0)),
        compiler_params=pltpu.CompilerParams(dimension_semantics=("arbitrary",)),
    )(t.astype(jnp.float32), m.astype(jnp.float32), attT, vb.astype(jnp.float32))


PALLAS_OPS = dict(linear=pallas_linear, attention=pallas_attention,
                  oproj_ln=pallas_oproj_add_ln, ffn_ln=pallas_ffn_ln,
                  geo_bias=pallas_geo_bias, l2norm=pallas_l2_normalize,
                  rowdot_score=pallas_rowdot_score)


# ---------------------------------------------------------------------------
# pure-JAX reference ops mirroring the kernels' numerics exactly
# (bf16 MXU inputs, f32 accumulation / statistics) - validates every kernel.
# ---------------------------------------------------------------------------
def _bf(x):
    return x.astype(jnp.bfloat16)


def _ref_linear(x, w, b=None, activation=None, out_dtype=jnp.float32):
    y = jnp.dot(_bf(x), _bf(w), preferred_element_type=jnp.float32)
    if b is not None:
        y = y + b.astype(jnp.float32)
    if activation == "relu":
        y = jnp.maximum(y, 0.0)
    return y.astype(out_dtype)


def _ref_oproj_add_ln(x, w, b, res, ln, n_ln):
    h = jnp.dot(_bf(x), _bf(w), preferred_element_type=jnp.float32) + b.astype(jnp.float32)
    res = res.astype(jnp.float32)
    t = res + h
    for i in range(n_ln):
        mu = jnp.mean(t, axis=-1, keepdims=True)
        tc = t - mu
        var = jnp.mean(tc * tc, axis=-1, keepdims=True)
        t = tc * jax.lax.rsqrt(var + _LN_EPS) * ln[2 * i] + ln[2 * i + 1]
        if i + 1 < n_ln:
            t = res + t
    return t


def _ref_ffn_ln(x, w1, b1, w2, b2, g, be):
    x = x.astype(jnp.float32)
    h = jnp.dot(_bf(x), _bf(w1), preferred_element_type=jnp.float32) + b1.astype(jnp.float32)
    h = jnp.maximum(h, 0.0)
    y = jnp.dot(_bf(h), _bf(w2), preferred_element_type=jnp.float32) + b2.astype(jnp.float32)
    t = x + y
    mu = jnp.mean(t, axis=-1, keepdims=True)
    tc = t - mu
    var = jnp.mean(tc * tc, axis=-1, keepdims=True)
    return tc * jax.lax.rsqrt(var + _LN_EPS) * g + be


def _ref_attention(q, kT, v, scale, geo=None):
    s = jnp.einsum("bqd,bdk->bqk", _bf(q), _bf(kT),
                   preferred_element_type=jnp.float32) * scale
    if geo is not None:
        s = s - geo[None]
    m = jnp.max(s, axis=-1, keepdims=True)
    p = jnp.exp(s - m)
    l = jnp.sum(p, axis=-1, keepdims=True)
    o = jnp.einsum("bqk,bkd->bqd", _bf(p), _bf(v),
                   preferred_element_type=jnp.float32)
    return (o / l).astype(jnp.bfloat16)


def _ref_geo_bias(emb, wg, bg):
    return jnp.maximum(jnp.sum(emb * wg, axis=-1) + bg, 0.0)


def _ref_l2_normalize(x, eps=1e-12):
    x = x.astype(jnp.float32)
    s = jnp.sum(x * x, axis=-1, keepdims=True)
    return x * jax.lax.rsqrt(jnp.maximum(s, eps * eps))


def _ref_rowdot_score(t, m, attT, vb):
    emb = jnp.sum(t.astype(jnp.float32) * m.astype(jnp.float32), axis=-1)
    s = jnp.dot(_bf(emb), _bf(attT), preferred_element_type=jnp.float32)
    return s + vb.astype(jnp.float32)


REF_OPS = dict(linear=_ref_linear, attention=_ref_attention,
               oproj_ln=_ref_oproj_add_ln, ffn_ln=_ref_ffn_ln,
               geo_bias=_ref_geo_bias, l2norm=_ref_l2_normalize,
               rowdot_score=_ref_rowdot_score)


# ---------------------------------------------------------------------------
# TransZero model graph (shared between Pallas and reference ops)
# ---------------------------------------------------------------------------
def box_relational_embedding(grid_size, dim_g=64, wave_len=1000.0):
    """Batch-invariant geometry embedding (mirrors BoxRelationalEmbedding)."""
    gh, gw = grid_size
    x = jnp.arange(gh, dtype=jnp.float32)
    y = jnp.arange(gw, dtype=jnp.float32)
    px_min = jnp.repeat(x, gh)
    py_min = jnp.tile(y, gw)
    rpx_min, rpx_max = px_min / gh, (px_min + 1.0) / gh
    rpy_min, rpy_max = py_min / gw, (py_min + 1.0) / gw
    cx = (rpx_min + rpx_max) * 0.5
    cy = (rpy_min + rpy_max) * 0.5
    w = rpx_max - rpx_min + 1.0
    h = rpy_max - rpy_min + 1.0
    delta_x = jnp.log(jnp.maximum(jnp.abs((cx[:, None] - cx[None, :]) / w[:, None]), 1e-3))
    delta_y = jnp.log(jnp.maximum(jnp.abs((cy[:, None] - cy[None, :]) / h[:, None]), 1e-3))
    delta_w = jnp.log(w[:, None] / w[None, :])
    delta_h = jnp.log(h[:, None] / h[None, :])
    pos = jnp.stack([delta_x, delta_y, delta_w, delta_h], axis=-1)      # (S, S, 4)
    feat_range = jnp.arange(dim_g // 8, dtype=jnp.float32)
    dim_mat = 1.0 / (wave_len ** (feat_range / (dim_g / 8.0)))          # (8,)
    mul = 100.0 * pos[..., None] * dim_mat                              # (S, S, 4, 8)
    S = gh * gw
    mul = mul.reshape(S, S, -1)                                         # (S, S, 32)
    return jnp.concatenate([jnp.sin(mul), jnp.cos(mul)], axis=-1)       # (S, S, 64)


def transzero_forward(prep, Fs, cfg, ops):
    """TransZero.forward given backbone features Fs (B, dim_f, H, W)."""
    B, C, H, W = Fs.shape
    R = H * W
    D = cfg["d_model"]
    scale = 1.0 / math.sqrt(D)

    # ----- forward_feature_transformer -----
    f = jnp.transpose(Fs.reshape(B, C, R), (0, 2, 1))                      # (B, R, C)
    f = ops["l2norm"](f)                                                   # F.normalize(Fs, dim=1)
    # TODO(synk): source references undefined self.config.normalize_V; exposed as a flag.
    Vn = ops["l2norm"](prep["V"]) if cfg["normalize_V"] else prep["V"]

    h_cv = ops["linear"](f, prep["embed_cv_w"], prep["embed_cv_b"])        # (B, R, D) f32
    h_attr = ops["linear"](Vn, prep["embed_attr_w"], prep["embed_attr_b"])  # (A, D) f32

    # batch-invariant relative geometry weights (computed once, shared over B)
    geo = ops["geo_bias"](prep["geo_emb"], prep["enc"]["wg_w"], prep["enc"]["wg_b"])  # (R, R)

    # ----- encoder layer (MultiHeadGeometryAttention + PWFF, h=1, eval) -----
    ep = prep["enc"]
    qkv = ops["linear"](h_cv, ep["qkv_w"], ep["qkv_b"], out_dtype=jnp.bfloat16)   # (B,R,3D)
    q, k, v = qkv[..., :D], qkv[..., D:2 * D], qkv[..., 2 * D:]
    att = ops["attention"](q, jnp.swapaxes(k, 1, 2), v, scale, geo)               # (B,R,D) bf16
    enc_x = ops["oproj_ln"](att, ep["o_w"], ep["o_b"], h_cv, ep["ln_att"], 2)     # (B,R,D) f32
    memory = ops["ffn_ln"](enc_x, ep["ff1_w"], ep["ff1_b"], ep["ff2_w"], ep["ff2_b"],
                           ep["ln_ff_g"], ep["ln_ff_b"])                          # (B,R,D)

    # ----- decoder layer (post-norm, SAtt=True, nhead=1, eval) -----
    dp = prep["dec"]
    # self-attention sub-layer is batch-invariant (tgt == h_attr for every b)
    tgt = h_attr[None]                                                            # (1,A,D)
    qkv = ops["linear"](tgt, dp["self_qkv_w"], dp["self_qkv_b"], out_dtype=jnp.bfloat16)
    q, k, v = qkv[..., :D], qkv[..., D:2 * D], qkv[..., 2 * D:]
    sa = ops["attention"](q, jnp.swapaxes(k, 1, 2), v, scale)                     # no bias
    tgt = ops["oproj_ln"](sa, dp["self_o_w"], dp["self_o_b"], tgt, dp["ln1"], 1)  # (1,A,D)
    tgt = jnp.broadcast_to(tgt, (B,) + tgt.shape[1:])                             # (B,A,D)

    qc = ops["linear"](tgt, dp["cross_q_w"], dp["cross_q_b"], out_dtype=jnp.bfloat16)
    kv = ops["linear"](memory, dp["cross_kv_w"], dp["cross_kv_b"], out_dtype=jnp.bfloat16)
    k, v = kv[..., :D], kv[..., D:]
    ca = ops["attention"](qc, jnp.swapaxes(k, 1, 2), v, scale)                    # no bias
    tgt = ops["oproj_ln"](ca, dp["cross_o_w"], dp["cross_o_b"], tgt, dp["ln2"], 1)
    dec_out = ops["ffn_ln"](tgt, dp["ff1_w"], dp["ff1_b"], dp["ff2_w"], dp["ff2_b"],
                            dp["ln3_g"], dp["ln3_b"])                             # (B,A,D)

    # embed = einsum('iv,vf,bif->bi', V_n, W_1, dec_out); scores = embed @ att^T + vec_bias
    vw = ops["linear"](Vn, prep["W_1"])                                           # (A, D)
    scores = ops["rowdot_score"](dec_out, vw, prep["attT"], prep["vec_bias"])     # (B, nclass)
    return {"embed": scores}


# ---------------------------------------------------------------------------
# parameters
# ---------------------------------------------------------------------------
def init_params(key, cfg):
    D, dff = cfg["d_model"], cfg["d_ff"]
    A, dv, Cf, nc = cfg["num_attribute"], cfg["dim_v"], cfg["dim_f"], cfg["nclass"]
    keys = iter(jax.random.split(key, 64))

    def w(shape):
        return jax.random.normal(next(keys), shape, jnp.float32) / math.sqrt(shape[0])

    def vec(n, s=0.05):
        return s * jax.random.normal(next(keys), (n,), jnp.float32)

    def ln(n):
        return (1.0 + 0.1 * jax.random.normal(next(keys), (n,), jnp.float32),
                0.1 * jax.random.normal(next(keys), (n,), jnp.float32))

    enc = dict(wg_w=w((64, 1)), wg_b=vec(1))
    for nm in ("q", "k", "v", "o"):
        enc[f"fc_{nm}_w"] = w((D, D))
        enc[f"fc_{nm}_b"] = vec(D)
    enc["ln_mha_g"], enc["ln_mha_b"] = ln(D)
    enc["ln_enc_g"], enc["ln_enc_b"] = ln(D)
    enc["ff1_w"], enc["ff1_b"] = w((D, dff)), vec(dff)
    enc["ff2_w"], enc["ff2_b"] = w((dff, D)), vec(D)
    enc["ln_ff_g"], enc["ln_ff_b"] = ln(D)

    dec = {}
    for blk in ("self", "cross"):
        for nm in ("q", "k", "v", "o"):
            dec[f"{blk}_{nm}_w"] = w((D, D))
            dec[f"{blk}_{nm}_b"] = vec(D)
    for i in (1, 2, 3):
        dec[f"ln{i}_g"], dec[f"ln{i}_b"] = ln(D)
    dec["ff1_w"], dec["ff1_b"] = w((D, dff)), vec(dff)
    dec["ff2_w"], dec["ff2_b"] = w((dff, D)), vec(D)

    return dict(
        att=jax.random.normal(next(keys), (nc, A), jnp.float32) / math.sqrt(A),
        mask_bias=0.1 * jax.random.normal(next(keys), (1, nc), jnp.float32),
        bias=jnp.float32(1.0),
        V=jax.random.normal(next(keys), (A, dv), jnp.float32),
        W_1=jax.random.normal(next(keys), (dv, D), jnp.float32) / math.sqrt(dv),
        embed_cv_w=w((Cf, D)), embed_cv_b=vec(D),
        embed_attr_w=w((dv, D)), embed_attr_b=vec(D),
        enc=enc, dec=dec,
    )


def prepare_params(params, cfg, grid_hw):
    """One-time prep OUTSIDE jit: bf16 weight casts, QKV / KV fusion, LayerNorm
    stacking, att^T, vec_bias and the constant geometry embedding."""
    del cfg
    bf = lambda a: a.astype(jnp.bfloat16)
    e, d = params["enc"], params["dec"]
    enc = dict(
        qkv_w=bf(jnp.concatenate([e["fc_q_w"], e["fc_k_w"], e["fc_v_w"]], axis=1)),
        qkv_b=jnp.concatenate([e["fc_q_b"], e["fc_k_b"], e["fc_v_b"]]),
        o_w=bf(e["fc_o_w"]), o_b=e["fc_o_b"],
        ln_att=jnp.stack([e["ln_mha_g"], e["ln_mha_b"], e["ln_enc_g"], e["ln_enc_b"]]),
        ff1_w=bf(e["ff1_w"]), ff1_b=e["ff1_b"],
        ff2_w=bf(e["ff2_w"]), ff2_b=e["ff2_b"],
        ln_ff_g=e["ln_ff_g"], ln_ff_b=e["ln_ff_b"],
        wg_w=e["wg_w"].reshape(1, -1).astype(jnp.float32),
        wg_b=e["wg_b"].reshape(1, 1).astype(jnp.float32),
    )
    dec = dict(
        self_qkv_w=bf(jnp.concatenate([d["self_q_w"], d["self_k_w"], d["self_v_w"]], axis=1)),
        self_qkv_b=jnp.concatenate([d["self_q_b"], d["self_k_b"], d["self_v_b"]]),
        self_o_w=bf(d["self_o_w"]), self_o_b=d["self_o_b"],
        ln1=jnp.stack([d["ln1_g"], d["ln1_b"]]),
        cross_q_w=bf(d["cross_q_w"]), cross_q_b=d["cross_q_b"],
        cross_kv_w=bf(jnp.concatenate([d["cross_k_w"], d["cross_v_w"]], axis=1)),
        cross_kv_b=jnp.concatenate([d["cross_k_b"], d["cross_v_b"]]),
        cross_o_w=bf(d["cross_o_w"]), cross_o_b=d["cross_o_b"],
        ln2=jnp.stack([d["ln2_g"], d["ln2_b"]]),
        ff1_w=bf(d["ff1_w"]), ff1_b=d["ff1_b"],
        ff2_w=bf(d["ff2_w"]), ff2_b=d["ff2_b"],
        ln3_g=d["ln3_g"], ln3_b=d["ln3_b"],
    )
    return dict(
        embed_cv_w=bf(params["embed_cv_w"]), embed_cv_b=params["embed_cv_b"],
        embed_attr_w=bf(params["embed_attr_w"]), embed_attr_b=params["embed_attr_b"],
        V=params["V"], W_1=bf(params["W_1"]),
        attT=bf(params["att"].T),
        vec_bias=(params["mask_bias"] * params["bias"]).reshape(1, -1).astype(jnp.float32),
        geo_emb=box_relational_embedding(grid_hw),
        enc=enc, dec=dec,
    )


class TransZeroPallas:
    """JAX/Pallas implementation of TransZero's forward pass (inference mode)."""

    def __init__(self, params, cfg, grid_hw):
        self.cfg = cfg
        self.prep = prepare_params(params, cfg, grid_hw)
        self._fwd = jax.jit(functools.partial(transzero_forward, cfg=cfg, ops=PALLAS_OPS))

    def forward(self, features):
        # TODO(synk): ResNet-101 backbone not translated; `features` = resnet101(imgs).
        return self._fwd(self.prep, features)

    __call__ = forward


# ---------------------------------------------------------------------------
# main
# ---------------------------------------------------------------------------
if __name__ == "__main__":
    # Small-shape stand-ins for the original config
    # (dim_f 2048->64, grid 14x14->4x4, dim_v 300->32, attrs 30->8,
    #  classes 1000->16, d_model 512->128, d_ff 512->128, heads=1, 1 enc / 1 dec layer).
    cfg = dict(dim_f=64, dim_v=32, num_attribute=8, nclass=16,
               d_model=128, d_ff=128, normalize_V=True)

    key = jax.random.PRNGKey(0)
    k_feat, k_par = jax.random.split(key)
    B, H, W = 2, 4, 4
    Fs = jax.random.normal(k_feat, (B, cfg["dim_f"], H, W), dtype=jnp.float32)
    params = init_params(k_par, cfg)

    model = TransZeroPallas(params, cfg, grid_hw=(H, W))
    out = model(Fs)
    scores = jax.block_until_ready(out["embed"])

    # Pure-JAX reference of the same graph with identical bf16-input / f32-acc
    # numerics validates every Pallas kernel.
    ref = jax.block_until_ready(
        transzero_forward(model.prep, Fs, cfg=cfg, ops=REF_OPS)["embed"])

    assert scores.shape == (B, cfg["nclass"]) and scores.dtype == jnp.float32
    assert bool(jnp.all(jnp.isfinite(scores)))
    max_diff = float(jnp.max(jnp.abs(scores - ref)))
    assert bool(jnp.allclose(scores, ref, rtol=3e-3, atol=3e-3)), \
        f"max abs diff vs reference: {max_diff}"

    print("KERNEL_OK")
</pallas_src>

<mosaic_0001>
module attributes {stable_mosaic.version = 11 : i64} {
  func.func @_l2norm_kernel(%arg0: i32, %arg1: memref<8x32xf32, #tpu.memory_space<vmem>>, %arg2: memref<8x32xf32, #tpu.memory_space<vmem>>) attributes {dimension_semantics = [#tpu.dimension_semantics<parallel>], iteration_bounds = array<i64: 1>, scalar_prefetch = 0 : i64, scratch_operands = 0 : i64, tpu.core_type = #tpu.core_type<tc>, window_params = [{transform_indices = @transform_0, window_bounds = array<i64: 8, 32>}, {transform_indices = @transform_1, window_bounds = array<i64: 8, 32>}]} {
    %c0 = arith.constant 0 : index
    %c0_0 = arith.constant 0 : index
    %0 = vector.load %arg1[%c0, %c0_0] : memref<8x32xf32, #tpu.memory_space<vmem>>, vector<8x32xf32>
    %1 = arith.mulf %0, %0 : vector<8x32xf32>
    %cst = arith.constant dense<0.000000e+00> : vector<8xf32>
    %2 = vector.multi_reduction <add>, %1, %cst [1] : vector<8x32xf32> to vector<8xf32>
    %3 = vector.shape_cast %2 : vector<8xf32> to vector<8x1xf32>
    %cst_1 = arith.constant 1.000000e-24 : f32
    %4 = vector.broadcast %cst_1 : f32 to vector<8x1xf32>
    %5 = arith.maximumf %3, %4 : vector<8x1xf32>
    %6 = math.rsqrt %5 : vector<8x1xf32>
    %7 = vector.broadcast %6 : vector<8x1xf32> to vector<8x32xf32>
    %8 = arith.mulf %0, %7 : vector<8x32xf32>
    %c0_2 = arith.constant 0 : index
    %c0_3 = arith.constant 0 : index
    %9 = vector.load %arg2[%c0_2, %c0_3] : memref<8x32xf32, #tpu.memory_space<vmem>>, vector<8x32xf32>
    tpu.vector_store %arg2[%c0_2, %c0_3], %8 {strides = array<i32>} : memref<8x32xf32, #tpu.memory_space<vmem>>, vector<8x32xf32>,
    return
  }
  func.func @transform_0(%arg0: i32) -> (i32, i32) {
    %c0_i32 = arith.constant 0 : i32
    %c0_i32_0 = arith.constant 0 : i32
    return %arg0, %c0_i32 : i32, i32
  }
  func.func @transform_1(%arg0: i32) -> (i32, i32) {
    %c0_i32 = arith.constant 0 : i32
    %c0_i32_0 = arith.constant 0 : i32
    return %arg0, %c0_i32 : i32, i32
  }
}

module attributes {stable_mosaic.version = 11 : i64} {
  func.func @_linear_kernel(%arg0: i32, %arg1: i32, %arg2: memref<8x128xf32, #tpu.memory_space<vmem>>, %arg3: memref<128x384xbf16, #tpu.memory_space<vmem>>, %arg4: memref<1x384xf32, #tpu.memory_space<vmem>>, %arg5: memref<8x384xbf16, #tpu.memory_space<vmem>>) attributes {dimension_semantics = [#tpu.dimension_semantics<parallel>, #tpu.dimension_semantics<parallel>], iteration_bounds = array<i64: 1, 1>, scalar_prefetch = 0 : i64, scratch_operands = 0 : i64, tpu.core_type = #tpu.core_type<tc>, window_params = [{transform_indices = @transform_0, window_bounds = array<i64: 8, 128>}, {transform_indices = @transform_1, window_bounds = array<i64: 128, 384>}, {transform_indices = @transform_2, window_bounds = array<i64: 1, 384>}, {transform_indices = @transform_3, window_bounds = array<i64: 8, 384>}]} {
    %c0 = arith.constant 0 : index
    %c0_0 = arith.constant 0 : index
    %0 = vector.load %arg2[%c0, %c0_0] : memref<8x128xf32, #tpu.memory_space<vmem>>, vector<8x128xf32>
    %1 = arith.truncf %0 : vector<8x128xf32> to vector<8x128xbf16>
    %c0_1 = arith.constant 0 : index
    %c0_2 = arith.constant 0 : index
    %2 = vector.load %arg3[%c0_1, %c0_2] : memref<128x384xbf16, #tpu.memory_space<vmem>>, vector<128x384xbf16>
    %cst = arith.constant dense<0.000000e+00> : vector<8x384xf32>
    %3 = tpu.matmul %1, %2, %cst {dimension_numbers = #tpu.dot_dimension_numbers<[1], [0], [0], [1], [0, 0, 1, 1], [], []>} : vector<8x128xbf16>, vector<128x384xbf16>, vector<8x384xf32> -> vector<8x384xf32>
    %c0_3 = arith.constant 0 : index
    %c0_4 = arith.constant 0 : index
    %4 = vector.load %arg4[%c0_3, %c0_4] : memref<1x384xf32, #tpu.memory_space<vmem>>, vector<1x384xf32>
    %5 = vector.broadcast %4 : vector<1x384xf32> to vector<8x384xf32>
    %6 = arith.addf %3, %5 : vector<8x384xf32>
    %7 = arith.truncf %6 : vector<8x384xf32> to vector<8x384xbf16>
    %c0_5 = arith.constant 0 : index
    %c0_6 = arith.constant 0 : index
    %8 = vector.load %arg5[%c0_5, %c0_6] : memref<8x384xbf16, #tpu.memory_space<vmem>>, vector<8x384xbf16>
    tpu.vector_store %arg5[%c0_5, %c0_6], %7 {strides = array<i32>} : memref<8x384xbf16, #tpu.memory_space<vmem>>, vector<8x384xbf16>,
    return
  }
  func.func @transform_0(%arg0: i32, %arg1: i32) -> (i32, i32) {
    %c0_i32 = arith.constant 0 : i32
    %c0_i32_0 = arith.constant 0 : i32
    return %arg0, %c0_i32 : i32, i32
  }
  func.func @transform_1(%arg0: i32, %arg1: i32) -> (i32, i32) {
    %c0_i32 = arith.constant 0 : i32
    %c0_i32_0 = arith.constant 0 : i32
    return %c0_i32, %arg1 : i32, i32
  }
  func.func @transform_2(%arg0: i32, %arg1: i32) -> (i32, i32) {
    %c0_i32 = arith.constant 0 : i32
    %c0_i32_0 = arith.constant 0 : i32
    return %c0_i32, %arg1 : i32, i32
  }
  func.func @transform_3(%arg0: i32, %arg1: i32) -> (i32, i32) {
    %c0_i32 = arith.constant 0 : i32
    return %arg0, %arg1 : i32, i32
  }
}

module attributes {stable_mosaic.version = 11 : i64} {
  func.func @_linear_kernel(%arg0: i32, %arg1: i32, %arg2: memref<8x32xf32, #tpu.memory_space<vmem>>, %arg3: memref<32x128xbf16, #tpu.memory_space<vmem>>, %arg4: memref<1x128xf32, #tpu.memory_space<vmem>>, %arg5: memref<8x128xf32, #tpu.memory_space<vmem>>) attributes {dimension_semantics = [#tpu.dimension_semantics<parallel>, #tpu.dimension_semantics<parallel>], iteration_bounds = array<i64: 1, 1>, scalar_prefetch = 0 : i64, scratch_operands = 0 : i64, tpu.core_type = #tpu.core_type<tc>, window_params = [{transform_indices = @transform_0, window_bounds = array<i64: 8, 32>}, {transform_indices = @transform_1, window_bounds = array<i64: 32, 128>}, {transform_indices = @transform_2, window_bounds = array<i64: 1, 128>}, {transform_indices = @transform_3, window_bounds = array<i64: 8, 128>}]} {
    %c0 = arith.constant 0 : index
    %c0_0 = arith.constant 0 : index
    %0 = vector.load %arg2[%c0, %c0_0] : memref<8x32xf32, #tpu.memory_space<vmem>>, vector<8x32xf32>
    %1 = arith.truncf %0 : vector<8x32xf32> to vector<8x32xbf16>
    %c0_1 = arith.constant 0 : index
    %c0_2 = arith.constant 0 : index
    %2 = vector.load %arg3[%c0_1, %c0_2] : memref<32x128xbf16, #tpu.memory_space<vmem>>, vector<32x128xbf16>
    %cst = arith.constant dense<0.000000e+00> : vector<8x128xf32>
    %3 = tpu.matmul %1, %2, %cst {dimension_numbers = #tpu.dot_dimension_numbers<[1], [0], [0], [1], [0, 0, 1, 1], [], []>} : vector<8x32xbf16>, vector<32x128xbf16>, vector<8x128xf32> -> vector<8x128xf32>
    %c0_3 = arith.constant 0 : index
    %c0_4 = arith.constant 0 : index
    %4 = vector.load %arg4[%c0_3, %c0_4] : memref<1x128xf32, #tpu.memory_space<vmem>>, vector<1x128xf32>
    %5 = vector.broadcast %4 : vector<1x128xf32> to vector<8x128xf32>
    %6 = arith.addf %3, %5 : vector<8x128xf32>
    %c0_5 = arith.constant 0 : index
    %c0_6 = arith.constant 0 : index
    %7 = vector.load %arg5[%c0_5, %c0_6] : memref<8x128xf32, #tpu.memory_space<vmem>>, vector<8x128xf32>
    tpu.vector_store %arg5[%c0_5, %c0_6], %6 {strides = array<i32>} : memref<8x128xf32, #tpu.memory_space<vmem>>, vector<8x128xf32>,
    return
  }
  func.func @transform_0(%arg0: i32, %arg1: i32) -> (i32, i32) {
    %c0_i32 = arith.constant 0 : i32
    %c0_i32_0 = arith.constant 0 : i32
    return %arg0, %c0_i32 : i32, i32
  }
  func.func @transform_1(%arg0: i32, %arg1: i32) -> (i32, i32) {
    %c0_i32 = arith.constant 0 : i32
    %c0_i32_0 = arith.constant 0 : i32
    return %c0_i32, %arg1 : i32, i32
  }
  func.func @transform_2(%arg0: i32, %arg1: i32) -> (i32, i32) {
    %c0_i32 = arith.constant 0 : i32
    %c0_i32_0 = arith.constant 0 : i32
    return %c0_i32, %arg1 : i32, i32
  }
  func.func @transform_3(%arg0: i32, %arg1: i32) -> (i32, i32) {
    %c0_i32 = arith.constant 0 : i32
    return %arg0, %arg1 : i32, i32
  }
}

module attributes {stable_mosaic.version = 11 : i64} {
  func.func @_linear_kernel(%arg0: i32, %arg1: i32, %arg2: memref<8x32xf32, #tpu.memory_space<vmem>>, %arg3: memref<32x128xbf16, #tpu.memory_space<vmem>>, %arg4: memref<1x128xf32, #tpu.memory_space<vmem>>, %arg5: memref<8x128xf32, #tpu.memory_space<vmem>>) attributes {dimension_semantics = [#tpu.dimension_semantics<parallel>, #tpu.dimension_semantics<parallel>], iteration_bounds = array<i64: 1, 1>, scalar_prefetch = 0 : i64, scratch_operands = 0 : i64, tpu.core_type = #tpu.core_type<tc>, window_params = [{transform_indices = @transform_0, window_bounds = array<i64: 8, 32>}, {transform_indices = @transform_1, window_bounds = array<i64: 32, 128>}, {transform_indices = @transform_2, window_bounds = array<i64: 1, 128>}, {transform_indices = @transform_3, window_bounds = array<i64: 8, 128>}]} {
    %c0 = arith.constant 0 : index
    %c0_0 = arith.constant 0 : index
    %0 = vector.load %arg2[%c0, %c0_0] : memref<8x32xf32, #tpu.memory_space<vmem>>, vector<8x32xf32>
    %1 = arith.truncf %0 : vector<8x32xf32> to vector<8x32xbf16>
    %c0_1 = arith.constant 0 : index
    %c0_2 = arith.constant 0 : index
    %2 = vector.load %arg3[%c0_1, %c0_2] : memref<32x128xbf16, #tpu.memory_space<vmem>>, vector<32x128xbf16>
    %cst = arith.constant dense<0.000000e+00> : vector<8x128xf32>
    %3 = tpu.matmul %1, %2, %cst {dimension_numbers = #tpu.dot_dimension_numbers<[1], [0], [0], [1], [0, 0, 1, 1], [], []>} : vector<8x32xbf16>, vector<32x128xbf16>, vector<8x128xf32> -> vector<8x128xf32>
    %c0_3 = arith.constant 0 : index
    %c0_4 = arith.constant 0 : index
    %4 = vector.load %arg4[%c0_3, %c0_4] : memref<1x128xf32, #tpu.memory_space<vmem>>, vector<1x128xf32>
    %5 = vector.broadcast %4 : vector<1x128xf32> to vector<8x128xf32>
    %6 = arith.addf %3, %5 : vector<8x128xf32>
    %c0_5 = arith.constant 0 : index
    %c0_6 = arith.constant 0 : index
    %7 = vector.load %arg5[%c0_5, %c0_6] : memref<8x128xf32, #tpu.memory_space<vmem>>, vector<8x128xf32>
    tpu.vector_store %arg5[%c0_5, %c0_6], %6 {strides = array<i32>} : memref<8x128xf32, #tpu.memory_space<vmem>>, vector<8x128xf32>,
    return
  }
  func.func @transform_0(%arg0: i32, %arg1: i32) -> (i32, i32) {
    %c0_i32 = arith.constant 0 : i32
    %c0_i32_0 = arith.constant 0 : i32
    return %arg0, %c0_i32 : i32, i32
  }
  func.func @transform_1(%arg0: i32, %arg1: i32) -> (i32, i32) {
    %c0_i32 = arith.constant 0 : i32
    %c0_i32_0 = arith.constant 0 : i32
    return %c0_i32, %arg1 : i32, i32
  }
  func.func @transform_2(%arg0: i32, %arg1: i32) -> (i32, i32) {
    %c0_i32 = arith.constant 0 : i32
    %c0_i32_0 = arith.constant 0 : i32
    return %c0_i32, %arg1 : i32, i32
  }
  func.func @transform_3(%arg0: i32, %arg1: i32) -> (i32, i32) {
    %c0_i32 = arith.constant 0 : i32
    return %arg0, %arg1 : i32, i32
  }
}

module attributes {stable_mosaic.version = 11 : i64} {
  func.func @_linear_kernel(%arg0: i32, %arg1: i32, %arg2: memref<32x64xf32, #tpu.memory_space<vmem>>, %arg3: memref<64x128xbf16, #tpu.memory_space<vmem>>, %arg4: memref<1x128xf32, #tpu.memory_space<vmem>>, %arg5: memref<32x128xf32, #tpu.memory_space<vmem>>) attributes {dimension_semantics = [#tpu.dimension_semantics<parallel>, #tpu.dimension_semantics<parallel>], iteration_bounds = array<i64: 1, 1>, scalar_prefetch = 0 : i64, scratch_operands = 0 : i64, tpu.core_type = #tpu.core_type<tc>, window_params = [{transform_indices = @transform_0, window_bounds = array<i64: 32, 64>}, {transform_indices = @transform_1, window_bounds = array<i64: 64, 128>}, {transform_indices = @transform_2, window_bounds = array<i64: 1, 128>}, {transform_indices = @transform_3, window_bounds = array<i64: 32, 128>}]} {
    %c0 = arith.constant 0 : index
    %c0_0 = arith.constant 0 : index
    %0 = vector.load %arg2[%c0, %c0_0] : memref<32x64xf32, #tpu.memory_space<vmem>>, vector<32x64xf32>
    %1 = arith.truncf %0 : vector<32x64xf32> to vector<32x64xbf16>
    %c0_1 = arith.constant 0 : index
    %c0_2 = arith.constant 0 : index
    %2 = vector.load %arg3[%c0_1, %c0_2] : memref<64x128xbf16, #tpu.memory_space<vmem>>, vector<64x128xbf16>
    %cst = arith.constant dense<0.000000e+00> : vector<32x128xf32>
    %3 = tpu.matmul %1, %2, %cst {dimension_numbers = #tpu.dot_dimension_numbers<[1], [0], [0], [1], [0, 0, 1, 1], [], []>} : vector<32x64xbf16>, vector<64x128xbf16>, vector<32x128xf32> -> vector<32x128xf32>
    %c0_3 = arith.constant 0 : index
    %c0_4 = arith.constant 0 : index
    %4 = vector.load %arg4[%c0_3, %c0_4] : memref<1x128xf32, #tpu.memory_space<vmem>>, vector<1x128xf32>
    %5 = vector.broadcast %4 : vector<1x128xf32> to vector<32x128xf32>
    %6 = arith.addf %3, %5 : vector<32x128xf32>
    %c0_5 = arith.constant 0 : index
    %c0_6 = arith.constant 0 : index
    %7 = vector.load %arg5[%c0_5, %c0_6] : memref<32x128xf32, #tpu.memory_space<vmem>>, vector<32x128xf32>
    tpu.vector_store %arg5[%c0_5, %c0_6], %6 {strides = array<i32>} : memref<32x128xf32, #tpu.memory_space<vmem>>, vector<32x128xf32>,
    return
  }
  func.func @transform_0(%arg0: i32, %arg1: i32) -> (i32, i32) {
    %c0_i32 = arith.constant 0 : i32
    %c0_i32_0 = arith.constant 0 : i32
    return %arg0, %c0_i32 : i32, i32
  }
  func.func @transform_1(%arg0: i32, %arg1: i32) -> (i32, i32) {
    %c0_i32 = arith.constant 0 : i32
    %c0_i32_0 = arith.constant 0 : i32
    return %c0_i32, %arg1 : i32, i32
  }
  func.func @transform_2(%arg0: i32, %arg1: i32) -> (i32, i32) {
    %c0_i32 = arith.constant 0 : i32
    %c0_i32_0 = arith.constant 0 : i32
    return %c0_i32, %arg1 : i32, i32
  }
  func.func @transform_3(%arg0: i32, %arg1: i32) -> (i32, i32) {
    %c0_i32 = arith.constant 0 : i32
    return %arg0, %arg1 : i32, i32
  }
}

module attributes {stable_mosaic.version = 11 : i64} {
  func.func @_linear_kernel(%arg0: i32, %arg1: i32, %arg2: memref<32x128xf32, #tpu.memory_space<vmem>>, %arg3: memref<128x384xbf16, #tpu.memory_space<vmem>>, %arg4: memref<1x384xf32, #tpu.memory_space<vmem>>, %arg5: memref<32x384xbf16, #tpu.memory_space<vmem>>) attributes {dimension_semantics = [#tpu.dimension_semantics<parallel>, #tpu.dimension_semantics<parallel>], iteration_bounds = array<i64: 1, 1>, scalar_prefetch = 0 : i64, scratch_operands = 0 : i64, tpu.core_type = #tpu.core_type<tc>, window_params = [{transform_indices = @transform_0, window_bounds = array<i64: 32, 128>}, {transform_indices = @transform_1, window_bounds = array<i64: 128, 384>}, {transform_indices = @transform_2, window_bounds = array<i64: 1, 384>}, {transform_indices = @transform_3, window_bounds = array<i64: 32, 384>}]} {
    %c0 = arith.constant 0 : index
    %c0_0 = arith.constant 0 : index
    %0 = vector.load %arg2[%c0, %c0_0] : memref<32x128xf32, #tpu.memory_space<vmem>>, vector<32x128xf32>
    %1 = arith.truncf %0 : vector<32x128xf32> to vector<32x128xbf16>
    %c0_1 = arith.constant 0 : index
    %c0_2 = arith.constant 0 : index
    %2 = vector.load %arg3[%c0_1, %c0_2] : memref<128x384xbf16, #tpu.memory_space<vmem>>, vector<128x384xbf16>
    %cst = arith.constant dense<0.000000e+00> : vector<32x384xf32>
    %3 = tpu.matmul %1, %2, %cst {dimension_numbers = #tpu.dot_dimension_numbers<[1], [0], [0], [1], [0, 0, 1, 1], [], []>} : vector<32x128xbf16>, vector<128x384xbf16>, vector<32x384xf32> -> vector<32x384xf32>
    %c0_3 = arith.constant 0 : index
    %c0_4 = arith.constant 0 : index
    %4 = vector.load %arg4[%c0_3, %c0_4] : memref<1x384xf32, #tpu.memory_space<vmem>>, vector<1x384xf32>
    %5 = vector.broadcast %4 : vector<1x384xf32> to vector<32x384xf32>
    %6 = arith.addf %3, %5 : vector<32x384xf32>
    %7 = arith.truncf %6 : vector<32x384xf32> to vector<32x384xbf16>
    %c0_5 = arith.constant 0 : index
    %c0_6 = arith.constant 0 : index
    %8 = vector.load %arg5[%c0_5, %c0_6] : memref<32x384xbf16, #tpu.memory_space<vmem>>, vector<32x384xbf16>
    tpu.vector_store %arg5[%c0_5, %c0_6], %7 {strides = array<i32>} : memref<32x384xbf16, #tpu.memory_space<vmem>>, vector<32x384xbf16>,
    return
  }
  func.func @transform_0(%arg0: i32, %arg1: i32) -> (i32, i32) {
    %c0_i32 = arith.constant 0 : i32
    %c0_i32_0 = arith.constant 0 : i32
    return %arg0, %c0_i32 : i32, i32
  }
  func.func @transform_1(%arg0: i32, %arg1: i32) -> (i32, i32) {
    %c0_i32 = arith.constant 0 : i32
    %c0_i32_0 = arith.constant 0 : i32
    return %c0_i32, %arg1 : i32, i32
  }
  func.func @transform_2(%arg0: i32, %arg1: i32) -> (i32, i32) {
    %c0_i32 = arith.constant 0 : i32
    %c0_i32_0 = arith.constant 0 : i32
    return %c0_i32, %arg1 : i32, i32
  }
  func.func @transform_3(%arg0: i32, %arg1: i32) -> (i32, i32) {
    %c0_i32 = arith.constant 0 : i32
    return %arg0, %arg1 : i32, i32
  }
}

module attributes {stable_mosaic.version = 11 : i64} {
  func.func @_l2norm_kernel(%arg0: i32, %arg1: memref<32x64xf32, #tpu.memory_space<vmem>>, %arg2: memref<32x64xf32, #tpu.memory_space<vmem>>) attributes {dimension_semantics = [#tpu.dimension_semantics<parallel>], iteration_bounds = array<i64: 1>, scalar_prefetch = 0 : i64, scratch_operands = 0 : i64, tpu.core_type = #tpu.core_type<tc>, window_params = [{transform_indices = @transform_0, window_bounds = array<i64: 32, 64>}, {transform_indices = @transform_1, window_bounds = array<i64: 32, 64>}]} {
    %c0 = arith.constant 0 : index
    %c0_0 = arith.constant 0 : index
    %0 = vector.load %arg1[%c0, %c0_0] : memref<32x64xf32, #tpu.memory_space<vmem>>, vector<32x64xf32>
    %1 = arith.mulf %0, %0 : vector<32x64xf32>
    %cst = arith.constant dense<0.000000e+00> : vector<32xf32>
    %2 = vector.multi_reduction <add>, %1, %cst [1] : vector<32x64xf32> to vector<32xf32>
    %3 = vector.shape_cast %2 : vector<32xf32> to vector<32x1xf32>
    %cst_1 = arith.constant 1.000000e-24 : f32
    %4 = vector.broadcast %cst_1 : f32 to vector<32x1xf32>
    %5 = arith.maximumf %3, %4 : vector<32x1xf32>
    %6 = math.rsqrt %5 : vector<32x1xf32>
    %7 = vector.broadcast %6 : vector<32x1xf32> to vector<32x64xf32>
    %8 = arith.mulf %0, %7 : vector<32x64xf32>
    %c0_2 = arith.constant 0 : index
    %c0_3 = arith.constant 0 : index
    %9 = vector.load %arg2[%c0_2, %c0_3] : memref<32x64xf32, #tpu.memory_space<vmem>>, vector<32x64xf32>
    tpu.vector_store %arg2[%c0_2, %c0_3], %8 {strides = array<i32>} : memref<32x64xf32, #tpu.memory_space<vmem>>, vector<32x64xf32>,
    return
  }
  func.func @transform_0(%arg0: i32) -> (i32, i32) {
    %c0_i32 = arith.constant 0 : i32
    %c0_i32_0 = arith.constant 0 : i32
    return %arg0, %c0_i32 : i32, i32
  }
  func.func @transform_1(%arg0: i32) -> (i32, i32) {
    %c0_i32 = arith.constant 0 : i32
    %c0_i32_0 = arith.constant 0 : i32
    return %arg0, %c0_i32 : i32, i32
  }
}

module attributes {stable_mosaic.version = 11 : i64} {
  func.func @_geo_bias_kernel(%arg0: i32, %arg1: memref<16x16x64xf32, #tpu.memory_space<vmem>>, %arg2: memref<1x64xf32, #tpu.memory_space<vmem>>, %arg3: memref<1x1xf32, #tpu.memory_space<vmem>>, %arg4: memref<16x16xf32, #tpu.memory_space<vmem>>) attributes {dimension_semantics = [#tpu.dimension_semantics<parallel>], iteration_bounds = array<i64: 1>, scalar_prefetch = 0 : i64, scratch_operands = 0 : i64, tpu.core_type = #tpu.core_type<tc>, window_params = [{transform_indices = @transform_0, window_bounds = array<i64: 16, 16, 64>}, {pipeline_mode = #tpu.pipeline_mode<synchronous>, transform_indices = @transform_1, window_bounds = array<i64: 1, 64>}, {pipeline_mode = #tpu.pipeline_mode<synchronous>, transform_indices = @transform_2, window_bounds = array<i64: 1, 1>}, {transform_indices = @transform_3, window_bounds = array<i64: 16, 16>}]} {
    %c0 = arith.constant 0 : index
    %c0_0 = arith.constant 0 : index
    %c0_1 = arith.constant 0 : index
    %0 = vector.load %arg1[%c0, %c0_0, %c0_1] : memref<16x16x64xf32, #tpu.memory_space<vmem>>, vector<16x16x64xf32>
    %c0_2 = arith.constant 0 : index
    %c0_3 = arith.constant 0 : index
    %1 = vector.load %arg2[%c0_2, %c0_3] : memref<1x64xf32, #tpu.memory_space<vmem>>, vector<1x64xf32>
    %2 = vector.shape_cast %1 : vector<1x64xf32> to vector<1x1x64xf32>
    %3 = vector.broadcast %2 : vector<1x1x64xf32> to vector<16x16x64xf32>
    %4 = arith.mulf %0, %3 : vector<16x16x64xf32>
    %cst = arith.constant dense<0.000000e+00> : vector<16x16xf32>
    %5 = vector.multi_reduction <add>, %4, %cst [2] : vector<16x16x64xf32> to vector<16x16xf32>
    %c0_4 = arith.constant 0 : index
    %c0_5 = arith.constant 0 : index
    %6 = vector.load %arg3[%c0_4, %c0_5] : memref<1x1xf32, #tpu.memory_space<vmem>>, vector<1x1xf32>
    %7 = vector.broadcast %6 : vector<1x1xf32> to vector<16x16xf32>
    %8 = arith.addf %5, %7 : vector<16x16xf32>
    %cst_6 = arith.constant 0.000000e+00 : f32
    %9 = vector.broadcast %cst_6 : f32 to vector<16x16xf32>
    %10 = arith.maximumf %8, %9 : vector<16x16xf32>
    %c0_7 = arith.constant 0 : index
    %c0_8 = arith.constant 0 : index
    %11 = vector.load %arg4[%c0_7, %c0_8] : memref<16x16xf32, #tpu.memory_space<vmem>>, vector<16x16xf32>
    tpu.vector_store %arg4[%c0_7, %c0_8], %10 {strides = array<i32>} : memref<16x16xf32, #tpu.memory_space<vmem>>, vector<16x16xf32>,
    return
  }
  func.func @transform_0(%arg0: i32) -> (i32, i32, i32) {
    %c0_i32 = arith.constant 0 : i32
    %c0_i32_0 = arith.constant 0 : i32
    %c0_i32_1 = arith.constant 0 : i32
    return %arg0, %c0_i32, %c0_i32_0 : i32, i32, i32
  }
  func.func @transform_1(%arg0: i32) -> (i32, i32) {
    %c0_i32 = arith.constant 0 : i32
    %c0_i32_0 = arith.constant 0 : i32
    %c0_i32_1 = arith.constant 0 : i32
    return %c0_i32, %c0_i32_0 : i32, i32
  }
  func.func @transform_2(%arg0: i32) -> (i32, i32) {
    %c0_i32 = arith.constant 0 : i32
    %c0_i32_0 = arith.constant 0 : i32
    %c0_i32_1 = arith.constant 0 : i32
    return %c0_i32, %c0_i32_0 : i32, i32
  }
  func.func @transform_3(%arg0: i32) -> (i32, i32) {
    %c0_i32 = arith.constant 0 : i32
    %c0_i32_0 = arith.constant 0 : i32
    return %arg0, %c0_i32 : i32, i32
  }
}

module attributes {stable_mosaic.version = 11 : i64} {
  func.func @_attn_kernel(%arg0: i32, %arg1: i32, %arg2: memref<1x8x128xbf16, #tpu.memory_space<vmem>>, %arg3: memref<1x128x8xbf16, #tpu.memory_space<vmem>>, %arg4: memref<1x8x128xbf16, #tpu.memory_space<vmem>>, %arg5: memref<1x8x128xbf16, #tpu.memory_space<vmem>>) attributes {dimension_semantics = [#tpu.dimension_semantics<parallel>, #tpu.dimension_semantics<parallel>], iteration_bounds = array<i64: 1, 1>, scalar_prefetch = 0 : i64, scratch_operands = 0 : i64, tpu.core_type = #tpu.core_type<tc>, window_params = [{transform_indices = @transform_0, window_bounds = array<i64: 1, 8, 128>}, {transform_indices = @transform_1, window_bounds = array<i64: 1, 128, 8>}, {transform_indices = @transform_2, window_bounds = array<i64: 1, 8, 128>}, {transform_indices = @transform_3, window_bounds = array<i64: 1, 8, 128>}]} {
    %c0 = arith.constant 0 : index
    %c0_0 = arith.constant 0 : index
    %c0_1 = arith.constant 0 : index
    %0 = vector.load %arg2[%c0, %c0_0, %c0_1] : memref<1x8x128xbf16, #tpu.memory_space<vmem>>, vector<1x8x128xbf16>
    %1 = vector.shape_cast %0 : vector<1x8x128xbf16> to vector<8x128xbf16>
    %c0_2 = arith.constant 0 : index
    %c0_3 = arith.constant 0 : index
    %c0_4 = arith.constant 0 : index
    %2 = vector.load %arg3[%c0_2, %c0_3, %c0_4] : memref<1x128x8xbf16, #tpu.memory_space<vmem>>, vector<1x128x8xbf16>
    %3 = vector.shape_cast %2 : vector<1x128x8xbf16> to vector<128x8xbf16>
    %cst = arith.constant dense<0.000000e+00> : vector<8x8xf32>
    %4 = tpu.matmul %1, %3, %cst {dimension_numbers = #tpu.dot_dimension_numbers<[1], [0], [0], [1], [0, 0, 1, 1], [], []>} : vector<8x128xbf16>, vector<128x8xbf16>, vector<8x8xf32> -> vector<8x8xf32>
    %cst_5 = arith.constant 0.0883883461 : f32
    %5 = vector.broadcast %cst_5 : f32 to vector<8x8xf32>
    %6 = arith.mulf %4, %5 : vector<8x8xf32>
    %cst_6 = arith.constant dense<0xFF800000> : vector<8xf32>
    %7 = vector.multi_reduction <maximumf>, %6, %cst_6 [1] : vector<8x8xf32> to vector<8xf32>
    %8 = vector.shape_cast %7 : vector<8xf32> to vector<8x1xf32>
    %9 = vector.broadcast %8 : vector<8x1xf32> to vector<8x8xf32>
    %10 = arith.subf %6, %9 : vector<8x8xf32>
    %11 = math.exp %10 : vector<8x8xf32>
    %cst_7 = arith.constant dense<0.000000e+00> : vector<8xf32>
    %12 = vector.multi_reduction <add>, %11, %cst_7 [1] : vector<8x8xf32> to vector<8xf32>
    %13 = vector.shape_cast %12 : vector<8xf32> to vector<8x1xf32>
    %14 = arith.truncf %11 : vector<8x8xf32> to vector<8x8xbf16>
    %c0_8 = arith.constant 0 : index
    %c0_9 = arith.constant 0 : index
    %c0_10 = arith.constant 0 : index
    %15 = vector.load %arg4[%c0_8, %c0_9, %c0_10] : memref<1x8x128xbf16, #tpu.memory_space<vmem>>, vector<1x8x128xbf16>
    %16 = vector.shape_cast %15 : vector<1x8x128xbf16> to vector<8x128xbf16>
    %cst_11 = arith.constant dense<0.000000e+00> : vector<8x128xf32>
    %17 = tpu.matmul %14, %16, %cst_11 {dimension_numbers = #tpu.dot_dimension_numbers<[1], [0], [0], [1], [0, 0, 1, 1], [], []>} : vector<8x8xbf16>, vector<8x128xbf16>, vector<8x128xf32> -> vector<8x128xf32>
    %18 = tpu.reciprocal %13 {approx = true} : vector<8x1xf32> -> vector<8x1xf32>
    %19 = arith.mulf %13, %18 : vector<8x1xf32>
    %cst_12 = arith.constant 2.000000e+00 : f32
    %20 = vector.broadcast %cst_12 : f32 to vector<8x1xf32>
    %21 = arith.subf %20, %19 : vector<8x1xf32>
    %22 = arith.mulf %18, %21 : vector<8x1xf32>
    %23 = vector.broadcast %22 : vector<8x1xf32> to vector<8x128xf32>
    %24 = arith.mulf %17, %23 : vector<8x128xf32>
    %25 = arith.truncf %24 : vector<8x128xf32> to vector<8x128xbf16>
    %c0_13 = arith.constant 0 : index
    %c0_14 = arith.constant 0 : index
    %c0_15 = arith.constant 0 : index
    %26 = vector.load %arg5[%c0_13, %c0_14, %c0_15] : memref<1x8x128xbf16, #tpu.memory_space<vmem>>, vector<1x8x128xbf16>
    %27 = vector.shape_cast %26 : vector<1x8x128xbf16> to vector<8x128xbf16>
    %28 = vector.shape_cast %25 : vector<8x128xbf16> to vector<1x8x128xbf16>
    tpu.vector_store %arg5[%c0_13, %c0_14, %c0_15], %28 {strides = array<i32>} : memref<1x8x128xbf16, #tpu.memory_space<vmem>>, vector<1x8x128xbf16>,
    return
  }
  func.func @transform_0(%arg0: i32, %arg1: i32) -> (i32, i32, i32) {
    %c0_i32 = arith.constant 0 : i32
    %c0_i32_0 = arith.constant 0 : i32
    return %arg0, %arg1, %c0_i32 : i32, i32, i32
  }
  func.func @transform_1(%arg0: i32, %arg1: i32) -> (i32, i32, i32) {
    %c0_i32 = arith.constant 0 : i32
    %c0_i32_0 = arith.constant 0 : i32
    %c0_i32_1 = arith.constant 0 : i32
    return %arg0, %c0_i32, %c0_i32_0 : i32, i32, i32
  }
  func.func @transform_2(%arg0: i32, %arg1: i32) -> (i32, i32, i32) {
    %c0_i32 = arith.constant 0 : i32
    %c0_i32_0 = arith.constant 0 : i32
    %c0_i32_1 = arith.constant 0 : i32
    return %arg0, %c0_i32, %c0_i32_0 : i32, i32, i32
  }
  func.func @transform_3(%arg0: i32, %arg1: i32) -> (i32, i32, i32) {
    %c0_i32 = arith.constant 0 : i32
    %c0_i32_0 = arith.constant 0 : i32
    return %arg0, %arg1, %c0_i32 : i32, i32, i32
  }
}

module attributes {stable_mosaic.version = 11 : i64} {
  func.func @_oproj_add_ln_kernel(%arg0: i32, %arg1: memref<8x128xbf16, #tpu.memory_space<vmem>>, %arg2: memref<128x128xbf16, #tpu.memory_space<vmem>>, %arg3: memref<1x128xf32, #tpu.memory_space<vmem>>, %arg4: memref<8x128xf32, #tpu.memory_space<vmem>>, %arg5: memref<2x128xf32, #tpu.memory_space<vmem>>, %arg6: memref<8x128xf32, #tpu.memory_space<vmem>>) attributes {dimension_semantics = [#tpu.dimension_semantics<parallel>], iteration_bounds = array<i64: 1>, scalar_prefetch = 0 : i64, scratch_operands = 0 : i64, tpu.core_type = #tpu.core_type<tc>, window_params = [{transform_indices = @transform_0, window_bounds = array<i64: 8, 128>}, {pipeline_mode = #tpu.pipeline_mode<synchronous>, transform_indices = @transform_1, window_bounds = array<i64: 128, 128>}, {pipeline_mode = #tpu.pipeline_mode<synchronous>, transform_indices = @transform_2, window_bounds = array<i64: 1, 128>}, {transform_indices = @transform_3, window_bounds = array<i64: 8, 128>}, {pipeline_mode = #tpu.pipeline_mode<synchronous>, transform_indices = @transform_4, window_bounds = array<i64: 2, 128>}, {transform_indices = @transform_5, window_bounds = array<i64: 8, 128>}]} {
    %c0 = arith.constant 0 : index
    %c0_0 = arith.constant 0 : index
    %0 = vector.load %arg1[%c0, %c0_0] : memref<8x128xbf16, #tpu.memory_space<vmem>>, vector<8x128xbf16>
    %c0_1 = arith.constant 0 : index
    %c0_2 = arith.constant 0 : index
    %1 = vector.load %arg2[%c0_1, %c0_2] : memref<128x128xbf16, #tpu.memory_space<vmem>>, vector<128x128xbf16>
    %cst = arith.constant dense<0.000000e+00> : vector<8x128xf32>
    %2 = tpu.matmul %0, %1, %cst {dimension_numbers = #tpu.dot_dimension_numbers<[1], [0], [0], [1], [0, 0, 1, 1], [], []>} : vector<8x128xbf16>, vector<128x128xbf16>, vector<8x128xf32> -> vector<8x128xf32>
    %c0_3 = arith.constant 0 : index
    %c0_4 = arith.constant 0 : index
    %3 = vector.load %arg3[%c0_3, %c0_4] : memref<1x128xf32, #tpu.memory_space<vmem>>, vector<1x128xf32>
    %4 = vector.broadcast %3 : vector<1x128xf32> to vector<8x128xf32>
    %5 = arith.addf %2, %4 : vector<8x128xf32>
    %c0_5 = arith.constant 0 : index
    %c0_6 = arith.constant 0 : index
    %6 = vector.load %arg4[%c0_5, %c0_6] : memref<8x128xf32, #tpu.memory_space<vmem>>, vector<8x128xf32>
    %7 = arith.addf %6, %5 : vector<8x128xf32>
    %cst_7 = arith.constant dense<0.000000e+00> : vector<8xf32>
    %8 = vector.multi_reduction <add>, %7, %cst_7 [1] : vector<8x128xf32> to vector<8xf32>
    %9 = vector.shape_cast %8 : vector<8xf32> to vector<8x1xf32>
    %cst_8 = arith.constant 1.280000e+02 : f32
    %10 = vector.broadcast %cst_8 : f32 to vector<8x1xf32>
    %11 = arith.divf %9, %10 : vector<8x1xf32>
    %12 = vector.broadcast %11 : vector<8x1xf32> to vector<8x128xf32>
    %13 = arith.subf %7, %12 : vector<8x128xf32>
    %14 = arith.mulf %13, %13 : vector<8x128xf32>
    %cst_9 = arith.constant dense<0.000000e+00> : vector<8xf32>
    %15 = vector.multi_reduction <add>, %14, %cst_9 [1] : vector<8x128xf32> to vector<8xf32>
    %16 = vector.shape_cast %15 : vector<8xf32> to vector<8x1xf32>
    %cst_10 = arith.constant 1.280000e+02 : f32
    %17 = vector.broadcast %cst_10 : f32 to vector<8x1xf32>
    %18 = arith.divf %16, %17 : vector<8x1xf32>
    %cst_11 = arith.constant 9.99999974E-6 : f32
    %19 = vector.broadcast %cst_11 : f32 to vector<8x1xf32>
    %20 = arith.addf %18, %19 : vector<8x1xf32>
    %21 = math.rsqrt %20 : vector<8x1xf32>
    %22 = vector.broadcast %21 : vector<8x1xf32> to vector<8x128xf32>
    %23 = arith.mulf %13, %22 : vector<8x128xf32>
    %c0_12 = arith.constant 0 : index
    %c0_13 = arith.constant 0 : index
    %24 = vector.load %arg5[%c0_12, %c0_13] : memref<2x128xf32, #tpu.memory_space<vmem>>, vector<1x128xf32>
    %25 = vector.shape_cast %24 : vector<1x128xf32> to vector<128xf32>
    %26 = vector.shape_cast %25 : vector<128xf32> to vector<1x128xf32>
    %27 = vector.broadcast %26 : vector<1x128xf32> to vector<8x128xf32>
    %28 = arith.mulf %23, %27 : vector<8x128xf32>
    %c1 = arith.constant 1 : index
    %c0_14 = arith.constant 0 : index
    %29 = vector.load %arg5[%c1, %c0_14] : memref<2x128xf32, #tpu.memory_space<vmem>>, vector<1x128xf32>
    %30 = vector.shape_cast %29 : vector<1x128xf32> to vector<128xf32>
    %31 = vector.shape_cast %30 : vector<128xf32> to vector<1x128xf32>
    %32 = vector.broadcast %31 : vector<1x128xf32> to vector<8x128xf32>
    %33 = arith.addf %28, %32 : vector<8x128xf32>
    %c0_15 = arith.constant 0 : index
    %c0_16 = arith.constant 0 : index
    %34 = vector.load %arg6[%c0_15, %c0_16] : memref<8x128xf32, #tpu.memory_space<vmem>>, vector<8x128xf32>
    tpu.vector_store %arg6[%c0_15, %c0_16], %33 {strides = array<i32>} : memref<8x128xf32, #tpu.memory_space<vmem>>, vector<8x128xf32>,
    return
  }
  func.func @transform_0(%arg0: i32) -> (i32, i32) {
    %c0_i32 = arith.constant 0 : i32
    %c0_i32_0 = arith.constant 0 : i32
    return %arg0, %c0_i32 : i32, i32
  }
  func.func @transform_1(%arg0: i32) -> (i32, i32) {
    %c0_i32 = arith.constant 0 : i32
    %c0_i32_0 = arith.constant 0 : i32
    %c0_i32_1 = arith.constant 0 : i32
    return %c0_i32, %c0_i32_0 : i32, i32
  }
  func.func @transform_2(%arg0: i32) -> (i32, i32) {
    %c0_i32 = arith.constant 0 : i32
    %c0_i32_0 = arith.constant 0 : i32
    %c0_i32_1 = arith.constant 0 : i32
    return %c0_i32, %c0_i32_0 : i32, i32
  }
  func.func @transform_3(%arg0: i32) -> (i32, i32) {
    %c0_i32 = arith.constant 0 : i32
    %c0_i32_0 = arith.constant 0 : i32
    return %arg0, %c0_i32 : i32, i32
  }
  func.func @transform_4(%arg0: i32) -> (i32, i32) {
    %c0_i32 = arith.constant 0 : i32
    %c0_i32_0 = arith.constant 0 : i32
    %c0_i32_1 = arith.constant 0 : i32
    return %c0_i32, %c0_i32_0 : i32, i32
  }
  func.func @transform_5(%arg0: i32) -> (i32, i32) {
    %c0_i32 = arith.constant 0 : i32
    %c0_i32_0 = arith.constant 0 : i32
    return %arg0, %c0_i32 : i32, i32
  }
}

module attributes {stable_mosaic.version = 11 : i64} {
  func.func @_linear_kernel(%arg0: i32, %arg1: i32, %arg2: memref<16x128xf32, #tpu.memory_space<vmem>>, %arg3: memref<128x128xbf16, #tpu.memory_space<vmem>>, %arg4: memref<1x128xf32, #tpu.memory_space<vmem>>, %arg5: memref<16x128xbf16, #tpu.memory_space<vmem>>) attributes {dimension_semantics = [#tpu.dimension_semantics<parallel>, #tpu.dimension_semantics<parallel>], iteration_bounds = array<i64: 1, 1>, scalar_prefetch = 0 : i64, scratch_operands = 0 : i64, tpu.core_type = #tpu.core_type<tc>, window_params = [{transform_indices = @transform_0, window_bounds = array<i64: 16, 128>}, {transform_indices = @transform_1, window_bounds = array<i64: 128, 128>}, {transform_indices = @transform_2, window_bounds = array<i64: 1, 128>}, {transform_indices = @transform_3, window_bounds = array<i64: 16, 128>}]} {
    %c0 = arith.constant 0 : index
    %c0_0 = arith.constant 0 : index
    %0 = vector.load %arg2[%c0, %c0_0] : memref<16x128xf32, #tpu.memory_space<vmem>>, vector<16x128xf32>
    %1 = arith.truncf %0 : vector<16x128xf32> to vector<16x128xbf16>
    %c0_1 = arith.constant 0 : index
    %c0_2 = arith.constant 0 : index
    %2 = vector.load %arg3[%c0_1, %c0_2] : memref<128x128xbf16, #tpu.memory_space<vmem>>, vector<128x128xbf16>
    %cst = arith.constant dense<0.000000e+00> : vector<16x128xf32>
    %3 = tpu.matmul %1, %2, %cst {dimension_numbers = #tpu.dot_dimension_numbers<[1], [0], [0], [1], [0, 0, 1, 1], [], []>} : vector<16x128xbf16>, vector<128x128xbf16>, vector<16x128xf32> -> vector<16x128xf32>
    %c0_3 = arith.constant 0 : index
    %c0_4 = arith.constant 0 : index
    %4 = vector.load %arg4[%c0_3, %c0_4] : memref<1x128xf32, #tpu.memory_space<vmem>>, vector<1x128xf32>
    %5 = vector.broadcast %4 : vector<1x128xf32> to vector<16x128xf32>
    %6 = arith.addf %3, %5 : vector<16x128xf32>
    %7 = arith.truncf %6 : vector<16x128xf32> to vector<16x128xbf16>
    %c0_5 = arith.constant 0 : index
    %c0_6 = arith.constant 0 : index
    %8 = vector.load %arg5[%c0_5, %c0_6] : memref<16x128xbf16, #tpu.memory_space<vmem>>, vector<16x128xbf16>
    tpu.vector_store %arg5[%c0_5, %c0_6], %7 {strides = array<i32>} : memref<16x128xbf16, #tpu.memory_space<vmem>>, vector<16x128xbf16>,
    return
  }
  func.func @transform_0(%arg0: i32, %arg1: i32) -> (i32, i32) {
    %c0_i32 = arith.constant 0 : i32
    %c0_i32_0 = arith.constant 0 : i32
    return %arg0, %c0_i32 : i32, i32
  }
  func.func @transform_1(%arg0: i32, %arg1: i32) -> (i32, i32) {
    %c0_i32 = arith.constant 0 : i32
    %c0_i32_0 = arith.constant 0 : i32
    return %c0_i32, %arg1 : i32, i32
  }
  func.func @transform_2(%arg0: i32, %arg1: i32) -> (i32, i32) {
    %c0_i32 = arith.constant 0 : i32
    %c0_i32_0 = arith.constant 0 : i32
    return %c0_i32, %arg1 : i32, i32
  }
  func.func @transform_3(%arg0: i32, %arg1: i32) -> (i32, i32) {
    %c0_i32 = arith.constant 0 : i32
    return %arg0, %arg1 : i32, i32
  }
}

module attributes {stable_mosaic.version = 11 : i64} {
  func.func @_ffn_ln_kernel(%arg0: i32, %arg1: memref<32x128xf32, #tpu.memory_space<vmem>>, %arg2: memref<128x128xbf16, #tpu.memory_space<vmem>>, %arg3: memref<1x128xf32, #tpu.memory_space<vmem>>, %arg4: memref<128x128xbf16, #tpu.memory_space<vmem>>, %arg5: memref<1x128xf32, #tpu.memory_space<vmem>>, %arg6: memref<1x128xf32, #tpu.memory_space<vmem>>, %arg7: memref<1x128xf32, #tpu.memory_space<vmem>>, %arg8: memref<32x128xf32, #tpu.memory_space<vmem>>) attributes {dimension_semantics = [#tpu.dimension_semantics<parallel>], iteration_bounds = array<i64: 1>, scalar_prefetch = 0 : i64, scratch_operands = 0 : i64, tpu.core_type = #tpu.core_type<tc>, window_params = [{transform_indices = @transform_0, window_bounds = array<i64: 32, 128>}, {pipeline_mode = #tpu.pipeline_mode<synchronous>, transform_indices = @transform_1, window_bounds = array<i64: 128, 128>}, {pipeline_mode = #tpu.pipeline_mode<synchronous>, transform_indices = @transform_2, window_bounds = array<i64: 1, 128>}, {pipeline_mode = #tpu.pipeline_mode<synchronous>, transform_indices = @transform_3, window_bounds = array<i64: 128, 128>}, {pipeline_mode = #tpu.pipeline_mode<synchronous>, transform_indices = @transform_4, window_bounds = array<i64: 1, 128>}, {pipeline_mode = #tpu.pipeline_mode<synchronous>, transform_indices = @transform_5, window_bounds = array<i64: 1, 128>}, {pipeline_mode = #tpu.pipeline_mode<synchronous>, transform_indices = @transform_6, window_bounds = array<i64: 1, 128>}, {transform_indices = @transform_7, window_bounds = array<i64: 32, 128>}]} {
    %c0 = arith.constant 0 : index
    %c0_0 = arith.constant 0 : index
    %0 = vector.load %arg1[%c0, %c0_0] : memref<32x128xf32, #tpu.memory_space<vmem>>, vector<32x128xf32>
    %1 = arith.truncf %0 : vector<32x128xf32> to vector<32x128xbf16>
    %c0_1 = arith.constant 0 : index
    %c0_2 = arith.constant 0 : index
    %2 = vector.load %arg2[%c0_1, %c0_2] : memref<128x128xbf16, #tpu.memory_space<vmem>>, vector<128x128xbf16>
    %cst = arith.constant dense<0.000000e+00> : vector<32x128xf32>
    %3 = tpu.matmul %1, %2, %cst {dimension_numbers = #tpu.dot_dimension_numbers<[1], [0], [0], [1], [0, 0, 1, 1], [], []>} : vector<32x128xbf16>, vector<128x128xbf16>, vector<32x128xf32> -> vector<32x128xf32>
    %c0_3 = arith.constant 0 : index
    %c0_4 = arith.constant 0 : index
    %4 = vector.load %arg3[%c0_3, %c0_4] : memref<1x128xf32, #tpu.memory_space<vmem>>, vector<1x128xf32>
    %5 = vector.broadcast %4 : vector<1x128xf32> to vector<32x128xf32>
    %6 = arith.addf %3, %5 : vector<32x128xf32>
    %cst_5 = arith.constant 0.000000e+00 : f32
    %7 = vector.broadcast %cst_5 : f32 to vector<32x128xf32>
    %8 = arith.maximumf %6, %7 : vector<32x128xf32>
    %9 = arith.truncf %8 : vector<32x128xf32> to vector<32x128xbf16>
    %c0_6 = arith.constant 0 : index
    %c0_7 = arith.constant 0 : index
    %10 = vector.load %arg4[%c0_6, %c0_7] : memref<128x128xbf16, #tpu.memory_space<vmem>>, vector<128x128xbf16>
    %cst_8 = arith.constant dense<0.000000e+00> : vector<32x128xf32>
    %11 = tpu.matmul %9, %10, %cst_8 {dimension_numbers = #tpu.dot_dimension_numbers<[1], [0], [0], [1], [0, 0, 1, 1], [], []>} : vector<32x128xbf16>, vector<128x128xbf16>, vector<32x128xf32> -> vector<32x128xf32>
    %c0_9 = arith.constant 0 : index
    %c0_10 = arith.constant 0 : index
    %12 = vector.load %arg5[%c0_9, %c0_10] : memref<1x128xf32, #tpu.memory_space<vmem>>, vector<1x128xf32>
    %13 = vector.broadcast %12 : vector<1x128xf32> to vector<32x128xf32>
    %14 = arith.addf %11, %13 : vector<32x128xf32>
    %15 = arith.addf %0, %14 : vector<32x128xf32>
    %cst_11 = arith.constant dense<0.000000e+00> : vector<32xf32>
    %16 = vector.multi_reduction <add>, %15, %cst_11 [1] : vector<32x128xf32> to vector<32xf32>
    %17 = vector.shape_cast %16 : vector<32xf32> to vector<32x1xf32>
    %cst_12 = arith.constant 1.280000e+02 : f32
    %18 = vector.broadcast %cst_12 : f32 to vector<32x1xf32>
    %19 = arith.divf %17, %18 : vector<32x1xf32>
    %20 = vector.broadcast %19 : vector<32x1xf32> to vector<32x128xf32>
    %21 = arith.subf %15, %20 : vector<32x128xf32>
    %22 = arith.mulf %21, %21 : vector<32x128xf32>
    %cst_13 = arith.constant dense<0.000000e+00> : vector<32xf32>
    %23 = vector.multi_reduction <add>, %22, %cst_13 [1] : vector<32x128xf32> to vector<32xf32>
    %24 = vector.shape_cast %23 : vector<32xf32> to vector<32x1xf32>
    %cst_14 = arith.constant 1.280000e+02 : f32
    %25 = vector.broadcast %cst_14 : f32 to vector<32x1xf32>
    %26 = arith.divf %24, %25 : vector<32x1xf32>
    %cst_15 = arith.constant 9.99999974E-6 : f32
    %27 = vector.broadcast %cst_15 : f32 to vector<32x1xf32>
    %28 = arith.addf %26, %27 : vector<32x1xf32>
    %29 = math.rsqrt %28 : vector<32x1xf32>
    %30 = vector.broadcast %29 : vector<32x1xf32> to vector<32x128xf32>
    %31 = arith.mulf %21, %30 : vector<32x128xf32>
    %c0_16 = arith.constant 0 : index
    %c0_17 = arith.constant 0 : index
    %32 = vector.load %arg6[%c0_16, %c0_17] : memref<1x128xf32, #tpu.memory_space<vmem>>, vector<1x128xf32>
    %33 = vector.broadcast %32 : vector<1x128xf32> to vector<32x128xf32>
    %34 = arith.mulf %31, %33 : vector<32x128xf32>
    %c0_18 = arith.constant 0 : index
    %c0_19 = arith.constant 0 : index
    %35 = vector.load %arg7[%c0_18, %c0_19] : memref<1x128xf32, #tpu.memory_space<vmem>>, vector<1x128xf32>
    %36 = vector.broadcast %35 : vector<1x128xf32> to vector<32x128xf32>
    %37 = arith.addf %34, %36 : vector<32x128xf32>
    %c0_20 = arith.constant 0 : index
    %c0_21 = arith.constant 0 : index
    %38 = vector.load %arg8[%c0_20, %c0_21] : memref<32x128xf32, #tpu.memory_space<vmem>>, vector<32x128xf32>
    tpu.vector_store %arg8[%c0_20, %c0_21], %37 {strides = array<i32>} : memref<32x128xf32, #tpu.memory_space<vmem>>, vector<32x128xf32>,
    return
  }
  func.func @transform_0(%arg0: i32) -> (i32, i32) {
    %c0_i32 = arith.constant 0 : i32
    %c0_i32_0 = arith.constant 0 : i32
    return %arg0, %c0_i32 : i32, i32
  }
  func.func @transform_1(%arg0: i32) -> (i32, i32) {
    %c0_i32 = arith.constant 0 : i32
    %c0_i32_0 = arith.constant 0 : i32
    %c0_i32_1 = arith.constant 0 : i32
    return %c0_i32, %c0_i32_0 : i32, i32
  }
  func.func @transform_2(%arg0: i32) -> (i32, i32) {
    %c0_i32 = arith.constant 0 : i32
    %c0_i32_0 = arith.constant 0 : i32
    %c0_i32_1 = arith.constant 0 : i32
    return %c0_i32, %c0_i32_0 : i32, i32
  }
  func.func @transform_3(%arg0: i32) -> (i32, i32) {
    %c0_i32 = arith.constant 0 : i32
    %c0_i32_0 = arith.constant 0 : i32
    %c0_i32_1 = arith.constant 0 : i32
    return %c0_i32, %c0_i32_0 : i32, i32
  }
  func.func @transform_4(%arg0: i32) -> (i32, i32) {
    %c0_i32 = arith.constant 0 : i32
    %c0_i32_0 = arith.constant 0 : i32
    %c0_i32_1 = arith.constant 0 : i32
    return %c0_i32, %c0_i32_0 : i32, i32
  }
  func.func @transform_5(%arg0: i32) -> (i32, i32) {
    %c0_i32 = arith.constant 0 : i32
    %c0_i32_0 = arith.constant 0 : i32
    %c0_i32_1 = arith.constant 0 : i32
    return %c0_i32, %c0_i32_0 : i32, i32
  }
  func.func @transform_6(%arg0: i32) -> (i32, i32) {
    %c0_i32 = arith.constant 0 : i32
    %c0_i32_0 = arith.constant 0 : i32
    %c0_i32_1 = arith.constant 0 : i32
    return %c0_i32, %c0_i32_0 : i32, i32
  }
  func.func @transform_7(%arg0: i32) -> (i32, i32) {
    %c0_i32 = arith.constant 0 : i32
    %c0_i32_0 = arith.constant 0 : i32
    return %arg0, %c0_i32 : i32, i32
  }
}

module attributes {stable_mosaic.version = 11 : i64} {
  func.func @_attn_geo_kernel(%arg0: i32, %arg1: i32, %arg2: memref<1x16x128xbf16, #tpu.memory_space<vmem>>, %arg3: memref<1x128x16xbf16, #tpu.memory_space<vmem>>, %arg4: memref<1x16x128xbf16, #tpu.memory_space<vmem>>, %arg5: memref<16x16xf32, #tpu.memory_space<vmem>>, %arg6: memref<1x16x128xbf16, #tpu.memory_space<vmem>>) attributes {dimension_semantics = [#tpu.dimension_semantics<parallel>, #tpu.dimension_semantics<parallel>], iteration_bounds = array<i64: 2, 1>, scalar_prefetch = 0 : i64, scratch_operands = 0 : i64, tpu.core_type = #tpu.core_type<tc>, window_params = [{transform_indices = @transform_0, window_bounds = array<i64: 1, 16, 128>}, {transform_indices = @transform_1, window_bounds = array<i64: 1, 128, 16>}, {transform_indices = @transform_2, window_bounds = array<i64: 1, 16, 128>}, {transform_indices = @transform_3, window_bounds = array<i64: 16, 16>}, {transform_indices = @transform_4, window_bounds = array<i64: 1, 16, 128>}]} {
    %c0 = arith.constant 0 : index
    %c0_0 = arith.constant 0 : index
    %c0_1 = arith.constant 0 : index
    %0 = vector.load %arg2[%c0, %c0_0, %c0_1] : memref<1x16x128xbf16, #tpu.memory_space<vmem>>, vector<1x16x128xbf16>
    %1 = vector.shape_cast %0 : vector<1x16x128xbf16> to vector<16x128xbf16>
    %c0_2 = arith.constant 0 : index
    %c0_3 = arith.constant 0 : index
    %c0_4 = arith.constant 0 : index
    %2 = vector.load %arg3[%c0_2, %c0_3, %c0_4] : memref<1x128x16xbf16, #tpu.memory_space<vmem>>, vector<1x128x16xbf16>
    %3 = vector.shape_cast %2 : vector<1x128x16xbf16> to vector<128x16xbf16>
    %cst = arith.constant dense<0.000000e+00> : vector<16x16xf32>
    %4 = tpu.matmul %1, %3, %cst {dimension_numbers = #tpu.dot_dimension_numbers<[1], [0], [0], [1], [0, 0, 1, 1], [], []>} : vector<16x128xbf16>, vector<128x16xbf16>, vector<16x16xf32> -> vector<16x16xf32>
    %cst_5 = arith.constant 0.0883883461 : f32
    %5 = vector.broadcast %cst_5 : f32 to vector<16x16xf32>
    %6 = arith.mulf %4, %5 : vector<16x16xf32>
    %c0_6 = arith.constant 0 : index
    %c0_7 = arith.constant 0 : index
    %7 = vector.load %arg5[%c0_6, %c0_7] : memref<16x16xf32, #tpu.memory_space<vmem>>, vector<16x16xf32>
    %8 = arith.subf %6, %7 : vector<16x16xf32>
    %cst_8 = arith.constant dense<0xFF800000> : vector<16xf32>
    %9 = vector.multi_reduction <maximumf>, %8, %cst_8 [1] : vector<16x16xf32> to vector<16xf32>
    %10 = vector.shape_cast %9 : vector<16xf32> to vector<16x1xf32>
    %11 = vector.broadcast %10 : vector<16x1xf32> to vector<16x16xf32>
    %12 = arith.subf %8, %11 : vector<16x16xf32>
    %13 = math.exp %12 : vector<16x16xf32>
    %cst_9 = arith.constant dense<0.000000e+00> : vector<16xf32>
    %14 = vector.multi_reduction <add>, %13, %cst_9 [1] : vector<16x16xf32> to vector<16xf32>
    %15 = vector.shape_cast %14 : vector<16xf32> to vector<16x1xf32>
    %16 = arith.truncf %13 : vector<16x16xf32> to vector<16x16xbf16>
    %c0_10 = arith.constant 0 : index
    %c0_11 = arith.constant 0 : index
    %c0_12 = arith.constant 0 : index
    %17 = vector.load %arg4[%c0_10, %c0_11, %c0_12] : memref<1x16x128xbf16, #tpu.memory_space<vmem>>, vector<1x16x128xbf16>
    %18 = vector.shape_cast %17 : vector<1x16x128xbf16> to vector<16x128xbf16>
    %cst_13 = arith.constant dense<0.000000e+00> : vector<16x128xf32>
    %19 = tpu.matmul %16, %18, %cst_13 {dimension_numbers = #tpu.dot_dimension_numbers<[1], [0], [0], [1], [0, 0, 1, 1], [], []>} : vector<16x16xbf16>, vector<16x128xbf16>, vector<16x128xf32> -> vector<16x128xf32>
    %20 = tpu.reciprocal %15 {approx = true} : vector<16x1xf32> -> vector<16x1xf32>
    %21 = arith.mulf %15, %20 : vector<16x1xf32>
    %cst_14 = arith.constant 2.000000e+00 : f32
    %22 = vector.broadcast %cst_14 : f32 to vector<16x1xf32>
    %23 = arith.subf %22, %21 : vector<16x1xf32>
    %24 = arith.mulf %20, %23 : vector<16x1xf32>
    %25 = vector.broadcast %24 : vector<16x1xf32> to vector<16x128xf32>
    %26 = arith.mulf %19, %25 : vector<16x128xf32>
    %27 = arith.truncf %26 : vector<16x128xf32> to vector<16x128xbf16>
    %c0_15 = arith.constant 0 : index
    %c0_16 = arith.constant 0 : index
    %c0_17 = arith.constant 0 : index
    %28 = vector.load %arg6[%c0_15, %c0_16, %c0_17] : memref<1x16x128xbf16, #tpu.memory_space<vmem>>, vector<1x16x128xbf16>
    %29 = vector.shape_cast %28 : vector<1x16x128xbf16> to vector<16x128xbf16>
    %30 = vector.shape_cast %27 : vector<16x128xbf16> to vector<1x16x128xbf16>
    tpu.vector_store %arg6[%c0_15, %c0_16, %c0_17], %30 {strides = array<i32>} : memref<1x16x128xbf16, #tpu.memory_space<vmem>>, vector<1x16x128xbf16>,
    return
  }
  func.func @transform_0(%arg0: i32, %arg1: i32) -> (i32, i32, i32) {
    %c0_i32 = arith.constant 0 : i32
    %c0_i32_0 = arith.constant 0 : i32
    return %arg0, %arg1, %c0_i32 : i32, i32, i32
  }
  func.func @transform_1(%arg0: i32, %arg1: i32) -> (i32, i32, i32) {
    %c0_i32 = arith.constant 0 : i32
    %c0_i32_0 = arith.constant 0 : i32
    %c0_i32_1 = arith.constant 0 : i32
    return %arg0, %c0_i32, %c0_i32_0 : i32, i32, i32
  }
  func.func @transform_2(%arg0: i32, %arg1: i32) -> (i32, i32, i32) {
    %c0_i32 = arith.constant 0 : i32
    %c0_i32_0 = arith.constant 0 : i32
    %c0_i32_1 = arith.constant 0 : i32
    return %arg0, %c0_i32, %c0_i32_0 : i32, i32, i32
  }
  func.func @transform_3(%arg0: i32, %arg1: i32) -> (i32, i32) {
    %c0_i32 = arith.constant 0 : i32
    %c0_i32_0 = arith.constant 0 : i32
    return %arg1, %c0_i32 : i32, i32
  }
  func.func @transform_4(%arg0: i32, %arg1: i32) -> (i32, i32, i32) {
    %c0_i32 = arith.constant 0 : i32
    %c0_i32_0 = arith.constant 0 : i32
    return %arg0, %arg1, %c0_i32 : i32, i32, i32
  }
}

module attributes {stable_mosaic.version = 11 : i64} {
  func.func @_oproj_add_ln_kernel(%arg0: i32, %arg1: memref<32x128xbf16, #tpu.memory_space<vmem>>, %arg2: memref<128x128xbf16, #tpu.memory_space<vmem>>, %arg3: memref<1x128xf32, #tpu.memory_space<vmem>>, %arg4: memref<32x128xf32, #tpu.memory_space<vmem>>, %arg5: memref<4x128xf32, #tpu.memory_space<vmem>>, %arg6: memref<32x128xf32, #tpu.memory_space<vmem>>) attributes {dimension_semantics = [#tpu.dimension_semantics<parallel>], iteration_bounds = array<i64: 1>, scalar_prefetch = 0 : i64, scratch_operands = 0 : i64, tpu.core_type = #tpu.core_type<tc>, window_params = [{transform_indices = @transform_0, window_bounds = array<i64: 32, 128>}, {pipeline_mode = #tpu.pipeline_mode<synchronous>, transform_indices = @transform_1, window_bounds = array<i64: 128, 128>}, {pipeline_mode = #tpu.pipeline_mode<synchronous>, transform_indices = @transform_2, window_bounds = array<i64: 1, 128>}, {transform_indices = @transform_3, window_bounds = array<i64: 32, 128>}, {pipeline_mode = #tpu.pipeline_mode<synchronous>, transform_indices = @transform_4, window_bounds = array<i64: 4, 128>}, {transform_indices = @transform_5, window_bounds = array<i64: 32, 128>}]} {
    %c0 = arith.constant 0 : index
    %c0_0 = arith.constant 0 : index
    %0 = vector.load %arg1[%c0, %c0_0] : memref<32x128xbf16, #tpu.memory_space<vmem>>, vector<32x128xbf16>
    %c0_1 = arith.constant 0 : index
    %c0_2 = arith.constant 0 : index
    %1 = vector.load %arg2[%c0_1, %c0_2] : memref<128x128xbf16, #tpu.memory_space<vmem>>, vector<128x128xbf16>
    %cst = arith.constant dense<0.000000e+00> : vector<32x128xf32>
    %2 = tpu.matmul %0, %1, %cst {dimension_numbers = #tpu.dot_dimension_numbers<[1], [0], [0], [1], [0, 0, 1, 1], [], []>} : vector<32x128xbf16>, vector<128x128xbf16>, vector<32x128xf32> -> vector<32x128xf32>
    %c0_3 = arith.constant 0 : index
    %c0_4 = arith.constant 0 : index
    %3 = vector.load %arg3[%c0_3, %c0_4] : memref<1x128xf32, #tpu.memory_space<vmem>>, vector<1x128xf32>
    %4 = vector.broadcast %3 : vector<1x128xf32> to vector<32x128xf32>
    %5 = arith.addf %2, %4 : vector<32x128xf32>
    %c0_5 = arith.constant 0 : index
    %c0_6 = arith.constant 0 : index
    %6 = vector.load %arg4[%c0_5, %c0_6] : memref<32x128xf32, #tpu.memory_space<vmem>>, vector<32x128xf32>
    %7 = arith.addf %6, %5 : vector<32x128xf32>
    %cst_7 = arith.constant dense<0.000000e+00> : vector<32xf32>
    %8 = vector.multi_reduction <add>, %7, %cst_7 [1] : vector<32x128xf32> to vector<32xf32>
    %9 = vector.shape_cast %8 : vector<32xf32> to vector<32x1xf32>
    %cst_8 = arith.constant 1.280000e+02 : f32
    %10 = vector.broadcast %cst_8 : f32 to vector<32x1xf32>
    %11 = arith.divf %9, %10 : vector<32x1xf32>
    %12 = vector.broadcast %11 : vector<32x1xf32> to vector<32x128xf32>
    %13 = arith.subf %7, %12 : vector<32x128xf32>
    %14 = arith.mulf %13, %13 : vector<32x128xf32>
    %cst_9 = arith.constant dense<0.000000e+00> : vector<32xf32>
    %15 = vector.multi_reduction <add>, %14, %cst_9 [1] : vector<32x128xf32> to vector<32xf32>
    %16 = vector.shape_cast %15 : vector<32xf32> to vector<32x1xf32>
    %cst_10 = arith.constant 1.280000e+02 : f32
    %17 = vector.broadcast %cst_10 : f32 to vector<32x1xf32>
    %18 = arith.divf %16, %17 : vector<32x1xf32>
    %cst_11 = arith.constant 9.99999974E-6 : f32
    %19 = vector.broadcast %cst_11 : f32 to vector<32x1xf32>
    %20 = arith.addf %18, %19 : vector<32x1xf32>
    %21 = math.rsqrt %20 : vector<32x1xf32>
    %22 = vector.broadcast %21 : vector<32x1xf32> to vector<32x128xf32>
    %23 = arith.mulf %13, %22 : vector<32x128xf32>
    %c0_12 = arith.constant 0 : index
    %c0_13 = arith.constant 0 : index
    %24 = vector.load %arg5[%c0_12, %c0_13] : memref<4x128xf32, #tpu.memory_space<vmem>>, vector<1x128xf32>
    %25 = vector.shape_cast %24 : vector<1x128xf32> to vector<128xf32>
    %26 = vector.shape_cast %25 : vector<128xf32> to vector<1x128xf32>
    %27 = vector.broadcast %26 : vector<1x128xf32> to vector<32x128xf32>
    %28 = arith.mulf %23, %27 : vector<32x128xf32>
    %c1 = arith.constant 1 : index
    %c0_14 = arith.constant 0 : index
    %29 = vector.load %arg5[%c1, %c0_14] : memref<4x128xf32, #tpu.memory_space<vmem>>, vector<1x128xf32>
    %30 = vector.shape_cast %29 : vector<1x128xf32> to vector<128xf32>
    %31 = vector.shape_cast %30 : vector<128xf32> to vector<1x128xf32>
    %32 = vector.broadcast %31 : vector<1x128xf32> to vector<32x128xf32>
    %33 = arith.addf %28, %32 : vector<32x128xf32>
    %34 = arith.addf %6, %33 : vector<32x128xf32>
    %cst_15 = arith.constant dense<0.000000e+00> : vector<32xf32>
    %35 = vector.multi_reduction <add>, %34, %cst_15 [1] : vector<32x128xf32> to vector<32xf32>
    %36 = vector.shape_cast %35 : vector<32xf32> to vector<32x1xf32>
    %cst_16 = arith.constant 1.280000e+02 : f32
    %37 = vector.broadcast %cst_16 : f32 to vector<32x1xf32>
    %38 = arith.divf %36, %37 : vector<32x1xf32>
    %39 = vector.broadcast %38 : vector<32x1xf32> to vector<32x128xf32>
    %40 = arith.subf %34, %39 : vector<32x128xf32>
    %41 = arith.mulf %40, %40 : vector<32x128xf32>
    %cst_17 = arith.constant dense<0.000000e+00> : vector<32xf32>
    %42 = vector.multi_reduction <add>, %41, %cst_17 [1] : vector<32x128xf32> to vector<32xf32>
    %43 = vector.shape_cast %42 : vector<32xf32> to vector<32x1xf32>
    %cst_18 = arith.constant 1.280000e+02 : f32
    %44 = vector.broadcast %cst_18 : f32 to vector<32x1xf32>
    %45 = arith.divf %43, %44 : vector<32x1xf32>
    %cst_19 = arith.constant 9.99999974E-6 : f32
    %46 = vector.broadcast %cst_19 : f32 to vector<32x1xf32>
    %47 = arith.addf %45, %46 : vector<32x1xf32>
    %48 = math.rsqrt %47 : vector<32x1xf32>
    %49 = vector.broadcast %48 : vector<32x1xf32> to vector<32x128xf32>
    %50 = arith.mulf %40, %49 : vector<32x128xf32>
    %c2 = arith.constant 2 : index
    %c0_20 = arith.constant 0 : index
    %51 = vector.load %arg5[%c2, %c0_20] : memref<4x128xf32, #tpu.memory_space<vmem>>, vector<1x128xf32>
    %52 = vector.shape_cast %51 : vector<1x128xf32> to vector<128xf32>
    %53 = vector.shape_cast %52 : vector<128xf32> to vector<1x128xf32>
    %54 = vector.broadcast %53 : vector<1x128xf32> to vector<32x128xf32>
    %55 = arith.mulf %50, %54 : vector<32x128xf32>
    %c3 = arith.constant 3 : index
    %c0_21 = arith.constant 0 : index
    %56 = vector.load %arg5[%c3, %c0_21] : memref<4x128xf32, #tpu.memory_space<vmem>>, vector<1x128xf32>
    %57 = vector.shape_cast %56 : vector<1x128xf32> to vector<128xf32>
    %58 = vector.shape_cast %57 : vector<128xf32> to vector<1x128xf32>
    %59 = vector.broadcast %58 : vector<1x128xf32> to vector<32x128xf32>
    %60 = arith.addf %55, %59 : vector<32x128xf32>
    %c0_22 = arith.constant 0 : index
    %c0_23 = arith.constant 0 : index
    %61 = vector.load %arg6[%c0_22, %c0_23] : memref<32x128xf32, #tpu.memory_space<vmem>>, vector<32x128xf32>
    tpu.vector_store %arg6[%c0_22, %c0_23], %60 {strides = array<i32>} : memref<32x128xf32, #tpu.memory_space<vmem>>, vector<32x128xf32>,
    return
  }
  func.func @transform_0(%arg0: i32) -> (i32, i32) {
    %c0_i32 = arith.constant 0 : i32
    %c0_i32_0 = arith.constant 0 : i32
    return %arg0, %c0_i32 : i32, i32
  }
  func.func @transform_1(%arg0: i32) -> (i32, i32) {
    %c0_i32 = arith.constant 0 : i32
    %c0_i32_0 = arith.constant 0 : i32
    %c0_i32_1 = arith.constant 0 : i32
    return %c0_i32, %c0_i32_0 : i32, i32
  }
  func.func @transform_2(%arg0: i32) -> (i32, i32) {
    %c0_i32 = arith.constant 0 : i32
    %c0_i32_0 = arith.constant 0 : i32
    %c0_i32_1 = arith.constant 0 : i32
    return %c0_i32, %c0_i32_0 : i32, i32
  }
  func.func @transform_3(%arg0: i32) -> (i32, i32) {
    %c0_i32 = arith.constant 0 : i32
    %c0_i32_0 = arith.constant 0 : i32
    return %arg0, %c0_i32 : i32, i32
  }
  func.func @transform_4(%arg0: i32) -> (i32, i32) {
    %c0_i32 = arith.constant 0 : i32
    %c0_i32_0 = arith.constant 0 : i32
    %c0_i32_1 = arith.constant 0 : i32
    return %c0_i32, %c0_i32_0 : i32, i32
  }
  func.func @transform_5(%arg0: i32) -> (i32, i32) {
    %c0_i32 = arith.constant 0 : i32
    %c0_i32_0 = arith.constant 0 : i32
    return %arg0, %c0_i32 : i32, i32
  }
}

module attributes {stable_mosaic.version = 11 : i64} {
  func.func @_linear_kernel(%arg0: i32, %arg1: i32, %arg2: memref<32x128xf32, #tpu.memory_space<vmem>>, %arg3: memref<128x256xbf16, #tpu.memory_space<vmem>>, %arg4: memref<1x256xf32, #tpu.memory_space<vmem>>, %arg5: memref<32x256xbf16, #tpu.memory_space<vmem>>) attributes {dimension_semantics = [#tpu.dimension_semantics<parallel>, #tpu.dimension_semantics<parallel>], iteration_bounds = array<i64: 1, 1>, scalar_prefetch = 0 : i64, scratch_operands = 0 : i64, tpu.core_type = #tpu.core_type<tc>, window_params = [{transform_indices = @transform_0, window_bounds = array<i64: 32, 128>}, {transform_indices = @transform_1, window_bounds = array<i64: 128, 256>}, {transform_indices = @transform_2, window_bounds = array<i64: 1, 256>}, {transform_indices = @transform_3, window_bounds = array<i64: 32, 256>}]} {
    %c0 = arith.constant 0 : index
    %c0_0 = arith.constant 0 : index
    %0 = vector.load %arg2[%c0, %c0_0] : memref<32x128xf32, #tpu.memory_space<vmem>>, vector<32x128xf32>
    %1 = arith.truncf %0 : vector<32x128xf32> to vector<32x128xbf16>
    %c0_1 = arith.constant 0 : index
    %c0_2 = arith.constant 0 : index
    %2 = vector.load %arg3[%c0_1, %c0_2] : memref<128x256xbf16, #tpu.memory_space<vmem>>, vector<128x256xbf16>
    %cst = arith.constant dense<0.000000e+00> : vector<32x256xf32>
    %3 = tpu.matmul %1, %2, %cst {dimension_numbers = #tpu.dot_dimension_numbers<[1], [0], [0], [1], [0, 0, 1, 1], [], []>} : vector<32x128xbf16>, vector<128x256xbf16>, vector<32x256xf32> -> vector<32x256xf32>
    %c0_3 = arith.constant 0 : index
    %c0_4 = arith.constant 0 : index
    %4 = vector.load %arg4[%c0_3, %c0_4] : memref<1x256xf32, #tpu.memory_space<vmem>>, vector<1x256xf32>
    %5 = vector.broadcast %4 : vector<1x256xf32> to vector<32x256xf32>
    %6 = arith.addf %3, %5 : vector<32x256xf32>
    %7 = arith.truncf %6 : vector<32x256xf32> to vector<32x256xbf16>
    %c0_5 = arith.constant 0 : index
    %c0_6 = arith.constant 0 : index
    %8 = vector.load %arg5[%c0_5, %c0_6] : memref<32x256xbf16, #tpu.memory_space<vmem>>, vector<32x256xbf16>
    tpu.vector_store %arg5[%c0_5, %c0_6], %7 {strides = array<i32>} : memref<32x256xbf16, #tpu.memory_space<vmem>>, vector<32x256xbf16>,
    return
  }
  func.func @transform_0(%arg0: i32, %arg1: i32) -> (i32, i32) {
    %c0_i32 = arith.constant 0 : i32
    %c0_i32_0 = arith.constant 0 : i32
    return %arg0, %c0_i32 : i32, i32
  }
  func.func @transform_1(%arg0: i32, %arg1: i32) -> (i32, i32) {
    %c0_i32 = arith.constant 0 : i32
    %c0_i32_0 = arith.constant 0 : i32
    return %c0_i32, %arg1 : i32, i32
  }
  func.func @transform_2(%arg0: i32, %arg1: i32) -> (i32, i32) {
    %c0_i32 = arith.constant 0 : i32
    %c0_i32_0 = arith.constant 0 : i32
    return %c0_i32, %arg1 : i32, i32
  }
  func.func @transform_3(%arg0: i32, %arg1: i32) -> (i32, i32) {
    %c0_i32 = arith.constant 0 : i32
    return %arg0, %arg1 : i32, i32
  }
}

module attributes {stable_mosaic.version = 11 : i64} {
  func.func @_attn_kernel(%arg0: i32, %arg1: i32, %arg2: memref<1x8x128xbf16, #tpu.memory_space<vmem>>, %arg3: memref<1x128x16xbf16, #tpu.memory_space<vmem>>, %arg4: memref<1x16x128xbf16, #tpu.memory_space<vmem>>, %arg5: memref<1x8x128xbf16, #tpu.memory_space<vmem>>) attributes {dimension_semantics = [#tpu.dimension_semantics<parallel>, #tpu.dimension_semantics<parallel>], iteration_bounds = array<i64: 2, 1>, scalar_prefetch = 0 : i64, scratch_operands = 0 : i64, tpu.core_type = #tpu.core_type<tc>, window_params = [{transform_indices = @transform_0, window_bounds = array<i64: 1, 8, 128>}, {transform_indices = @transform_1, window_bounds = array<i64: 1, 128, 16>}, {transform_indices = @transform_2, window_bounds = array<i64: 1, 16, 128>}, {transform_indices = @transform_3, window_bounds = array<i64: 1, 8, 128>}]} {
    %c0 = arith.constant 0 : index
    %c0_0 = arith.constant 0 : index
    %c0_1 = arith.constant 0 : index
    %0 = vector.load %arg2[%c0, %c0_0, %c0_1] : memref<1x8x128xbf16, #tpu.memory_space<vmem>>, vector<1x8x128xbf16>
    %1 = vector.shape_cast %0 : vector<1x8x128xbf16> to vector<8x128xbf16>
    %c0_2 = arith.constant 0 : index
    %c0_3 = arith.constant 0 : index
    %c0_4 = arith.constant 0 : index
    %2 = vector.load %arg3[%c0_2, %c0_3, %c0_4] : memref<1x128x16xbf16, #tpu.memory_space<vmem>>, vector<1x128x16xbf16>
    %3 = vector.shape_cast %2 : vector<1x128x16xbf16> to vector<128x16xbf16>
    %cst = arith.constant dense<0.000000e+00> : vector<8x16xf32>
    %4 = tpu.matmul %1, %3, %cst {dimension_numbers = #tpu.dot_dimension_numbers<[1], [0], [0], [1], [0, 0, 1, 1], [], []>} : vector<8x128xbf16>, vector<128x16xbf16>, vector<8x16xf32> -> vector<8x16xf32>
    %cst_5 = arith.constant 0.0883883461 : f32
    %5 = vector.broadcast %cst_5 : f32 to vector<8x16xf32>
    %6 = arith.mulf %4, %5 : vector<8x16xf32>
    %cst_6 = arith.constant dense<0xFF800000> : vector<8xf32>
    %7 = vector.multi_reduction <maximumf>, %6, %cst_6 [1] : vector<8x16xf32> to vector<8xf32>
    %8 = vector.shape_cast %7 : vector<8xf32> to vector<8x1xf32>
    %9 = vector.broadcast %8 : vector<8x1xf32> to vector<8x16xf32>
    %10 = arith.subf %6, %9 : vector<8x16xf32>
    %11 = math.exp %10 : vector<8x16xf32>
    %cst_7 = arith.constant dense<0.000000e+00> : vector<8xf32>
    %12 = vector.multi_reduction <add>, %11, %cst_7 [1] : vector<8x16xf32> to vector<8xf32>
    %13 = vector.shape_cast %12 : vector<8xf32> to vector<8x1xf32>
    %14 = arith.truncf %11 : vector<8x16xf32> to vector<8x16xbf16>
    %c0_8 = arith.constant 0 : index
    %c0_9 = arith.constant 0 : index
    %c0_10 = arith.constant 0 : index
    %15 = vector.load %arg4[%c0_8, %c0_9, %c0_10] : memref<1x16x128xbf16, #tpu.memory_space<vmem>>, vector<1x16x128xbf16>
    %16 = vector.shape_cast %15 : vector<1x16x128xbf16> to vector<16x128xbf16>
    %cst_11 = arith.constant dense<0.000000e+00> : vector<8x128xf32>
    %17 = tpu.matmul %14, %16, %cst_11 {dimension_numbers = #tpu.dot_dimension_numbers<[1], [0], [0], [1], [0, 0, 1, 1], [], []>} : vector<8x16xbf16>, vector<16x128xbf16>, vector<8x128xf32> -> vector<8x128xf32>
    %18 = tpu.reciprocal %13 {approx = true} : vector<8x1xf32> -> vector<8x1xf32>
    %19 = arith.mulf %13, %18 : vector<8x1xf32>
    %cst_12 = arith.constant 2.000000e+00 : f32
    %20 = vector.broadcast %cst_12 : f32 to vector<8x1xf32>
    %21 = arith.subf %20, %19 : vector<8x1xf32>
    %22 = arith.mulf %18, %21 : vector<8x1xf32>
    %23 = vector.broadcast %22 : vector<8x1xf32> to vector<8x128xf32>
    %24 = arith.mulf %17, %23 : vector<8x128xf32>
    %25 = arith.truncf %24 : vector<8x128xf32> to vector<8x128xbf16>
    %c0_13 = arith.constant 0 : index
    %c0_14 = arith.constant 0 : index
    %c0_15 = arith.constant 0 : index
    %26 = vector.load %arg5[%c0_13, %c0_14, %c0_15] : memref<1x8x128xbf16, #tpu.memory_space<vmem>>, vector<1x8x128xbf16>
    %27 = vector.shape_cast %26 : vector<1x8x128xbf16> to vector<8x128xbf16>
    %28 = vector.shape_cast %25 : vector<8x128xbf16> to vector<1x8x128xbf16>
    tpu.vector_store %arg5[%c0_13, %c0_14, %c0_15], %28 {strides = array<i32>} : memref<1x8x128xbf16, #tpu.memory_space<vmem>>, vector<1x8x128xbf16>,
    return
  }
  func.func @transform_0(%arg0: i32, %arg1: i32) -> (i32, i32, i32) {
    %c0_i32 = arith.constant 0 : i32
    %c0_i32_0 = arith.constant 0 : i32
    return %arg0, %arg1, %c0_i32 : i32, i32, i32
  }
  func.func @transform_1(%arg0: i32, %arg1: i32) -> (i32, i32, i32) {
    %c0_i32 = arith.constant 0 : i32
    %c0_i32_0 = arith.constant 0 : i32
    %c0_i32_1 = arith.constant 0 : i32
    return %arg0, %c0_i32, %c0_i32_0 : i32, i32, i32
  }
  func.func @transform_2(%arg0: i32, %arg1: i32) -> (i32, i32, i32) {
    %c0_i32 = arith.constant 0 : i32
    %c0_i32_0 = arith.constant 0 : i32
    %c0_i32_1 = arith.constant 0 : i32
    return %arg0, %c0_i32, %c0_i32_0 : i32, i32, i32
  }
  func.func @transform_3(%arg0: i32, %arg1: i32) -> (i32, i32, i32) {
    %c0_i32 = arith.constant 0 : i32
    %c0_i32_0 = arith.constant 0 : i32
    return %arg0, %arg1, %c0_i32 : i32, i32, i32
  }
}

module attributes {stable_mosaic.version = 11 : i64} {
  func.func @_rowdot_score_kernel(%arg0: i32, %arg1: memref<2x8x128xf32, #tpu.memory_space<vmem>>, %arg2: memref<8x128xf32, #tpu.memory_space<vmem>>, %arg3: memref<8x16xbf16, #tpu.memory_space<vmem>>, %arg4: memref<1x16xf32, #tpu.memory_space<vmem>>, %arg5: memref<2x16xf32, #tpu.memory_space<vmem>>) attributes {dimension_semantics = [#tpu.dimension_semantics<arbitrary>], iteration_bounds = array<i64: 1>, scalar_prefetch = 0 : i64, scratch_operands = 0 : i64, tpu.core_type = #tpu.core_type<tc>, window_params = [{pipeline_mode = #tpu.pipeline_mode<synchronous>, transform_indices = @transform_0, window_bounds = array<i64: 2, 8, 128>}, {pipeline_mode = #tpu.pipeline_mode<synchronous>, transform_indices = @transform_1, window_bounds = array<i64: 8, 128>}, {pipeline_mode = #tpu.pipeline_mode<synchronous>, transform_indices = @transform_2, window_bounds = array<i64: 8, 16>}, {pipeline_mode = #tpu.pipeline_mode<synchronous>, transform_indices = @transform_3, window_bounds = array<i64: 1, 16>}, {pipeline_mode = #tpu.pipeline_mode<synchronous>, transform_indices = @transform_4, window_bounds = array<i64: 2, 16>}]} {
    %c0 = arith.constant 0 : index
    %c0_0 = arith.constant 0 : index
    %c0_1 = arith.constant 0 : index
    %0 = vector.load %arg1[%c0, %c0_0, %c0_1] : memref<2x8x128xf32, #tpu.memory_space<vmem>>, vector<2x8x128xf32>
    %c0_2 = arith.constant 0 : index
    %c0_3 = arith.constant 0 : index
    %1 = vector.load %arg2[%c0_2, %c0_3] : memref<8x128xf32, #tpu.memory_space<vmem>>, vector<8x128xf32>
    %2 = vector.shape_cast %1 : vector<8x128xf32> to vector<1x8x128xf32>
    %3 = vector.broadcast %2 : vector<1x8x128xf32> to vector<2x8x128xf32>
    %4 = arith.mulf %0, %3 : vector<2x8x128xf32>
    %cst = arith.constant dense<0.000000e+00> : vector<2x8xf32>
    %5 = vector.multi_reduction <add>, %4, %cst [2] : vector<2x8x128xf32> to vector<2x8xf32>
    %6 = arith.truncf %5 : vector<2x8xf32> to vector<2x8xbf16>
    %c0_4 = arith.constant 0 : index
    %c0_5 = arith.constant 0 : index
    %7 = vector.load %arg3[%c0_4, %c0_5] : memref<8x16xbf16, #tpu.memory_space<vmem>>, vector<8x16xbf16>
    %cst_6 = arith.constant dense<0.000000e+00> : vector<2x16xf32>
    %8 = tpu.matmul %6, %7, %cst_6 {dimension_numbers = #tpu.dot_dimension_numbers<[1], [0], [0], [1], [0, 0, 1, 1], [], []>} : vector<2x8xbf16>, vector<8x16xbf16>, vector<2x16xf32> -> vector<2x16xf32>
    %c0_7 = arith.constant 0 : index
    %c0_8 = arith.constant 0 : index
    %9 = vector.load %arg4[%c0_7, %c0_8] : memref<1x16xf32, #tpu.memory_space<vmem>>, vector<1x16xf32>
    %10 = vector.broadcast %9 : vector<1x16xf32> to vector<2x16xf32>
    %11 = arith.addf %8, %10 : vector<2x16xf32>
    %c0_9 = arith.constant 0 : index
    %c0_10 = arith.constant 0 : index
    %12 = vector.load %arg5[%c0_9, %c0_10] : memref<2x16xf32, #tpu.memory_space<vmem>>, vector<2x16xf32>
    tpu.vector_store %arg5[%c0_9, %c0_10], %11 {strides = array<i32>} : memref<2x16xf32, #tpu.memory_space<vmem>>, vector<2x16xf32>,
    return
  }
  func.func @transform_0(%arg0: i32) -> (i32, i32, i32) {
    %c0_i32 = arith.constant 0 : i32
    %c0_i32_0 = arith.constant 0 : i32
    %c0_i32_1 = arith.constant 0 : i32
    %c0_i32_2 = arith.constant 0 : i32
    return %c0_i32, %c0_i32_0, %c0_i32_1 : i32, i32, i32
  }
  func.func @transform_1(%arg0: i32) -> (i32, i32) {
    %c0_i32 = arith.constant 0 : i32
    %c0_i32_0 = arith.constant 0 : i32
    %c0_i32_1 = arith.constant 0 : i32
    return %c0_i32, %c0_i32_0 : i32, i32
  }
  func.func @transform_2(%arg0: i32) -> (i32, i32) {
    %c0_i32 = arith.constant 0 : i32
    %c0_i32_0 = arith.constant 0 : i32
    %c0_i32_1 = arith.constant 0 : i32
    return %c0_i32, %c0_i32_0 : i32, i32
  }
  func.func @transform_3(%arg0: i32) -> (i32, i32) {
    %c0_i32 = arith.constant 0 : i32
    %c0_i32_0 = arith.constant 0 : i32
    %c0_i32_1 = arith.constant 0 : i32
    return %c0_i32, %c0_i32_0 : i32, i32
  }
  func.func @transform_4(%arg0: i32) -> (i32, i32) {
    %c0_i32 = arith.constant 0 : i32
    %c0_i32_0 = arith.constant 0 : i32
    %c0_i32_1 = arith.constant 0 : i32
    return %c0_i32, %c0_i32_0 : i32, i32
  }
}

module attributes {stable_mosaic.version = 11 : i64} {
  func.func @_ffn_ln_kernel(%arg0: i32, %arg1: memref<16x128xf32, #tpu.memory_space<vmem>>, %arg2: memref<128x128xbf16, #tpu.memory_space<vmem>>, %arg3: memref<1x128xf32, #tpu.memory_space<vmem>>, %arg4: memref<128x128xbf16, #tpu.memory_space<vmem>>, %arg5: memref<1x128xf32, #tpu.memory_space<vmem>>, %arg6: memref<1x128xf32, #tpu.memory_space<vmem>>, %arg7: memref<1x128xf32, #tpu.memory_space<vmem>>, %arg8: memref<16x128xf32, #tpu.memory_space<vmem>>) attributes {dimension_semantics = [#tpu.dimension_semantics<parallel>], iteration_bounds = array<i64: 1>, scalar_prefetch = 0 : i64, scratch_operands = 0 : i64, tpu.core_type = #tpu.core_type<tc>, window_params = [{transform_indices = @transform_0, window_bounds = array<i64: 16, 128>}, {pipeline_mode = #tpu.pipeline_mode<synchronous>, transform_indices = @transform_1, window_bounds = array<i64: 128, 128>}, {pipeline_mode = #tpu.pipeline_mode<synchronous>, transform_indices = @transform_2, window_bounds = array<i64: 1, 128>}, {pipeline_mode = #tpu.pipeline_mode<synchronous>, transform_indices = @transform_3, window_bounds = array<i64: 128, 128>}, {pipeline_mode = #tpu.pipeline_mode<synchronous>, transform_indices = @transform_4, window_bounds = array<i64: 1, 128>}, {pipeline_mode = #tpu.pipeline_mode<synchronous>, transform_indices = @transform_5, window_bounds = array<i64: 1, 128>}, {pipeline_mode = #tpu.pipeline_mode<synchronous>, transform_indices = @transform_6, window_bounds = array<i64: 1, 128>}, {transform_indices = @transform_7, window_bounds = array<i64: 16, 128>}]} {
    %c0 = arith.constant 0 : index
    %c0_0 = arith.constant 0 : index
    %0 = vector.load %arg1[%c0, %c0_0] : memref<16x128xf32, #tpu.memory_space<vmem>>, vector<16x128xf32>
    %1 = arith.truncf %0 : vector<16x128xf32> to vector<16x128xbf16>
    %c0_1 = arith.constant 0 : index
    %c0_2 = arith.constant 0 : index
    %2 = vector.load %arg2[%c0_1, %c0_2] : memref<128x128xbf16, #tpu.memory_space<vmem>>, vector<128x128xbf16>
    %cst = arith.constant dense<0.000000e+00> : vector<16x128xf32>
    %3 = tpu.matmul %1, %2, %cst {dimension_numbers = #tpu.dot_dimension_numbers<[1], [0], [0], [1], [0, 0, 1, 1], [], []>} : vector<16x128xbf16>, vector<128x128xbf16>, vector<16x128xf32> -> vector<16x128xf32>
    %c0_3 = arith.constant 0 : index
    %c0_4 = arith.constant 0 : index
    %4 = vector.load %arg3[%c0_3, %c0_4] : memref<1x128xf32, #tpu.memory_space<vmem>>, vector<1x128xf32>
    %5 = vector.broadcast %4 : vector<1x128xf32> to vector<16x128xf32>
    %6 = arith.addf %3, %5 : vector<16x128xf32>
    %cst_5 = arith.constant 0.000000e+00 : f32
    %7 = vector.broadcast %cst_5 : f32 to vector<16x128xf32>
    %8 = arith.maximumf %6, %7 : vector<16x128xf32>
    %9 = arith.truncf %8 : vector<16x128xf32> to vector<16x128xbf16>
    %c0_6 = arith.constant 0 : index
    %c0_7 = arith.constant 0 : index
    %10 = vector.load %arg4[%c0_6, %c0_7] : memref<128x128xbf16, #tpu.memory_space<vmem>>, vector<128x128xbf16>
    %cst_8 = arith.constant dense<0.000000e+00> : vector<16x128xf32>
    %11 = tpu.matmul %9, %10, %cst_8 {dimension_numbers = #tpu.dot_dimension_numbers<[1], [0], [0], [1], [0, 0, 1, 1], [], []>} : vector<16x128xbf16>, vector<128x128xbf16>, vector<16x128xf32> -> vector<16x128xf32>
    %c0_9 = arith.constant 0 : index
    %c0_10 = arith.constant 0 : index
    %12 = vector.load %arg5[%c0_9, %c0_10] : memref<1x128xf32, #tpu.memory_space<vmem>>, vector<1x128xf32>
    %13 = vector.broadcast %12 : vector<1x128xf32> to vector<16x128xf32>
    %14 = arith.addf %11, %13 : vector<16x128xf32>
    %15 = arith.addf %0, %14 : vector<16x128xf32>
    %cst_11 = arith.constant dense<0.000000e+00> : vector<16xf32>
    %16 = vector.multi_reduction <add>, %15, %cst_11 [1] : vector<16x128xf32> to vector<16xf32>
    %17 = vector.shape_cast %16 : vector<16xf32> to vector<16x1xf32>
    %cst_12 = arith.constant 1.280000e+02 : f32
    %18 = vector.broadcast %cst_12 : f32 to vector<16x1xf32>
    %19 = arith.divf %17, %18 : vector<16x1xf32>
    %20 = vector.broadcast %19 : vector<16x1xf32> to vector<16x128xf32>
    %21 = arith.subf %15, %20 : vector<16x128xf32>
    %22 = arith.mulf %21, %21 : vector<16x128xf32>
    %cst_13 = arith.constant dense<0.000000e+00> : vector<16xf32>
    %23 = vector.multi_reduction <add>, %22, %cst_13 [1] : vector<16x128xf32> to vector<16xf32>
    %24 = vector.shape_cast %23 : vector<16xf32> to vector<16x1xf32>
    %cst_14 = arith.constant 1.280000e+02 : f32
    %25 = vector.broadcast %cst_14 : f32 to vector<16x1xf32>
    %26 = arith.divf %24, %25 : vector<16x1xf32>
    %cst_15 = arith.constant 9.99999974E-6 : f32
    %27 = vector.broadcast %cst_15 : f32 to vector<16x1xf32>
    %28 = arith.addf %26, %27 : vector<16x1xf32>
    %29 = math.rsqrt %28 : vector<16x1xf32>
    %30 = vector.broadcast %29 : vector<16x1xf32> to vector<16x128xf32>
    %31 = arith.mulf %21, %30 : vector<16x128xf32>
    %c0_16 = arith.constant 0 : index
    %c0_17 = arith.constant 0 : index
    %32 = vector.load %arg6[%c0_16, %c0_17] : memref<1x128xf32, #tpu.memory_space<vmem>>, vector<1x128xf32>
    %33 = vector.broadcast %32 : vector<1x128xf32> to vector<16x128xf32>
    %34 = arith.mulf %31, %33 : vector<16x128xf32>
    %c0_18 = arith.constant 0 : index
    %c0_19 = arith.constant 0 : index
    %35 = vector.load %arg7[%c0_18, %c0_19] : memref<1x128xf32, #tpu.memory_space<vmem>>, vector<1x128xf32>
    %36 = vector.broadcast %35 : vector<1x128xf32> to vector<16x128xf32>
    %37 = arith.addf %34, %36 : vector<16x128xf32>
    %c0_20 = arith.constant 0 : index
    %c0_21 = arith.constant 0 : index
    %38 = vector.load %arg8[%c0_20, %c0_21] : memref<16x128xf32, #tpu.memory_space<vmem>>, vector<16x128xf32>
    tpu.vector_store %arg8[%c0_20, %c0_21], %37 {strides = array<i32>} : memref<16x128xf32, #tpu.memory_space<vmem>>, vector<16x128xf32>,
    return
  }
  func.func @transform_0(%arg0: i32) -> (i32, i32) {
    %c0_i32 = arith.constant 0 : i32
    %c0_i32_0 = arith.constant 0 : i32
    return %arg0, %c0_i32 : i32, i32
  }
  func.func @transform_1(%arg0: i32) -> (i32, i32) {
    %c0_i32 = arith.constant 0 : i32
    %c0_i32_0 = arith.constant 0 : i32
    %c0_i32_1 = arith.constant 0 : i32
    return %c0_i32, %c0_i32_0 : i32, i32
  }
  func.func @transform_2(%arg0: i32) -> (i32, i32) {
    %c0_i32 = arith.constant 0 : i32
    %c0_i32_0 = arith.constant 0 : i32
    %c0_i32_1 = arith.constant 0 : i32
    return %c0_i32, %c0_i32_0 : i32, i32
  }
  func.func @transform_3(%arg0: i32) -> (i32, i32) {
    %c0_i32 = arith.constant 0 : i32
    %c0_i32_0 = arith.constant 0 : i32
    %c0_i32_1 = arith.constant 0 : i32
    return %c0_i32, %c0_i32_0 : i32, i32
  }
  func.func @transform_4(%arg0: i32) -> (i32, i32) {
    %c0_i32 = arith.constant 0 : i32
    %c0_i32_0 = arith.constant 0 : i32
    %c0_i32_1 = arith.constant 0 : i32
    return %c0_i32, %c0_i32_0 : i32, i32
  }
  func.func @transform_5(%arg0: i32) -> (i32, i32) {
    %c0_i32 = arith.constant 0 : i32
    %c0_i32_0 = arith.constant 0 : i32
    %c0_i32_1 = arith.constant 0 : i32
    return %c0_i32, %c0_i32_0 : i32, i32
  }
  func.func @transform_6(%arg0: i32) -> (i32, i32) {
    %c0_i32 = arith.constant 0 : i32
    %c0_i32_0 = arith.constant 0 : i32
    %c0_i32_1 = arith.constant 0 : i32
    return %c0_i32, %c0_i32_0 : i32, i32
  }
  func.func @transform_7(%arg0: i32) -> (i32, i32) {
    %c0_i32 = arith.constant 0 : i32
    %c0_i32_0 = arith.constant 0 : i32
    return %arg0, %c0_i32 : i32, i32
  }
}

module attributes {stable_mosaic.version = 11 : i64} {
  func.func @_oproj_add_ln_kernel(%arg0: i32, %arg1: memref<16x128xbf16, #tpu.memory_space<vmem>>, %arg2: memref<128x128xbf16, #tpu.memory_space<vmem>>, %arg3: memref<1x128xf32, #tpu.memory_space<vmem>>, %arg4: memref<16x128xf32, #tpu.memory_space<vmem>>, %arg5: memref<2x128xf32, #tpu.memory_space<vmem>>, %arg6: memref<16x128xf32, #tpu.memory_space<vmem>>) attributes {dimension_semantics = [#tpu.dimension_semantics<parallel>], iteration_bounds = array<i64: 1>, scalar_prefetch = 0 : i64, scratch_operands = 0 : i64, tpu.core_type = #tpu.core_type<tc>, window_params = [{transform_indices = @transform_0, window_bounds = array<i64: 16, 128>}, {pipeline_mode = #tpu.pipeline_mode<synchronous>, transform_indices = @transform_1, window_bounds = array<i64: 128, 128>}, {pipeline_mode = #tpu.pipeline_mode<synchronous>, transform_indices = @transform_2, window_bounds = array<i64: 1, 128>}, {transform_indices = @transform_3, window_bounds = array<i64: 16, 128>}, {pipeline_mode = #tpu.pipeline_mode<synchronous>, transform_indices = @transform_4, window_bounds = array<i64: 2, 128>}, {transform_indices = @transform_5, window_bounds = array<i64: 16, 128>}]} {
    %c0 = arith.constant 0 : index
    %c0_0 = arith.constant 0 : index
    %0 = vector.load %arg1[%c0, %c0_0] : memref<16x128xbf16, #tpu.memory_space<vmem>>, vector<16x128xbf16>
    %c0_1 = arith.constant 0 : index
    %c0_2 = arith.constant 0 : index
    %1 = vector.load %arg2[%c0_1, %c0_2] : memref<128x128xbf16, #tpu.memory_space<vmem>>, vector<128x128xbf16>
    %cst = arith.constant dense<0.000000e+00> : vector<16x128xf32>
    %2 = tpu.matmul %0, %1, %cst {dimension_numbers = #tpu.dot_dimension_numbers<[1], [0], [0], [1], [0, 0, 1, 1], [], []>} : vector<16x128xbf16>, vector<128x128xbf16>, vector<16x128xf32> -> vector<16x128xf32>
    %c0_3 = arith.constant 0 : index
    %c0_4 = arith.constant 0 : index
    %3 = vector.load %arg3[%c0_3, %c0_4] : memref<1x128xf32, #tpu.memory_space<vmem>>, vector<1x128xf32>
    %4 = vector.broadcast %3 : vector<1x128xf32> to vector<16x128xf32>
    %5 = arith.addf %2, %4 : vector<16x128xf32>
    %c0_5 = arith.constant 0 : index
    %c0_6 = arith.constant 0 : index
    %6 = vector.load %arg4[%c0_5, %c0_6] : memref<16x128xf32, #tpu.memory_space<vmem>>, vector<16x128xf32>
    %7 = arith.addf %6, %5 : vector<16x128xf32>
    %cst_7 = arith.constant dense<0.000000e+00> : vector<16xf32>
    %8 = vector.multi_reduction <add>, %7, %cst_7 [1] : vector<16x128xf32> to vector<16xf32>
    %9 = vector.shape_cast %8 : vector<16xf32> to vector<16x1xf32>
    %cst_8 = arith.constant 1.280000e+02 : f32
    %10 = vector.broadcast %cst_8 : f32 to vector<16x1xf32>
    %11 = arith.divf %9, %10 : vector<16x1xf32>
    %12 = vector.broadcast %11 : vector<16x1xf32> to vector<16x128xf32>
    %13 = arith.subf %7, %12 : vector<16x128xf32>
    %14 = arith.mulf %13, %13 : vector<16x128xf32>
    %cst_9 = arith.constant dense<0.000000e+00> : vector<16xf32>
    %15 = vector.multi_reduction <add>, %14, %cst_9 [1] : vector<16x128xf32> to vector<16xf32>
    %16 = vector.shape_cast %15 : vector<16xf32> to vector<16x1xf32>
    %cst_10 = arith.constant 1.280000e+02 : f32
    %17 = vector.broadcast %cst_10 : f32 to vector<16x1xf32>
    %18 = arith.divf %16, %17 : vector<16x1xf32>
    %cst_11 = arith.constant 9.99999974E-6 : f32
    %19 = vector.broadcast %cst_11 : f32 to vector<16x1xf32>
    %20 = arith.addf %18, %19 : vector<16x1xf32>
    %21 = math.rsqrt %20 : vector<16x1xf32>
    %22 = vector.broadcast %21 : vector<16x1xf32> to vector<16x128xf32>
    %23 = arith.mulf %13, %22 : vector<16x128xf32>
    %c0_12 = arith.constant 0 : index
    %c0_13 = arith.constant 0 : index
    %24 = vector.load %arg5[%c0_12, %c0_13] : memref<2x128xf32, #tpu.memory_space<vmem>>, vector<1x128xf32>
    %25 = vector.shape_cast %24 : vector<1x128xf32> to vector<128xf32>
    %26 = vector.shape_cast %25 : vector<128xf32> to vector<1x128xf32>
    %27 = vector.broadcast %26 : vector<1x128xf32> to vector<16x128xf32>
    %28 = arith.mulf %23, %27 : vector<16x128xf32>
    %c1 = arith.constant 1 : index
    %c0_14 = arith.constant 0 : index
    %29 = vector.load %arg5[%c1, %c0_14] : memref<2x128xf32, #tpu.memory_space<vmem>>, vector<1x128xf32>
    %30 = vector.shape_cast %29 : vector<1x128xf32> to vector<128xf32>
    %31 = vector.shape_cast %30 : vector<128xf32> to vector<1x128xf32>
    %32 = vector.broadcast %31 : vector<1x128xf32> to vector<16x128xf32>
    %33 = arith.addf %28, %32 : vector<16x128xf32>
    %c0_15 = arith.constant 0 : index
    %c0_16 = arith.constant 0 : index
    %34 = vector.load %arg6[%c0_15, %c0_16] : memref<16x128xf32, #tpu.memory_space<vmem>>, vector<16x128xf32>
    tpu.vector_store %arg6[%c0_15, %c0_16], %33 {strides = array<i32>} : memref<16x128xf32, #tpu.memory_space<vmem>>, vector<16x128xf32>,
    return
  }
  func.func @transform_0(%arg0: i32) -> (i32, i32) {
    %c0_i32 = arith.constant 0 : i32
    %c0_i32_0 = arith.constant 0 : i32
    return %arg0, %c0_i32 : i32, i32
  }
  func.func @transform_1(%arg0: i32) -> (i32, i32) {
    %c0_i32 = arith.constant 0 : i32
    %c0_i32_0 = arith.constant 0 : i32
    %c0_i32_1 = arith.constant 0 : i32
    return %c0_i32, %c0_i32_0 : i32, i32
  }
  func.func @transform_2(%arg0: i32) -> (i32, i32) {
    %c0_i32 = arith.constant 0 : i32
    %c0_i32_0 = arith.constant 0 : i32
    %c0_i32_1 = arith.constant 0 : i32
    return %c0_i32, %c0_i32_0 : i32, i32
  }
  func.func @transform_3(%arg0: i32) -> (i32, i32) {
    %c0_i32 = arith.constant 0 : i32
    %c0_i32_0 = arith.constant 0 : i32
    return %arg0, %c0_i32 : i32, i32
  }
  func.func @transform_4(%arg0: i32) -> (i32, i32) {
    %c0_i32 = arith.constant 0 : i32
    %c0_i32_0 = arith.constant 0 : i32
    %c0_i32_1 = arith.constant 0 : i32
    return %c0_i32, %c0_i32_0 : i32, i32
  }
  func.func @transform_5(%arg0: i32) -> (i32, i32) {
    %c0_i32 = arith.constant 0 : i32
    %c0_i32_0 = arith.constant 0 : i32
    return %arg0, %c0_i32 : i32, i32
  }
}

</mosaic_0001>

<bundles_post_ra>
// kernel: transzero_forward.36
= control target key start
LH: loop header
LB: loop body
LE: loop exit
PB: predicated region body
PF: predicated region fallthrough
CT: control target
= control target key end

     0   :  { %8 = vsyncpa [#allocation3], 0  ;;  %s150_s12 = smov [#allocation2]   ;;  %s196_s0 = inlined_call_operand.vmem [shape: f32[8,32], index: 0, kind: input, shape index: {}]   ;;  %s197_s1 = inlined_call_operand.hbm [shape: bf16[32,128], index: 1, kind: input, shape index: {}]   ;;  %s198_s2 = inlined_call_operand.vmem [shape: f32[1,128], index: 2, kind: input, shape index: {}]   ;;  %s199_s3 = inlined_call_operand.vmem [shape: f32[8,128], index: 3, kind: output, shape index: {}]  }
   0x1   :  { %s16_s13 = sshll.u32 %s150_s12, 4  ;;  %s126_s16 = scalar_lea.hbm %s197_s1, 256  ;;  %s17_s13 = int_to_ptr.vmem [resolvable:$true] %s16_s13 }
   0x2   :  { %p127_p0 = scmp.ne.s32.totalorder %s197_s1, %s126_s16  ;;  %p130_p1 = scmp.lt.u32.totalorder %s126_s16, %s197_s1 }
   0x4   :  { %p132_p2 = pnand %p130_p1, %p127_p0 }
   0x6   :  { %135 = shalt.err (!%p132_p2)
}
   0x7   :  { %s136_s21 = scalar_lea.vmem %s17_s13, 256  ;;  %p141_p4 = scmp.lt.s32.totalorder %s17_s13, %s17_s13 }
   0x8   :  { %p137_p3 = scmp.ne.s32.totalorder %s17_s13, %s136_s21  ;;  %p142_p5 = scmp.lt.s32.totalorder %s136_s21, %s136_s21 }
   0xa   :  { %p143_p6 = por %p142_p5, %p141_p4 }
   0xc   :  { %p144_p7 = pnand %p143_p6, %p137_p3 }
   0xe   :  { %147 = shalt.err (!%p144_p7)
}
   0xf   :  { %s151_s22 = smov 64   ;;  %s152_s23 = smov 4  }
  0x10   :  { %22 = dma.hbm_to_vmem [thread:$0]  %s197_s1, 256, %s17_s13, [#allocation3], %s151_s22, %s151_s22, %s152_s23  }
  0x11   :  { %148 = dma.done.wait [#allocation3], 256  }
  0x12   :  { %149 = vsyncadd [#allocation3], 4294967040  ;;  %v153_v0 = vmov 0.0   ;;  %vm154_vm0 = vmmov 0   ;;  %v124_v1 = vld [vmem:[#allocation2] sm:$0xff]   ;;  %v125_v2 = vld [vmem:[#allocation2 + $0x8] sm:$0xff]  }
  0x13   :  { %111 = vmatprep.subr.bf16.mxu0 %v153_v0  ;;  %115 = vmatprep.mubr.msk.bf16.mxu0 %vm154_vm0, %v153_v0  ;;  %v29_v3 = vld [vmem:[%s196_s0] sm:$0xff]  ;;  %vm54_vm1 = vcmask 261120  }
  0x14   :  { %112 = vmatpush3.bf16.msra.mxu0 %v124_v1  ;;  %v30_v4 = vpack.c.bf16 %v29_v3, %v29_v3  ;;  %v104_v5 = vld [vmem:[%s198_s2] ss:$0 sm:$0xff] }
  0x15   :  { %113 = vmatprep.subr.bf16.mxu0 %v153_v0 }
  0x18   :  { %114 = vmatpush3.bf16.msra.mxu0 %v125_v2 }
  0x1b   :  { %116 = vmatmul.mubr.msk.bf16.vlgmr.msra.gmra.mrb[0].mxu0 %vm54_vm1, %v30_v4 }
  0xee   :  { %v92_v6 = vpop.f32.mrb[0].mxu0 }
  0xef   :  { %v93_v7 = vadd.f32 %v104_v5, %v92_v6  ;;  %v117_v8 = vpop.f32.mrb[1].mxu0 }
  0xf0   :  { %v95_v9 = vpop.f32.mrb[2].mxu0 }
  0xf1   :  { %98 = vst [vmem:[%s199_s3] sm:$0xff] %v93_v7  ;;  %v118_v10 = vpop.f32.mrb[3].mxu0 }
  0xf2   :  { %103 = vsyncpa [#allocation3], 1 }

// kernel: transzero_forward.22
= control target key start
LH: loop header
LB: loop body
LE: loop exit
PB: predicated region body
PF: predicated region fallthrough
CT: control target
= control target key end

     0   :  { %8 = vsyncpa [#allocation3], 0  ;;  %s244_s0 = inlined_call_operand.vmem [shape: f32[8,32], index: 0, kind: input, shape index: {}]   ;;  %s245_s1 = inlined_call_operand.hbm [shape: bf16[32,128], index: 1, kind: input, shape index: {}]   ;;  %s246_s2 = inlined_call_operand.hbm [shape: f32[1,128], index: 2, kind: input, shape index: {}]   ;;  %s247_s3 = inlined_call_operand.vmem [shape: f32[8,128], index: 3, kind: output, shape index: {}]  }
   0x1   :  { %9 = vsyncpa [#allocation5], 0  ;;  %s188_s12 = smov [#allocation2]   ;;  %s140_s16 = scalar_lea.hbm %s245_s1, 256 }
   0x2   :  { %s17_s13 = sshll.u32 %s188_s12, 4  ;;  %p141_p0 = scmp.ne.s32.totalorder %s245_s1, %s140_s16  ;;  %s18_s13 = int_to_ptr.vmem [resolvable:$true] %s17_s13 }
   0x3   :  { %p144_p1 = scmp.lt.u32.totalorder %s140_s16, %s245_s1 }
   0x5   :  { %p146_p2 = pnand %p144_p1, %p141_p0 }
   0x7   :  { %149 = shalt.err (!%p146_p2)
}
   0x8   :  { %s150_s21 = scalar_lea.vmem %s18_s13, 256  ;;  %p155_p4 = scmp.lt.s32.totalorder %s18_s13, %s18_s13 }
   0x9   :  { %p151_p3 = scmp.ne.s32.totalorder %s18_s13, %s150_s21  ;;  %p156_p5 = scmp.lt.s32.totalorder %s150_s21, %s150_s21 }
   0xb   :  { %p157_p6 = por %p156_p5, %p155_p4 }
   0xd   :  { %p158_p7 = pnand %p157_p6, %p151_p3 }
   0xf   :  { %161 = shalt.err (!%p158_p7)
}
  0x10   :  { %s189_s22 = smov 64   ;;  %s190_s23 = smov 4  }
  0x11   :  { %23 = dma.hbm_to_vmem [thread:$0]  %s245_s1, 256, %s18_s13, [#allocation3], %s189_s22, %s189_s22, %s190_s23  }
  0x12   :  { %s191_s26 = smov [#allocation4]   ;;  %s162_s30 = scalar_lea.hbm %s246_s2, 16 }
  0x13   :  { %s30_s27 = sshll.u32 %s191_s26, 4  ;;  %p163_p8 = scmp.ne.s32.totalorder %s246_s2, %s162_s30  ;;  %s31_s27 = int_to_ptr.vmem [resolvable:$true] %s30_s27 }
  0x14   :  { %p166_p9 = scmp.lt.u32.totalorder %s162_s30, %s246_s2 }
  0x16   :  { %p168_p10 = pnand %p166_p9, %p163_p8 }
  0x18   :  { %171 = shalt.err (!%p168_p10)
}
  0x19   :  { %s172_s8 = scalar_lea.vmem %s31_s27, 16  ;;  %s176_s1 = scalar_lea.vmem %s31_s27, 32 }
  0x1a   :  { %p173_p11 = scmp.ne.s32.totalorder %s31_s27, %s172_s8  ;;  %p177_p12 = scmp.lt.s32.totalorder %s31_s27, %s31_s27 }
  0x1b   :  { %p178_p13 = scmp.lt.s32.totalorder %s176_s1, %s172_s8 }
  0x1d   :  { %p179_p0 = por %p178_p13, %p177_p12 }
  0x1f   :  { %p180_p1 = pnand %p179_p0, %p173_p11 }
  0x21   :  { %183 = shalt.err (!%p180_p1)
}
  0x22   :  { %33 = dma.hbm_to_vmem [thread:$0]  %s246_s2, 16, %s31_s27, [#allocation5]  }
  0x23   :  { %184 = dma.done.wait [#allocation3], 256  }
  0x24   :  { %185 = vsyncadd [#allocation3], 4294967040 }
  0x25   :  { %186 = dma.done.wait [#allocation5], 16  }
  0x26   :  { %187 = vsyncadd [#allocation5], 4294967280  ;;  %v192_v0 = vmov 0.0   ;;  %vm193_vm0 = vmmov 0   ;;  %v138_v1 = vld [vmem:[#allocation2] sm:$0xff]   ;;  %v139_v2 = vld [vmem:[#allocation2 + $0x8] sm:$0xff]  }
  0x27   :  { %124 = vmatprep.subr.bf16.mxu0 %v192_v0  ;;  %128 = vmatprep.mubr.msk.bf16.mxu0 %vm193_vm0, %v192_v0  ;;  %v41_v3 = vld [vmem:[%s244_s0] sm:$0xff]  ;;  %vm66_vm1 = vcmask 261120   ;;  %v117_v5 = vld [vmem:[#allocation4] ss:$0 sm:$0xff] }
  0x28   :  { %125 = vmatpush3.bf16.msra.mxu0 %v138_v1  ;;  %v42_v4 = vpack.c.bf16 %v41_v3, %v41_v3 }
  0x29   :  { %126 = vmatprep.subr.bf16.mxu0 %v192_v0 }
  0x2c   :  { %127 = vmatpush3.bf16.msra.mxu0 %v139_v2 }
  0x2f   :  { %129 = vmatmul.mubr.msk.bf16.vlgmr.msra.gmra.mrb[0].mxu0 %vm66_vm1, %v42_v4 }
 0x102   :  { %v104_v6 = vpop.f32.mrb[0].mxu0 }
 0x103   :  { %v105_v7 = vadd.f32 %v117_v5, %v104_v6  ;;  %v130_v8 = vpop.f32.mrb[1].mxu0 }
 0x104   :  { %v107_v9 = vpop.f32.mrb[2].mxu0 }
 0x105   :  { %110 = vst [vmem:[%s247_s3] sm:$0xff] %v105_v7  ;;  %v131_v10 = vpop.f32.mrb[3].mxu0 }
 0x106   :  { %115 = vsyncpa [#allocation3], 1 }
 0x107   :  { %116 = vsyncpa [#allocation5], 1 }

// kernel: transzero_forward.20
= control target key start
LH: loop header
LB: loop body
LE: loop exit
PB: predicated region body
PF: predicated region fallthrough
CT: control target
= control target key end

     0   :  { %6 = vsyncpa [#allocation3], 0  ;;  %s62_s6 = smov [#allocation2]   ;;  %s88_s0 = inlined_call_operand.hbm [shape: f32[8,32], index: 0, kind: input, shape index: {}]   ;;  %s89_s1 = inlined_call_operand.vmem [shape: f32[8,32], index: 1, kind: output, shape index: {}]  }
   0x1   :  { %s13_s7 = sshll.u32 %s62_s6, 4  ;;  %s38_s10 = scalar_lea.hbm %s88_s0, 128  ;;  %s14_s7 = int_to_ptr.vmem [resolvable:$true] %s13_s7 }
   0x2   :  { %p39_p0 = scmp.ne.s32.totalorder %s88_s0, %s38_s10  ;;  %p42_p1 = scmp.lt.u32.totalorder %s38_s10, %s88_s0 }
   0x4   :  { %p44_p2 = pnand %p42_p1, %p39_p0 }
   0x6   :  { %47 = shalt.err (!%p44_p2)
}
   0x7   :  { %s48_s15 = scalar_lea.vmem %s14_s7, 128  ;;  %p53_p4 = scmp.lt.s32.totalorder %s14_s7, %s14_s7 }
   0x8   :  { %p49_p3 = scmp.ne.s32.totalorder %s14_s7, %s48_s15  ;;  %p54_p5 = scmp.lt.s32.totalorder %s48_s15, %s48_s15 }
   0xa   :  { %p55_p6 = por %p54_p5, %p53_p4 }
   0xc   :  { %p56_p7 = pnand %p55_p6, %p49_p3 }
   0xe   :  { %59 = shalt.err (!%p56_p7)
}
   0xf   :  { %16 = dma.hbm_to_vmem [thread:$0]  %s88_s0, 128, %s14_s7, [#allocation3]  }
  0x10   :  { %60 = dma.done.wait [#allocation3], 128  }
  0x11   :  { %61 = vsyncadd [#allocation3], 4294967168  ;;  %v20_v0 = vld [vmem:[#allocation2] sm:$0xff]  ;;  %vm22_vm0 = vcmask 261120  }
  0x12   :  { %v21_v1 = vmul.f32 %v20_v0, %v20_v0 }
  0x14   :  { %v23_v2 = vsel %vm22_vm0, %v21_v1, 0.0 }
  0x15   :  { %24 = vadd.xlane.f32.xlu0 %v23_v2 }
  0xa2   :  { %v25_v3 = vpop.xlane.xlu0 %24 }
  0xa3   :  { %v26_v4 = vmax.f32 %v25_v3, 1e-24 }
  0xa5   :  { %36 = vrsqrt.f32 %v26_v4 }
  0xaf   :  { %v37_v5 = vpop.eup %36 }
  0xb0   :  { %v28_v6 = vmul.f32 %v37_v5, %v20_v0 }
  0xb2   :  { %29 = vst.msk [vmem:[%s89_s1] sm:$0xff] %vm22_vm0, %v28_v6 }
  0xb3   :  { %34 = vsyncpa [#allocation3], 1 }

// kernel: transzero_forward.28
= control target key start
LH: loop header
LB: loop body
LE: loop exit
PB: predicated region body
PF: predicated region fallthrough
CT: control target
= control target key end

     0   :  { %8 = vsyncpa [#allocation3], 0  ;;  %s428_s12 = smov [#allocation2]   ;;  %s478_s0 = inlined_call_operand.vmem [shape: f32[8,128], index: 0, kind: input, shape index: {}]   ;;  %s479_s1 = inlined_call_operand.hbm [shape: bf16[128,384], index: 1, kind: input, shape index: {}]   ;;  %s480_s2 = inlined_call_operand.vmem [shape: f32[1,384], index: 2, kind: input, shape index: {}]   ;;  %s481_s3 = inlined_call_operand.vmem [shape: bf16[8,384], index: 3, kind: output, shape index: {}]  }
   0x1   :  { %s16_s13 = sshll.u32 %s428_s12, 4  ;;  %s404_s16 = scalar_lea.hbm %s479_s1, 3072  ;;  %s17_s13 = int_to_ptr.vmem [resolvable:$true] %s16_s13 }
   0x2   :  { %p405_p0 = scmp.ne.s32.totalorder %s479_s1, %s404_s16  ;;  %p408_p1 = scmp.lt.u32.totalorder %s404_s16, %s479_s1 }
   0x4   :  { %p410_p2 = pnand %p408_p1, %p405_p0 }
   0x6   :  { %413 = shalt.err (!%p410_p2)
}
   0x7   :  { %s414_s21 = scalar_lea.vmem %s17_s13, 3072  ;;  %p419_p4 = scmp.lt.s32.totalorder %s17_s13, %s17_s13 }
   0x8   :  { %p415_p3 = scmp.ne.s32.totalorder %s17_s13, %s414_s21  ;;  %p420_p5 = scmp.lt.s32.totalorder %s414_s21, %s414_s21 }
   0xa   :  { %p421_p6 = por %p420_p5, %p419_p4 }
   0xc   :  { %p422_p7 = pnand %p421_p6, %p415_p3 }
   0xe   :  { %425 = shalt.err (!%p422_p7)
}
   0xf   :  { %s429_s22 = smov 192   ;;  %s430_s23 = smov 12  }
  0x10   :  { %22 = dma.hbm_to_vmem [thread:$0]  %s479_s1, 3072, %s17_s13, [#allocation3], %s429_s22, %s429_s22, %s430_s23  }
  0x11   :  { %426 = dma.done.wait [#allocation3], 3072  }
  0x12   :  { %427 = vsyncadd [#allocation3], 4294964224  ;;  %v431_v0 = vmov 0.0   ;;  %vm432_vm0 = vmmov 0   ;;  %v433_v1 = vmov 0   ;;  %v29_v25 = vld [vmem:[%s478_s0] sm:$0xff]  ;;  %v65_v28 = vlaneseq }
  0x13   :  { %346 = vmatprep.subr.bf16.mxu1 %v431_v0  ;;  %362 = vmatprep.mubr.msk.bf16.mxu1 %vm432_vm0, %v431_v0  ;;  %v372_v2 = vld [vmem:[#allocation2 + $0x4] ss:$12 sps:$4 sm:$0xff]   ;;  %v374_v3 = vld [vmem:[#allocation2 + $0x8] ss:$12 sps:$4 sm:$0xff]   ;;  %v375_v4 = vld [vmem:[#allocation2] ss:$12 sps:$4 sm:$0xff]   ;;  %v30_v27 = vpack.c.bf16 %v29_v25, %v29_v25 }
  0x14   :  { %240 = vmatprep.mubr.bf16.mxu0 %v433_v1  ;;  %208 = vmatprep.subr.bf16.mxu0 %v372_v2  ;;  %v376_v5 = vld [vmem:[#allocation2 + $0x1c] ss:$12 sps:$4 sm:$0xff]   ;;  %v378_v6 = vld [vmem:[#allocation2 + $0x20] ss:$12 sps:$4 sm:$0xff]   ;;  %v379_v7 = vld [vmem:[#allocation2 + $0x18] ss:$12 sps:$4 sm:$0xff]  }
  0x15   :  { %347 = vmatpush3.bf16.msra.mxu1 %v374_v3  ;;  %209 = vmatpush1.bf16.msra.mxu0 %v375_v4  ;;  %v380_v8 = vld [vmem:[#allocation2 + $0x34] ss:$12 sps:$4 sm:$0xff]   ;;  %v382_v9 = vld [vmem:[#allocation2 + $0x38] ss:$12 sps:$4 sm:$0xff]   ;;  %v383_v10 = vld [vmem:[#allocation2 + $0x30] ss:$12 sps:$4 sm:$0xff]  }
  0x16   :  { %348 = vmatprep.subr.bf16.mxu1 %v431_v0  ;;  %210 = vmatprep.subr.bf16.mxu0 %v376_v5  ;;  %v384_v11 = vld [vmem:[#allocation2 + $0x4c] ss:$12 sps:$4 sm:$0xff]   ;;  %v386_v12 = vld [vmem:[#allocation2 + $0x50] ss:$12 sps:$4 sm:$0xff]   ;;  %v387_v13 = vld [vmem:[#allocation2 + $0x48] ss:$12 sps:$4 sm:$0xff]  }
  0x17   :  { %v388_v14 = vld [vmem:[#allocation2 + $0x64] ss:$12 sps:$4 sm:$0xff]   ;;  %v390_v15 = vld [vmem:[#allocation2 + $0x68] ss:$12 sps:$4 sm:$0xff]   ;;  %v391_v16 = vld [vmem:[#allocation2 + $0x60] ss:$12 sps:$4 sm:$0xff]  }
  0x18   :  { %v392_v17 = vld [vmem:[#allocation2 + $0x7c] ss:$12 sps:$4 sm:$0xff]   ;;  %v394_v18 = vld [vmem:[#allocation2 + $0x80] ss:$12 sps:$4 sm:$0xff]   ;;  %v395_v19 = vld [vmem:[#allocation2 + $0x78] ss:$12 sps:$4 sm:$0xff]  }
  0x19   :  { %349 = vmatpush3.bf16.msra.mxu1 %v378_v6  ;;  %211 = vmatpush1.bf16.msra.mxu0 %v379_v7  ;;  %v396_v20 = vld [vmem:[#allocation2 + $0x94] ss:$12 sps:$4 sm:$0xff]   ;;  %v398_v21 = vld [vmem:[#allocation2 + $0x98] ss:$12 sps:$4 sm:$0xff]   ;;  %v399_v22 = vld [vmem:[#allocation2 + $0x90] ss:$12 sps:$4 sm:$0xff]  }
  0x1a   :  { %350 = vmatprep.subr.bf16.mxu1 %v431_v0  ;;  %212 = vmatprep.subr.bf16.mxu0 %v380_v8  ;;  %v400_v23 = vld [vmem:[#allocation2 + $0xac] ss:$12 sps:$4 sm:$0xff]   ;;  %v402_v24 = vld [vmem:[#allocation2 + $0xb0] ss:$12 sps:$4 sm:$0xff]   ;;  %v403_v26 = vld [vmem:[#allocation2 + $0xa8] ss:$12 sps:$4 sm:$0xff]  }
  0x1b   :  { %v66_v29 = vshrl.u32 %v65_v28, 7  ;;  %v63_v31 = vld [vmem:[%s480_s2] sm:$0x7] }
  0x1d   :  { %351 = vmatpush3.bf16.msra.mxu1 %v382_v9  ;;  %213 = vmatpush1.bf16.msra.mxu0 %v383_v10  ;;  %v75_v30 = vsub.s32 2, %v66_v29  ;;  %v67_v32 = vsub.s32 0, %v66_v29  ;;  %v71_v33 = vsub.s32 1, %v66_v29 }
  0x1e   :  { %352 = vmatprep.subr.bf16.mxu1 %v431_v0  ;;  %214 = vmatprep.subr.bf16.mxu0 %v384_v11 }
  0x1f   :  { %v76_v34 = vrot.slane %v63_v31, %v75_v30  ;;  %v68_v35 = vrot.slane %v63_v31, %v67_v32  ;;  %v72_v36 = vrot.slane %v63_v31, %v71_v33 }
  0x21   :  { %353 = vmatpush3.bf16.msra.mxu1 %v386_v12  ;;  %215 = vmatpush1.bf16.msra.mxu0 %v387_v13 }
  0x22   :  { %354 = vmatprep.subr.bf16.mxu1 %v431_v0  ;;  %216 = vmatprep.subr.bf16.mxu0 %v388_v14 }
  0x25   :  { %355 = vmatpush3.bf16.msra.mxu1 %v390_v15  ;;  %217 = vmatpush1.bf16.msra.mxu0 %v391_v16 }
  0x26   :  { %356 = vmatprep.subr.bf16.mxu1 %v431_v0  ;;  %218 = vmatprep.subr.bf16.mxu0 %v392_v17 }
  0x29   :  { %357 = vmatpush3.bf16.msra.mxu1 %v394_v18  ;;  %219 = vmatpush1.bf16.msra.mxu0 %v395_v19 }
  0x2a   :  { %358 = vmatprep.subr.bf16.mxu1 %v431_v0  ;;  %220 = vmatprep.subr.bf16.mxu0 %v396_v20 }
  0x2d   :  { %359 = vmatpush3.bf16.msra.mxu1 %v398_v21  ;;  %221 = vmatpush1.bf16.msra.mxu0 %v399_v22 }
  0x2e   :  { %360 = vmatprep.subr.bf16.mxu1 %v431_v0  ;;  %222 = vmatprep.subr.bf16.mxu0 %v400_v23 }
  0x31   :  { %361 = vmatpush3.bf16.msra.mxu1 %v402_v24  ;;  %223 = vmatpush1.bf16.msra.mxu0 %v403_v26 }
  0x34   :  { %363 = vmatmul.mubr.bf16.vlgmr.msra.gmra.mrb[0].mxu1 %v30_v27  ;;  %241 = vmatmul.mubr.bf16.vlgmr.msra.gmra.mrb[0].mxu0 %v30_v27 }
 0x107   :  { %v283_v37 = vpop.f32.mrb[0].mxu1  ;;  %v242_v39 = vpop.f32.mrb[0].mxu0 }
 0x108   :  { %v284_v38 = vadd.f32 %v283_v37, %v76_v34  ;;  %v364_v40 = vpop.f32.mrb[1].mxu1  ;;  %v243_v41 = vadd.f32 %v242_v39, %v68_v35  ;;  %v244_v42 = vpop.f32.mrb[1].mxu0 }
 0x109   :  { %v286_v43 = vpop.f32.mrb[2].mxu1  ;;  %v245_v45 = vadd.f32 %v244_v42, %v72_v36  ;;  %v246_v46 = vpop.f32.mrb[2].mxu0 }
 0x10a   :  { %v336_v44 = vpack.c.bf16 %v284_v38, %v284_v38  ;;  %v365_v47 = vpop.f32.mrb[3].mxu1  ;;  %v247_v48 = vpop.f32.mrb[3].mxu0 }
 0x10b   :  { %v335_v49 = vpack.c.bf16 %v245_v45, %v243_v41 }
 0x10c   :  { %303 = vst [vmem:[%s481_s3 + $0x8] sm:$0xf] %v336_v44 }
 0x10d   :  { %302 = vst [vmem:[%s481_s3] sm:$0xff] %v335_v49 }
 0x10e   :  { %308 = vsyncpa [#allocation3], 1 }

// kernel: transzero_forward.21
= control target key start
LH: loop header
LB: loop body
LE: loop exit
PB: predicated region body
PF: predicated region fallthrough
CT: control target
= control target key end

     0   :  { %vm60_vm0 = vcmask 523264   ;;  %s212_s1 = inlined_call_operand.vmem [shape: bf16[64,128], index: 1, kind: input, shape index: {}]   ;;  %s213_s0 = inlined_call_operand.vmem [shape: f32[32,64], index: 0, kind: input, shape index: {}]   ;;  %s214_s2 = inlined_call_operand.vmem [shape: f32[1,128], index: 2, kind: input, shape index: {}]   ;;  %s215_s3 = inlined_call_operand.vmem [shape: f32[32,128], index: 3, kind: output, shape index: {}]  }
   0x1   :  { %v149_v0 = vld [vmem:[%s212_s1] sm:$0xff]   ;;  %v150_v1 = vld [vmem:[%s212_s1 + $0x8] sm:$0xff]   ;;  %v151_v2 = vld [vmem:[%s212_s1 + $0x10] sm:$0xff]  }
   0x2   :  { %137 = vmatprep.subr.bf16.mxu0 %v149_v0  ;;  %v15_v3 = vld [vmem:[%s213_s0] sm:$0xff]  ;;  %v16_v4 = vld [vmem:[%s213_s0 + $0x8] sm:$0xff]  ;;  %v152_v6 = vld [vmem:[%s212_s1 + $0x18] sm:$0xff]  }
   0x3   :  { %138 = vmatpush3.bf16.msra.mxu0 %v149_v0  ;;  %v19_v5 = vpack.c.bf16 %v16_v4, %v15_v3  ;;  %v17_v7 = vld [vmem:[%s213_s0 + $0x10] sm:$0xff]  ;;  %v18_v8 = vld [vmem:[%s213_s0 + $0x18] sm:$0xff]  ;;  %v124_v10 = vld [vmem:[%s214_s2] ss:$0 sm:$0xff] }
   0x4   :  { %139 = vmatprep.subr.bf16.mxu0 %v150_v1  ;;  %v20_v9 = vpack.c.bf16 %v18_v8, %v17_v7 }
   0x5   :  { %145 = vmatprep.mubr.msk.bf16.mxu0 %vm60_vm0, %v19_v5 }
   0x7   :  { %140 = vmatpush3.bf16.msra.mxu0 %v150_v1 }
   0x8   :  { %141 = vmatprep.subr.bf16.mxu0 %v151_v2 }
   0xb   :  { %142 = vmatpush3.bf16.msra.mxu0 %v151_v2 }
   0xc   :  { %143 = vmatprep.subr.bf16.mxu0 %v152_v6 }
   0xf   :  { %144 = vmatpush3.bf16.msra.mxu0 %v152_v6 }
  0x12   :  { %146 = vmatmul.mubr.msk.bf16.vlgmr.msra.gmra.mrb[0].mxu0 %vm60_vm0, %v20_v9 }
  0xe5   :  { %v147_v11 = vpop.f32.mrb[0].mxu0 }
  0xe6   :  { %v110_v12 = vadd.f32 %v147_v11, %v124_v10  ;;  %v101_v13 = vpop.f32.mrb[1].mxu0 }
  0xe7   :  { %v102_v14 = vadd.f32 %v124_v10, %v101_v13  ;;  %v148_v15 = vpop.f32.mrb[2].mxu0 }
  0xe8   :  { %118 = vst [vmem:[%s215_s3 + $0x10] sm:$0xff] %v110_v12  ;;  %v113_v16 = vadd.f32 %v148_v15, %v124_v10  ;;  %v104_v17 = vpop.f32.mrb[3].mxu0 }
  0xe9   :  { %116 = vst [vmem:[%s215_s3] sm:$0xff] %v102_v14  ;;  %v105_v18 = vadd.f32 %v124_v10, %v104_v17 }
  0xea   :  { %119 = vst [vmem:[%s215_s3 + $0x18] sm:$0xff] %v113_v16 }
  0xeb   :  { %117 = vst [vmem:[%s215_s3 + $0x8] sm:$0xff] %v105_v18 }

// kernel: transzero_forward.19
= control target key start
LH: loop header
LB: loop body
LE: loop exit
PB: predicated region body
PF: predicated region fallthrough
CT: control target
= control target key end

     0   :  { %vm16_vm0 = vcmask 523264   ;;  %s99_s0 = inlined_call_operand.vmem [shape: f32[32,64], index: 0, kind: input, shape index: {}]   ;;  %s100_s1 = inlined_call_operand.vmem [shape: f32[32,64], index: 1, kind: output, shape index: {}]  }
   0x1   :  { %v10_v0 = vld [vmem:[%s99_s0 + $0x10] sm:$0xff]  ;;  %v8_v1 = vld [vmem:[%s99_s0] sm:$0xff]  ;;  %v11_v2 = vld [vmem:[%s99_s0 + $0x18] sm:$0xff] }
   0x2   :  { %v14_v3 = vmul.f32 %v10_v0, %v10_v0  ;;  %v12_v4 = vmul.f32 %v8_v1, %v8_v1  ;;  %v15_v5 = vmul.f32 %v11_v2, %v11_v2  ;;  %v9_v6 = vld [vmem:[%s99_s0 + $0x8] sm:$0xff] }
   0x3   :  { %v13_v7 = vmul.f32 %v9_v6, %v9_v6 }
   0x4   :  { %v23_v8 = vsel %vm16_vm0, %v14_v3, 0.0  ;;  %v17_v9 = vsel %vm16_vm0, %v12_v4, 0.0  ;;  %v26_v10 = vsel %vm16_vm0, %v15_v5, 0.0 }
   0x5   :  { %24 = vadd.xlane.f32.xlu1 %v23_v8  ;;  %18 = vadd.xlane.f32.xlu0 %v17_v9  ;;  %v20_v11 = vsel %vm16_vm0, %v13_v7, 0.0 }
   0x9   :  { %27 = vadd.xlane.f32.xlu1 %v26_v10  ;;  %21 = vadd.xlane.f32.xlu0 %v20_v11 }
  0x92   :  { %v25_v12 = vpop.xlane.xlu1 %24  ;;  %v19_v13 = vpop.xlane.xlu0 %18 }
  0x93   :  { %v31_v14 = vmax.f32 %v25_v12, 1e-24  ;;  %v29_v15 = vmax.f32 %v19_v13, 1e-24 }
  0x95   :  { %49 = vrsqrt.f32 %v31_v14 }
  0x96   :  { %51 = vrsqrt.f32 %v29_v15  ;;  %v28_v16 = vpop.xlane.xlu1 %27  ;;  %v22_v17 = vpop.xlane.xlu0 %21 }
  0x97   :  { %v32_v18 = vmax.f32 %v28_v16, 1e-24  ;;  %v30_v19 = vmax.f32 %v22_v17, 1e-24 }
  0x99   :  { %53 = vrsqrt.f32 %v32_v18 }
  0x9a   :  { %55 = vrsqrt.f32 %v30_v19 }
  0x9f   :  { %v50_v20 = vpop.eup %49 }
  0xa0   :  { %v52_v21 = vpop.eup %51  ;;  %v39_v22 = vmul.f32 %v50_v20, %v10_v0 }
  0xa1   :  { %v37_v23 = vmul.f32 %v52_v21, %v8_v1 }
  0xa2   :  { %43 = vst.msk [vmem:[%s100_s1 + $0x10] sm:$0xff] %vm16_vm0, %v39_v22 }
  0xa3   :  { %v54_v24 = vpop.eup %53  ;;  %41 = vst.msk [vmem:[%s100_s1] sm:$0xff] %vm16_vm0, %v37_v23 }
  0xa4   :  { %v56_v25 = vpop.eup %55  ;;  %v40_v26 = vmul.f32 %v54_v24, %v11_v2 }
  0xa5   :  { %v38_v27 = vmul.f32 %v56_v25, %v9_v6 }
  0xa6   :  { %44 = vst.msk [vmem:[%s100_s1 + $0x18] sm:$0xff] %vm16_vm0, %v40_v26 }
  0xa7   :  { %42 = vst.msk [vmem:[%s100_s1 + $0x8] sm:$0xff] %vm16_vm0, %v38_v27 }

// kernel: transzero_forward.24
= control target key start
LH: loop header
LB: loop body
LE: loop exit
PB: predicated region body
PF: predicated region fallthrough
CT: control target
= control target key end

     0   :  { %v455_v1 = vmov 0   ;;  %v55_v31 = vlaneseq  ;;  %s589_s1 = inlined_call_operand.vmem [shape: bf16[128,384], index: 1, kind: input, shape index: {}]   ;;  %s590_s0 = inlined_call_operand.vmem [shape: f32[32,128], index: 0, kind: input, shape index: {}]   ;;  %s591_s2 = inlined_call_operand.vmem [shape: f32[1,384], index: 2, kind: input, shape index: {}]   ;;  %s592_s3 = inlined_call_operand.vmem [shape: bf16[32,384], index: 3, kind: output, shape index: {}]  }
   0x1   :  { %v423_v0 = vld [vmem:[%s589_s1 + $0x4] ss:$12 sps:$4 sm:$0xff]   ;;  %230 = vmatprep.mubr.bf16.mxu0 %v455_v1  ;;  %v425_v2 = vld [vmem:[%s589_s1] ss:$12 sps:$4 sm:$0xff]   ;;  %v426_v3 = vld [vmem:[%s589_s1 + $0x1c] ss:$12 sps:$4 sm:$0xff]  }
   0x2   :  { %198 = vmatprep.subr.bf16.mxu0 %v423_v0  ;;  %v428_v4 = vld [vmem:[%s589_s1 + $0x18] ss:$12 sps:$4 sm:$0xff]   ;;  %v429_v5 = vld [vmem:[%s589_s1 + $0x8] ss:$12 sps:$4 sm:$0xff]   ;;  %v433_v7 = vld [vmem:[%s589_s1 + $0x20] ss:$12 sps:$4 sm:$0xff]  }
   0x3   :  { %199 = vmatpush1.bf16.msra.mxu0 %v425_v2  ;;  %v430_v6 = vld [vmem:[%s589_s1 + $0x34] ss:$12 sps:$4 sm:$0xff]   ;;  %402 = vmatprep.subr.bf16.mxu1 %v429_v5  ;;  %v432_v8 = vld [vmem:[%s589_s1 + $0x30] ss:$12 sps:$4 sm:$0xff]   ;;  %v434_v9 = vld [vmem:[%s589_s1 + $0x4c] ss:$12 sps:$4 sm:$0xff]  }
   0x4   :  { %200 = vmatprep.subr.bf16.mxu0 %v426_v3  ;;  %403 = vmatpush3.bf16.msra.mxu1 %v429_v5  ;;  %v437_v10 = vld [vmem:[%s589_s1 + $0x38] ss:$12 sps:$4 sm:$0xff]   ;;  %v436_v11 = vld [vmem:[%s589_s1 + $0x48] ss:$12 sps:$4 sm:$0xff]   ;;  %v441_v12 = vld [vmem:[%s589_s1 + $0x50] ss:$12 sps:$4 sm:$0xff]  }
   0x5   :  { %404 = vmatprep.subr.bf16.mxu1 %v433_v7  ;;  %v438_v13 = vld [vmem:[%s589_s1 + $0x64] ss:$12 sps:$4 sm:$0xff]   ;;  %v440_v14 = vld [vmem:[%s589_s1 + $0x60] ss:$12 sps:$4 sm:$0xff]   ;;  %v445_v15 = vld [vmem:[%s589_s1 + $0x68] ss:$12 sps:$4 sm:$0xff]  }
   0x6   :  { %v442_v16 = vld [vmem:[%s589_s1 + $0x7c] ss:$12 sps:$4 sm:$0xff]   ;;  %v15_v17 = vld [vmem:[%s590_s0] sm:$0xff]  ;;  %v450_v25 = vld [vmem:[%s589_s1 + $0xac] ss:$12 sps:$4 sm:$0xff]   ;;  %v56_v32 = vshrl.u32 %v55_v31, 7 }
   0x7   :  { %201 = vmatpush1.bf16.msra.mxu0 %v428_v4  ;;  %v16_v18 = vld [vmem:[%s590_s0 + $0x8] sm:$0xff]  ;;  %v444_v19 = vld [vmem:[%s589_s1 + $0x78] ss:$12 sps:$4 sm:$0xff]   ;;  %v446_v22 = vld [vmem:[%s589_s1 + $0x94] ss:$12 sps:$4 sm:$0xff]  }
   0x8   :  { %202 = vmatprep.subr.bf16.mxu0 %v430_v6  ;;  %405 = vmatpush3.bf16.msra.mxu1 %v433_v7  ;;  %v449_v20 = vld [vmem:[%s589_s1 + $0x80] ss:$12 sps:$4 sm:$0xff]   ;;  %v19_v21 = vpack.c.bf16 %v16_v18, %v15_v17  ;;  %v448_v23 = vld [vmem:[%s589_s1 + $0x90] ss:$12 sps:$4 sm:$0xff]   ;;  %v453_v24 = vld [vmem:[%s589_s1 + $0x98] ss:$12 sps:$4 sm:$0xff]  }
   0x9   :  { %406 = vmatprep.subr.bf16.mxu1 %v437_v10  ;;  %v452_v26 = vld [vmem:[%s589_s1 + $0xa8] ss:$12 sps:$4 sm:$0xff]   ;;  %v454_v27 = vld [vmem:[%s589_s1 + $0xb0] ss:$12 sps:$4 sm:$0xff]   ;;  %v57_v33 = vsub.s32 0, %v56_v32  ;;  %v61_v35 = vsub.s32 1, %v56_v32 }
   0xa   :  { %418 = vmatprep.mubr.bf16.mxu1 %v19_v21  ;;  %v17_v28 = vld [vmem:[%s590_s0 + $0x10] sm:$0xff]  ;;  %v18_v29 = vld [vmem:[%s590_s0 + $0x18] sm:$0xff]  ;;  %v53_v34 = vld [vmem:[%s591_s2] sm:$0x7]  ;;  %v65_v36 = vsub.s32 2, %v56_v32 }
   0xb   :  { %203 = vmatpush1.bf16.msra.mxu0 %v432_v8  ;;  %v20_v30 = vpack.c.bf16 %v18_v29, %v17_v28  ;;  %v58_v37 = vrot.slane %v53_v34, %v57_v33  ;;  %v62_v38 = vrot.slane %v53_v34, %v61_v35 }
   0xc   :  { %204 = vmatprep.subr.bf16.mxu0 %v434_v9  ;;  %407 = vmatpush3.bf16.msra.mxu1 %v437_v10  ;;  %v66_v40 = vrot.slane %v53_v34, %v65_v36 }
   0xd   :  { %408 = vmatprep.subr.bf16.mxu1 %v441_v12 }
   0xf   :  { %205 = vmatpush1.bf16.msra.mxu0 %v436_v11 }
  0x10   :  { %206 = vmatprep.subr.bf16.mxu0 %v438_v13  ;;  %409 = vmatpush3.bf16.msra.mxu1 %v441_v12 }
  0x11   :  { %410 = vmatprep.subr.bf16.mxu1 %v445_v15 }
  0x13   :  { %207 = vmatpush1.bf16.msra.mxu0 %v440_v14 }
  0x14   :  { %208 = vmatprep.subr.bf16.mxu0 %v442_v16  ;;  %411 = vmatpush3.bf16.msra.mxu1 %v445_v15 }
  0x15   :  { %412 = vmatprep.subr.bf16.mxu1 %v449_v20 }
  0x17   :  { %209 = vmatpush1.bf16.msra.mxu0 %v444_v19 }
  0x18   :  { %210 = vmatprep.subr.bf16.mxu0 %v446_v22  ;;  %413 = vmatpush3.bf16.msra.mxu1 %v449_v20 }
  0x19   :  { %414 = vmatprep.subr.bf16.mxu1 %v453_v24 }
  0x1b   :  { %211 = vmatpush1.bf16.msra.mxu0 %v448_v23 }
  0x1c   :  { %212 = vmatprep.subr.bf16.mxu0 %v450_v25  ;;  %415 = vmatpush3.bf16.msra.mxu1 %v453_v24 }
  0x1d   :  { %416 = vmatprep.subr.bf16.mxu1 %v454_v27 }
  0x1f   :  { %213 = vmatpush1.bf16.msra.mxu0 %v452_v26 }
  0x20   :  { %417 = vmatpush3.bf16.msra.mxu1 %v454_v27 }
  0x22   :  { %231 = vmatmul.mubr.bf16.vlgmr.msra.gmra.mrb[0].mxu0 %v19_v21 }
  0x23   :  { %240 = vmatprep.mubr.bf16.mxu0 %v455_v1  ;;  %419 = vmatmul.mubr.bf16.vlgmr.msra.gmra.mrb[0].mxu1 %v20_v30 }
  0x2a   :  { %241 = vmatmul.mubr.bf16.gmra.mrb[4].mxu0 %v20_v30 }
  0xf5   :  { %v232_v39 = vpop.f32.mrb[0].mxu0 }
  0xf6   :  { %v233_v41 = vadd.f32 %v232_v39, %v58_v37  ;;  %v234_v42 = vpop.f32.mrb[1].mxu0  ;;  %v420_v47 = vpop.f32.mrb[0].mxu1 }
  0xf7   :  { %v235_v43 = vadd.f32 %v234_v42, %v62_v38  ;;  %v236_v44 = vpop.f32.mrb[2].mxu0  ;;  %v294_v50 = vadd.f32 %v420_v47, %v66_v40  ;;  %v285_v51 = vpop.f32.mrb[1].mxu1 }
  0xf8   :  { %v237_v45 = vadd.f32 %v236_v44, %v58_v37  ;;  %v238_v46 = vpop.f32.mrb[3].mxu0  ;;  %v286_v52 = vadd.f32 %v285_v51, %v66_v40  ;;  %v421_v53 = vpop.f32.mrb[2].mxu1 }
  0xf9   :  { %v384_v48 = vpack.c.bf16 %v235_v43, %v233_v41  ;;  %v239_v49 = vadd.f32 %v238_v46, %v62_v38  ;;  %v389_v55 = vpack.c.bf16 %v294_v50, %v294_v50  ;;  %v297_v56 = vadd.f32 %v421_v53, %v66_v40  ;;  %v288_v57 = vpop.f32.mrb[3].mxu1 }
  0xfa   :  { %v385_v58 = vpack.c.bf16 %v286_v52, %v286_v52  ;;  %v289_v59 = vadd.f32 %v288_v57, %v66_v40 }
  0xfb   :  { %340 = vst [vmem:[%s592_s3] sm:$0xff] %v384_v48  ;;  %v386_v54 = vpack.c.bf16 %v239_v49, %v237_v45  ;;  %345 = vst [vmem:[%s592_s3 + $0x20] sm:$0xf] %v389_v55  ;;  %v391_v60 = vpack.c.bf16 %v297_v56, %v297_v56 }
  0xfc   :  { %341 = vst [vmem:[%s592_s3 + $0x8] sm:$0xf] %v385_v58  ;;  %v387_v63 = vpack.c.bf16 %v289_v59, %v289_v59 }
  0xfd   :  { %342 = vst [vmem:[%s592_s3 + $0xc] sm:$0xff] %v386_v54  ;;  %v242_v61 = vpop.f32.mrb[4].mxu0  ;;  %347 = vst [vmem:[%s592_s3 + $0x2c] sm:$0xf] %v391_v60 }
  0xfe   :  { %v243_v62 = vadd.f32 %v242_v61, %v58_v37  ;;  %v244_v0 = vpop.f32.mrb[5].mxu0  ;;  %343 = vst [vmem:[%s592_s3 + $0x14] sm:$0xf] %v387_v63 }
  0xff   :  { %v245_v1 = vadd.f32 %v244_v0, %v62_v38  ;;  %v246_v2 = vpop.f32.mrb[6].mxu0 }
 0x100   :  { %v247_v3 = vadd.f32 %v246_v2, %v58_v37  ;;  %v248_v4 = vpop.f32.mrb[7].mxu0 }
 0x101   :  { %v388_v5 = vpack.c.bf16 %v245_v1, %v243_v62  ;;  %v249_v6 = vadd.f32 %v248_v4, %v62_v38 }
 0x103   :  { %344 = vst [vmem:[%s592_s3 + $0x18] sm:$0xff] %v388_v5  ;;  %v390_v7 = vpack.c.bf16 %v249_v6, %v247_v3 }
 0x105   :  { %346 = vst [vmem:[%s592_s3 + $0x24] sm:$0xff] %v390_v7 }

// kernel: transzero_forward.23
= control target key start
LH: loop header
LB: loop body
LE: loop exit
PB: predicated region body
PF: predicated region fallthrough
CT: control target
= control target key end

     0   :  { %vm87_vm0 = vcmask 523264   ;;  %v472_v3 = vmov 0   ;;  %vm301_vm1 = vcmask 130112   ;;  %vm438_vm2 = vcmask 1041409   ;;  %s807_s0 = inlined_call_operand.vmem [shape: f32[16,16,64], index: 0, kind: input, shape index: {}]   ;;  %s808_s1 = inlined_call_operand.vmem [shape: f32[1,64], index: 1, kind: input, shape index: {}]   ;;  %s809_s2 = inlined_call_operand.<no memory space> [shape: f32[1,1], index: 2, kind: input, shape index: {}]   ;;  %s810_s3 = inlined_call_operand.vmem [shape: f32[16,16], index: 3, kind: output, shape index: {}]  }
   0x1   :  { %v16_v0 = vld [vmem:[%s807_s0] sm:$0xff]  ;;  %v17_v2 = vld [vmem:[%s807_s0 + $0x8] sm:$0xff]  ;;  %471 = vset.pattern.permute.xlu0 %v472_v3  ;;  %v8_v4 = vstv %s809_s2  ;;  %v18_v7 = vld [vmem:[%s807_s0 + $0x10] sm:$0xff]  ;;  %vm440_vm3 = vcmask 1042434   ;;  %vm442_vm4 = vcmask 1043459   ;;  %vm444_vm5 = vcmask 1044484  }
   0x2   :  { %v499_v1 = vld [vmem:[%s808_s1] ss:$0 sm:$0xff]  ;;  %v19_v8 = vld [vmem:[%s807_s0 + $0x18] sm:$0xff]  ;;  %9 = vst [vmem:[#allocation2] sm:$0x1] %v8_v4  ;;  %v33_v13 = vld [vmem:[%s807_s0 + $0x88] sm:$0xff] }
   0x3   :  { %v55_v5 = vmul.f32 %v499_v1, %v16_v0  ;;  %v56_v6 = vmul.f32 %v499_v1, %v17_v2  ;;  %v57_v9 = vmul.f32 %v499_v1, %v18_v7  ;;  %v32_v10 = vld [vmem:[%s807_s0 + $0x80] sm:$0xff]  ;;  %v58_v11 = vmul.f32 %v499_v1, %v19_v8  ;;  %v34_v18 = vld [vmem:[%s807_s0 + $0x90] sm:$0xff]  ;;  %v35_v20 = vld [vmem:[%s807_s0 + $0x98] sm:$0xff] }
   0x4   :  { %v71_v16 = vmul.f32 %v499_v1, %v32_v10  ;;  %v72_v19 = vmul.f32 %v499_v1, %v33_v13  ;;  %v73_v22 = vmul.f32 %v499_v1, %v34_v18  ;;  %v20_v24 = vld [vmem:[%s807_s0 + $0x20] sm:$0xff]  ;;  %v74_v25 = vmul.f32 %v499_v1, %v35_v20  ;;  %v21_v26 = vld [vmem:[%s807_s0 + $0x28] sm:$0xff]  ;;  %v22_v36 = vld [vmem:[%s807_s0 + $0x30] sm:$0xff] }
   0x5   :  { %v88_v12 = vsel %vm87_vm0, %v55_v5, 0.0  ;;  %v94_v14 = vsel %vm87_vm0, %v57_v9, 0.0  ;;  %v91_v15 = vsel %vm87_vm0, %v56_v6, 0.0  ;;  %v97_v17 = vsel %vm87_vm0, %v58_v11, 0.0  ;;  %v36_v30 = vld [vmem:[%s807_s0 + $0xa0] sm:$0xff]  ;;  %v37_v32 = vld [vmem:[%s807_s0 + $0xa8] sm:$0xff] }
   0x6   :  { %89 = vadd.xlane.f32.xlu0 %v88_v12  ;;  %95 = vadd.xlane.f32.xlu1 %v94_v14  ;;  %v136_v21 = vsel %vm87_vm0, %v71_v16, 0.0  ;;  %v139_v23 = vsel %vm87_vm0, %v72_v19, 0.0  ;;  %v142_v27 = vsel %vm87_vm0, %v73_v22, 0.0  ;;  %v59_v28 = vmul.f32 %v499_v1, %v20_v24  ;;  %v23_v38 = vld [vmem:[%s807_s0 + $0x38] sm:$0xff]  ;;  %v38_v42 = vld [vmem:[%s807_s0 + $0xb0] sm:$0xff]  ;;  %v24_v48 = vld [vmem:[%s807_s0 + $0x40] sm:$0xff] }
   0x7   :  { %v145_v29 = vsel %vm87_vm0, %v74_v25, 0.0  ;;  %v60_v31 = vmul.f32 %v499_v1, %v21_v26  ;;  %v75_v34 = vmul.f32 %v499_v1, %v36_v30  ;;  %v76_v37 = vmul.f32 %v499_v1, %v37_v32  ;;  %v39_v44 = vld [vmem:[%s807_s0 + $0xb8] sm:$0xff]  ;;  %v25_v50 = vld [vmem:[%s807_s0 + $0x48] sm:$0xff]  ;;  %v40_v54 = vld [vmem:[%s807_s0 + $0xc0] sm:$0xff] }
   0x8   :  { %v100_v33 = vsel %vm87_vm0, %v59_v28, 0.0  ;;  %v61_v40 = vmul.f32 %v499_v1, %v22_v36  ;;  %v62_v43 = vmul.f32 %v499_v1, %v23_v38  ;;  %v77_v46 = vmul.f32 %v499_v1, %v38_v42  ;;  %v41_v56 = vld [vmem:[%s807_s0 + $0xc8] sm:$0xff]  ;;  %v26_v60 = vld [vmem:[%s807_s0 + $0x50] sm:$0xff]  ;;  %v27_v62 = vld [vmem:[%s807_s0 + $0x58] sm:$0xff] }
   0x9   :  { %v103_v35 = vsel %vm87_vm0, %v60_v31, 0.0  ;;  %v148_v39 = vsel %vm87_vm0, %v75_v34, 0.0  ;;  %v151_v41 = vsel %vm87_vm0, %v76_v37, 0.0  ;;  %v78_v49 = vmul.f32 %v499_v1, %v39_v44  ;;  %v42_v3 = vld [vmem:[%s807_s0 + $0xd0] sm:$0xff]  ;;  %v43_v5 = vld [vmem:[%s807_s0 + $0xd8] sm:$0xff]  ;;  %v28_v9 = vld [vmem:[%s807_s0 + $0x60] sm:$0xff] }
   0xa   :  { %92 = vadd.xlane.f32.xlu0 %v91_v15  ;;  %98 = vadd.xlane.f32.xlu1 %v97_v17  ;;  %v106_v45 = vsel %vm87_vm0, %v61_v40, 0.0  ;;  %v109_v47 = vsel %vm87_vm0, %v62_v43, 0.0  ;;  %v154_v51 = vsel %vm87_vm0, %v77_v46, 0.0  ;;  %v63_v52 = vmul.f32 %v499_v1, %v24_v48  ;;  %v29_v11 = vld [vmem:[%s807_s0 + $0x68] sm:$0xff]  ;;  %v44_v15 = vld [vmem:[%s807_s0 + $0xe0] sm:$0xff] }
   0xb   :  { %v157_v53 = vsel %vm87_vm0, %v78_v49, 0.0  ;;  %v64_v55 = vmul.f32 %v499_v1, %v25_v50  ;;  %v79_v58 = vmul.f32 %v499_v1, %v40_v54  ;;  %v80_v61 = vmul.f32 %v499_v1, %v41_v56  ;;  %v45_v17 = vld [vmem:[%s807_s0 + $0xe8] sm:$0xff]  ;;  %v469_v36 = vld [vmem:[#allocation2] ss:$0 sm:$0xff] }
   0xc   :  { %v112_v57 = vsel %vm87_vm0, %v63_v52, 0.0  ;;  %v65_v0 = vmul.f32 %v499_v1, %v26_v60  ;;  %v66_v4 = vmul.f32 %v499_v1, %v27_v62  ;;  %v81_v7 = vmul.f32 %v499_v1, %v42_v3 }
   0xd   :  { %v115_v59 = vsel %vm87_vm0, %v64_v55, 0.0  ;;  %v160_v63 = vsel %vm87_vm0, %v79_v58, 0.0  ;;  %v163_v2 = vsel %vm87_vm0, %v80_v61, 0.0  ;;  %v82_v10 = vmul.f32 %v499_v1, %v43_v5 }
   0xe   :  { %137 = vadd.xlane.f32.xlu0 %v136_v21  ;;  %140 = vadd.xlane.f32.xlu1 %v139_v23  ;;  %v118_v6 = vsel %vm87_vm0, %v65_v0, 0.0  ;;  %v121_v8 = vsel %vm87_vm0, %v66_v4, 0.0  ;;  %v166_v12 = vsel %vm87_vm0, %v81_v7, 0.0  ;;  %v67_v13 = vmul.f32 %v499_v1, %v28_v9  ;;  %v30_v21 = vld [vmem:[%s807_s0 + $0x70] sm:$0xff]  ;;  %v31_v23 = vld [vmem:[%s807_s0 + $0x78] sm:$0xff] }
   0xf   :  { %v169_v14 = vsel %vm87_vm0, %v82_v10, 0.0  ;;  %v68_v16 = vmul.f32 %v499_v1, %v29_v11  ;;  %v83_v19 = vmul.f32 %v499_v1, %v44_v15  ;;  %v84_v22 = vmul.f32 %v499_v1, %v45_v17 }
  0x10   :  { %v124_v18 = vsel %vm87_vm0, %v67_v13, 0.0  ;;  %v69_v25 = vmul.f32 %v499_v1, %v30_v21  ;;  %v70_v28 = vmul.f32 %v499_v1, %v31_v23  ;;  %v290_v0 = vlaneseq }
  0x11   :  { %v127_v20 = vsel %vm87_vm0, %v68_v16, 0.0  ;;  %v172_v24 = vsel %vm87_vm0, %v83_v19, 0.0  ;;  %v175_v26 = vsel %vm87_vm0, %v84_v22, 0.0  ;;  %vm446_vm6 = vcmask 1045509  }
  0x12   :  { %143 = vadd.xlane.f32.xlu0 %v142_v27  ;;  %146 = vadd.xlane.f32.xlu1 %v145_v29  ;;  %v46_v27 = vld [vmem:[%s807_s0 + $0xf0] sm:$0xff]  ;;  %v47_v29 = vld [vmem:[%s807_s0 + $0xf8] sm:$0xff]  ;;  %v130_v30 = vsel %vm87_vm0, %v69_v25, 0.0  ;;  %v133_v32 = vsel %vm87_vm0, %v70_v28, 0.0  ;;  %v293_v5 = vshrl.u32 %v290_v0, 7  ;;  %vm448_vm7 = vcmask 1046534  }
  0x13   :  { %v85_v31 = vmul.f32 %v499_v1, %v46_v27  ;;  %vm450_vm8 = vcmask 1047559   ;;  %vm461_vm9 = vcmask 130048  }
  0x15   :  { %v178_v34 = vsel %vm87_vm0, %v85_v31, 0.0 }
  0x16   :  { %101 = vadd.xlane.f32.xlu0 %v100_v33  ;;  %104 = vadd.xlane.f32.xlu1 %v103_v35  ;;  %v86_v33 = vmul.f32 %v499_v1, %v47_v29 }
  0x18   :  { %v181_v35 = vsel %vm87_vm0, %v86_v33, 0.0 }
  0x1a   :  { %149 = vadd.xlane.f32.xlu0 %v148_v39  ;;  %152 = vadd.xlane.f32.xlu1 %v151_v41 }
  0x1e   :  { %107 = vadd.xlane.f32.xlu0 %v106_v45  ;;  %110 = vadd.xlane.f32.xlu1 %v109_v47 }
  0x22   :  { %155 = vadd.xlane.f32.xlu0 %v154_v51  ;;  %158 = vadd.xlane.f32.xlu1 %v157_v53 }
  0x26   :  { %113 = vadd.xlane.f32.xlu0 %v112_v57  ;;  %116 = vadd.xlane.f32.xlu1 %v115_v59 }
  0x2a   :  { %161 = vadd.xlane.f32.xlu0 %v160_v63  ;;  %164 = vadd.xlane.f32.xlu1 %v163_v2  ;;  %v291_v2 = vand.u32 127, %v290_v0 }
  0x2c   :  { %v661_v9 = vsub.s32 %v291_v2, %v293_v5 }
  0x2e   :  { %119 = vadd.xlane.f32.xlu0 %v118_v6  ;;  %122 = vadd.xlane.f32.xlu1 %v121_v8  ;;  %v296_v6 = vadd.s32 4294967288, %v291_v2 }
  0x30   :  { %v663_v10 = vsub.s32 %v296_v6, %v293_v5 }
  0x32   :  { %167 = vadd.xlane.f32.xlu0 %v166_v12  ;;  %170 = vadd.xlane.f32.xlu1 %v169_v14 }
  0x36   :  { %125 = vadd.xlane.f32.xlu0 %v124_v18  ;;  %128 = vadd.xlane.f32.xlu1 %v127_v20 }
  0x3a   :  { %173 = vadd.xlane.f32.xlu0 %v172_v24  ;;  %176 = vadd.xlane.f32.xlu1 %v175_v26 }
  0x3e   :  { %131 = vadd.xlane.f32.xlu0 %v130_v30  ;;  %134 = vadd.xlane.f32.xlu1 %v133_v32 }
  0x42   :  { %179 = vadd.xlane.f32.xlu0 %v178_v34  ;;  %182 = vadd.xlane.f32.xlu1 %v181_v35 }
  0x58   :  { %191 = vperm.xlu0 %471, %v469_v36  }
  0x93   :  { %v90_v37 = vpop.xlane.xlu0 %89  ;;  %v96_v38 = vpop.xlane.xlu1 %95 }
  0x97   :  { %v93_v39 = vpop.xlane.xlu0 %92  ;;  %v99_v40 = vpop.xlane.xlu1 %98 }
  0x9b   :  { %v138_v41 = vpop.xlane.xlu0 %137  ;;  %v141_v42 = vpop.xlane.xlu1 %140 }
  0x9f   :  { %v144_v43 = vpop.xlane.xlu0 %143  ;;  %v147_v44 = vpop.xlane.xlu1 %146 }
  0xa3   :  { %v102_v45 = vpop.xlane.xlu0 %101  ;;  %v105_v1 = vpop.xlane.xlu1 %104 }
  0xa7   :  { %v150_v46 = vpop.xlane.xlu0 %149  ;;  %v153_v47 = vpop.xlane.xlu1 %152 }
  0xab   :  { %v108_v48 = vpop.xlane.xlu0 %107  ;;  %v111_v49 = vpop.xlane.xlu1 %110 }
  0xaf   :  { %v156_v50 = vpop.xlane.xlu0 %155  ;;  %v159_v51 = vpop.xlane.xlu1 %158 }
  0xb3   :  { %v114_v52 = vpop.xlane.xlu0 %113  ;;  %v117_v53 = vpop.xlane.xlu1 %116 }
  0xb7   :  { %v162_v54 = vpop.xlane.xlu0 %161  ;;  %v165_v55 = vpop.xlane.xlu1 %164 }
  0xbb   :  { %v120_v56 = vpop.xlane.xlu0 %119  ;;  %v123_v58 = vpop.xlane.xlu1 %122 }
  0xbf   :  { %v168_v57 = vpop.xlane.xlu0 %167  ;;  %v171_v60 = vpop.xlane.xlu1 %170 }
  0xc3   :  { %v126_v59 = vpop.xlane.xlu0 %125  ;;  %v129_v62 = vpop.xlane.xlu1 %128 }
  0xc7   :  { %v174_v61 = vpop.xlane.xlu0 %173  ;;  %v177_v3 = vpop.xlane.xlu1 %176 }
  0xcb   :  { %v132_v63 = vpop.xlane.xlu0 %131  ;;  %v135_v8 = vpop.xlane.xlu1 %134 }
  0xcf   :  { %v180_v4 = vpop.xlane.xlu0 %179  ;;  %v183_v27 = vpop.xlane.xlu1 %182 }
  0xd7   :  { %v192_v7 = vpop.permute.xlu0 %191 }
  0xd8   :  { %v194_v11 = vadd.f32 %v192_v7, %v90_v37  ;;  %v195_v12 = vadd.f32 %v192_v7, %v93_v39  ;;  %v196_v13 = vadd.f32 %v192_v7, %v96_v38  ;;  %v197_v14 = vadd.f32 %v192_v7, %v99_v40 }
  0xd9   :  { %v198_v15 = vadd.f32 %v192_v7, %v102_v45  ;;  %v199_v16 = vadd.f32 %v192_v7, %v105_v1  ;;  %v200_v17 = vadd.f32 %v192_v7, %v108_v48  ;;  %v201_v18 = vadd.f32 %v192_v7, %v111_v49 }
  0xda   :  { %v665_v19 = vadd.f32 %v192_v7, %v114_v52  ;;  %v667_v20 = vadd.f32 %v192_v7, %v117_v53  ;;  %v669_v21 = vadd.f32 %v192_v7, %v120_v56  ;;  %v671_v22 = vadd.f32 %v192_v7, %v123_v58 }
  0xdb   :  { %v673_v23 = vadd.f32 %v192_v7, %v126_v59  ;;  %v675_v24 = vadd.f32 %v192_v7, %v129_v62  ;;  %v677_v25 = vadd.f32 %v192_v7, %v132_v63  ;;  %v679_v26 = vadd.f32 %v192_v7, %v135_v8 }
  0xdc   :  { %v681_v28 = vadd.f32 %v192_v7, %v138_v41  ;;  %v683_v29 = vadd.f32 %v192_v7, %v141_v42  ;;  %v685_v30 = vadd.f32 %v192_v7, %v144_v43  ;;  %v687_v31 = vadd.f32 %v192_v7, %v147_v44 }
  0xdd   :  { %v689_v32 = vadd.f32 %v192_v7, %v150_v46  ;;  %v691_v33 = vadd.f32 %v192_v7, %v153_v47  ;;  %v693_v34 = vadd.f32 %v192_v7, %v156_v50  ;;  %v695_v35 = vadd.f32 %v192_v7, %v159_v51 }
  0xde   :  { %v697_v36 = vadd.f32 %v192_v7, %v162_v54  ;;  %v699_v37 = vadd.f32 %v192_v7, %v165_v55  ;;  %v701_v38 = vadd.f32 %v192_v7, %v168_v57  ;;  %v703_v39 = vadd.f32 %v192_v7, %v171_v60 }
  0xdf   :  { %v705_v40 = vadd.f32 %v192_v7, %v174_v61  ;;  %v707_v41 = vadd.f32 %v192_v7, %v177_v3  ;;  %v709_v42 = vadd.f32 %v192_v7, %v180_v4  ;;  %v711_v43 = vadd.f32 %v192_v7, %v183_v27 }
  0xe0   :  { %v226_v44 = vmax.f32 %v194_v11, 0.0  ;;  %v227_v45 = vmax.f32 %v195_v12, 0.0  ;;  %v228_v1 = vmax.f32 %v196_v13, 0.0  ;;  %v229_v46 = vmax.f32 %v197_v14, 0.0 }
  0xe1   :  { %v230_v47 = vmax.f32 %v198_v15, 0.0  ;;  %v231_v48 = vmax.f32 %v199_v16, 0.0  ;;  %v232_v49 = vmax.f32 %v200_v17, 0.0  ;;  %v233_v50 = vmax.f32 %v201_v18, 0.0 }
  0xe2   :  { %v234_v51 = vmax.f32 %v665_v19, 0.0  ;;  %v235_v52 = vmax.f32 %v667_v20, 0.0  ;;  %v236_v53 = vmax.f32 %v669_v21, 0.0  ;;  %v237_v54 = vmax.f32 %v671_v22, 0.0 }
  0xe3   :  { %v238_v55 = vmax.f32 %v673_v23, 0.0  ;;  %v239_v56 = vmax.f32 %v675_v24, 0.0  ;;  %v240_v57 = vmax.f32 %v677_v25, 0.0  ;;  %v241_v58 = vmax.f32 %v679_v26, 0.0 }
  0xe4   :  { %v242_v59 = vmax.f32 %v681_v28, 0.0  ;;  %v243_v60 = vmax.f32 %v683_v29, 0.0  ;;  %v244_v61 = vmax.f32 %v685_v30, 0.0  ;;  %v245_v62 = vmax.f32 %v687_v31, 0.0 }
  0xe5   :  { %v246_v63 = vmax.f32 %v689_v32, 0.0  ;;  %v247_v0 = vmax.f32 %v691_v33, 0.0  ;;  %v248_v2 = vmax.f32 %v693_v34, 0.0  ;;  %v249_v3 = vmax.f32 %v695_v35, 0.0 }
  0xe6   :  { %v295_v4 = vrot.slane %v226_v44, %v661_v9  ;;  %v300_v5 = vrot.slane %v227_v45, %v663_v10  ;;  %v306_v6 = vrot.slane %v228_v1, %v661_v9  ;;  %v310_v7 = vrot.slane %v229_v46, %v663_v10 }
  0xe7   :  { %v315_v8 = vrot.slane %v230_v47, %v661_v9  ;;  %v319_v11 = vrot.slane %v231_v48, %v663_v10  ;;  %v324_v12 = vrot.slane %v232_v49, %v661_v9  ;;  %v328_v13 = vrot.slane %v233_v50, %v663_v10 }
  0xe8   :  { %v250_v14 = vmax.f32 %v697_v36, 0.0  ;;  %v251_v15 = vmax.f32 %v699_v37, 0.0  ;;  %v252_v16 = vmax.f32 %v701_v38, 0.0  ;;  %v253_v17 = vmax.f32 %v703_v39, 0.0 }
  0xe9   :  { %v254_v18 = vmax.f32 %v705_v40, 0.0  ;;  %v255_v19 = vmax.f32 %v707_v41, 0.0  ;;  %v256_v20 = vmax.f32 %v709_v42, 0.0  ;;  %v257_v21 = vmax.f32 %v711_v43, 0.0 }
  0xea   :  { %v302_v22 = vsel %vm301_vm1, %v300_v5, %v295_v4  ;;  %v311_v23 = vsel %vm301_vm1, %v310_v7, %v306_v6  ;;  %v333_v24 = vrot.slane %v234_v51, %v661_v9  ;;  %v337_v25 = vrot.slane %v235_v52, %v663_v10 }
  0xeb   :  { %v320_v26 = vsel %vm301_vm1, %v319_v11, %v315_v8  ;;  %v329_v27 = vsel %vm301_vm1, %v328_v13, %v324_v12  ;;  %v369_v28 = vrot.slane %v242_v59, %v661_v9  ;;  %v373_v29 = vrot.slane %v243_v60, %v663_v10 }
  0xec   :  { %v342_v30 = vrot.slane %v236_v53, %v661_v9  ;;  %v378_v31 = vrot.slane %v244_v61, %v661_v9  ;;  %v382_v32 = vrot.slane %v245_v62, %v663_v10  ;;  %v387_v33 = vrot.slane %v246_v63, %v661_v9 }
  0xed   :  { %v346_v34 = vrot.slane %v237_v54, %v663_v10  ;;  %v351_v35 = vrot.slane %v238_v55, %v661_v9  ;;  %v391_v36 = vrot.slane %v247_v0, %v663_v10  ;;  %v396_v37 = vrot.slane %v248_v2, %v661_v9 }
  0xee   :  { %v355_v38 = vrot.slane %v239_v56, %v663_v10  ;;  %v374_v39 = vsel %vm301_vm1, %v373_v29, %v369_v28  ;;  %v383_v40 = vsel %vm301_vm1, %v382_v32, %v378_v31  ;;  %v400_v41 = vrot.slane %v249_v3, %v663_v10 }
  0xef   :  { %v360_v42 = vrot.slane %v240_v57, %v661_v9  ;;  %v392_v43 = vsel %vm301_vm1, %v391_v36, %v387_v33  ;;  %v405_v44 = vrot.slane %v250_v14, %v661_v9  ;;  %v409_v45 = vrot.slane %v251_v15, %v663_v10 }
  0xf0   :  { %v364_v1 = vrot.slane %v241_v58, %v663_v10  ;;  %v414_v46 = vrot.slane %v252_v16, %v661_v9  ;;  %v418_v47 = vrot.slane %v253_v17, %v663_v10  ;;  %v423_v48 = vrot.slane %v254_v18, %v661_v9 }
  0xf1   :  { %v401_v49 = vsel %vm301_vm1, %v400_v41, %v396_v37  ;;  %v427_v50 = vrot.slane %v255_v19, %v663_v10  ;;  %v439_v51 = vsel %vm438_vm2, %v311_v23, %v302_v22  ;;  %v452_v52 = vsel %vm438_vm2, %v383_v40, %v374_v39 }
  0xf2   :  { %v432_v53 = vrot.slane %v256_v20, %v661_v9  ;;  %v436_v54 = vrot.slane %v257_v21, %v663_v10  ;;  %v441_v55 = vsel %vm440_vm3, %v320_v26, %v439_v51  ;;  %v453_v56 = vsel %vm440_vm3, %v392_v43, %v452_v52 }
  0xf3   :  { %v338_v57 = vsel %vm301_vm1, %v337_v25, %v333_v24  ;;  %v410_v58 = vsel %vm301_vm1, %v409_v45, %v405_v44  ;;  %v443_v59 = vsel %vm442_vm4, %v329_v27, %v441_v55  ;;  %v454_v60 = vsel %vm442_vm4, %v401_v49, %v453_v56 }
  0xf4   :  { %v347_v61 = vsel %vm301_vm1, %v346_v34, %v342_v30  ;;  %v419_v62 = vsel %vm301_vm1, %v418_v47, %v414_v46  ;;  %v445_v9 = vsel %vm444_vm5, %v338_v57, %v443_v59  ;;  %v455_v10 = vsel %vm444_vm5, %v410_v58, %v454_v60 }
  0xf5   :  { %v356_v63 = vsel %vm301_vm1, %v355_v38, %v351_v35  ;;  %v428_v0 = vsel %vm301_vm1, %v427_v50, %v423_v48  ;;  %v447_v2 = vsel %vm446_vm6, %v347_v61, %v445_v9  ;;  %v456_v3 = vsel %vm446_vm6, %v419_v62, %v455_v10 }
  0xf6   :  { %v365_v4 = vsel %vm301_vm1, %v364_v1, %v360_v42  ;;  %v437_v5 = vsel %vm301_vm1, %v436_v54, %v432_v53  ;;  %v449_v6 = vsel %vm448_vm7, %v356_v63, %v447_v2  ;;  %v457_v7 = vsel %vm448_vm7, %v428_v0, %v456_v3 }
  0xf7   :  { %v451_v8 = vsel %vm450_vm8, %v365_v4, %v449_v6  ;;  %v458_v11 = vsel %vm450_vm8, %v437_v5, %v457_v7 }
  0xf8   :  { %462 = vst.msk [vmem:[%s810_s3] sm:$0xff] %vm461_vm9, %v451_v8  ;;  %463 = vst.msk [vmem:[%s810_s3 + $0x8] sm:$0xff] %vm461_vm9, %v458_v11 }

// kernel: transzero_forward.30
= control target key start
LH: loop header
LB: loop body
LE: loop exit
PB: predicated region body
PF: predicated region fallthrough
CT: control target
= control target key end

     0   :  { %v216_v0 = vmov 0.0   ;;  %vm217_vm0 = vmmov 0   ;;  %s290_s1 = inlined_call_operand.vmem [shape: bf16[128,128], index: 1, kind: input, shape index: {}]   ;;  %s291_s0 = inlined_call_operand.vmem [shape: bf16[8,128], index: 0, kind: input, shape index: {}]   ;;  %s292_s2 = inlined_call_operand.vmem [shape: f32[1,128], index: 2, kind: input, shape index: {}]   ;;  %s293_s3 = inlined_call_operand.vmem [shape: f32[8,128], index: 3, kind: input, shape index: {}]   ;;  %s294_s4 = inlined_call_operand.vmem [shape: f32[2,128], index: 4, kind: input, shape index: {}]   ;;  %s295_s5 = inlined_call_operand.vmem [shape: f32[8,128], index: 5, kind: output, shape index: {}]  }
   0x1   :  { %184 = vmatprep.subr.bf16.mxu0 %v216_v0  ;;  %v206_v1 = vld [vmem:[%s290_s1] sm:$0xff]   ;;  %200 = vmatprep.mubr.msk.bf16.mxu0 %vm217_vm0, %v216_v0  ;;  %v207_v2 = vld [vmem:[%s290_s1 + $0x8] sm:$0xff]   ;;  %v208_v3 = vld [vmem:[%s290_s1 + $0x10] sm:$0xff]  }
   0x2   :  { %185 = vmatpush3.bf16.msra.mxu0 %v206_v1  ;;  %v209_v4 = vld [vmem:[%s290_s1 + $0x18] sm:$0xff]   ;;  %v210_v5 = vld [vmem:[%s290_s1 + $0x20] sm:$0xff]   ;;  %v211_v6 = vld [vmem:[%s290_s1 + $0x28] sm:$0xff]  }
   0x3   :  { %186 = vmatprep.subr.bf16.mxu0 %v216_v0  ;;  %v212_v7 = vld [vmem:[%s290_s1 + $0x30] sm:$0xff]   ;;  %v213_v8 = vld [vmem:[%s290_s1 + $0x38] sm:$0xff]   ;;  %v21_v9 = vld [vmem:[%s291_s0] sm:$0xf] }
   0x4   :  { %v164_v10 = vld [vmem:[%s292_s2] ss:$0 sm:$0xff]  ;;  %v174_v28 = vld [vmem:[%s294_s4 + $0x1] ss:$0 sm:$0xff] }
   0x5   :  { %v133_v12 = vld [vmem:[%s293_s3] sm:$0xff] }
   0x6   :  { %187 = vmatpush3.bf16.msra.mxu0 %v207_v2  ;;  %v173_v26 = vld [vmem:[%s294_s4] ss:$0 sm:$0xff] }
   0x7   :  { %188 = vmatprep.subr.bf16.mxu0 %v216_v0 }
   0xa   :  { %189 = vmatpush3.bf16.msra.mxu0 %v208_v3 }
   0xb   :  { %190 = vmatprep.subr.bf16.mxu0 %v216_v0 }
   0xe   :  { %191 = vmatpush3.bf16.msra.mxu0 %v209_v4 }
   0xf   :  { %192 = vmatprep.subr.bf16.mxu0 %v216_v0 }
  0x12   :  { %193 = vmatpush3.bf16.msra.mxu0 %v210_v5 }
  0x13   :  { %194 = vmatprep.subr.bf16.mxu0 %v216_v0 }
  0x16   :  { %195 = vmatpush3.bf16.msra.mxu0 %v211_v6 }
  0x17   :  { %196 = vmatprep.subr.bf16.mxu0 %v216_v0 }
  0x1a   :  { %197 = vmatpush3.bf16.msra.mxu0 %v212_v7 }
  0x1b   :  { %198 = vmatprep.subr.bf16.mxu0 %v216_v0 }
  0x1e   :  { %199 = vmatpush3.bf16.msra.mxu0 %v213_v8 }
  0x21   :  { %201 = vmatmul.mubr.bf16.vlgmr.msra.gmra.mrb[0].mxu0 %v21_v9 }
  0xf4   :  { %v127_v11 = vpop.f32.mrb[0].mxu0 }
  0xf5   :  { %v128_v13 = vadd.f32 %v164_v10, %v127_v11  ;;  %v202_v14 = vpop.f32.mrb[1].mxu0 }
  0xf6   :  { %v130_v15 = vpop.f32.mrb[2].mxu0 }
  0xf7   :  { %v203_v16 = vpop.f32.mrb[3].mxu0  ;;  %v134_v17 = vadd.f32 %v133_v12, %v128_v13 }
  0xf9   :  { %135 = vadd.xlane.f32.xlu0 %v134_v17 }
 0x186   :  { %v136_v18 = vpop.xlane.xlu0 %135 }
 0x187   :  { %v138_v19 = vmul.f32 0.0078125, %v136_v18 }
 0x189   :  { %v139_v20 = vsub.f32 %v134_v17, %v138_v19 }
 0x18b   :  { %v140_v21 = vmul.f32 %v139_v20, %v139_v20 }
 0x18d   :  { %141 = vadd.xlane.f32.xlu0 %v140_v21 }
 0x21a   :  { %v142_v22 = vpop.xlane.xlu0 %141 }
 0x21b   :  { %v143_v23 = vmul.f32 0.0078125, %v142_v22 }
 0x21d   :  { %v144_v24 = vadd.f32 1e-05, %v143_v23 }
 0x21f   :  { %214 = vrsqrt.f32 %v144_v24 }
 0x229   :  { %v215_v25 = vpop.eup %214 }
 0x22a   :  { %v146_v27 = vmul.f32 %v215_v25, %v139_v20 }
 0x22c   :  { %v152_v29 = vmul.f32 %v173_v26, %v146_v27 }
 0x22e   :  { %v158_v30 = vadd.f32 %v174_v28, %v152_v29 }
 0x230   :  { %159 = vst [vmem:[%s295_s5] sm:$0xff] %v158_v30 }

// kernel: transzero_forward.29
= control target key start
LH: loop header
LB: loop body
LE: loop exit
PB: predicated region body
PF: predicated region fallthrough
CT: control target
= control target key end

     0   :  { %v251_v0 = vmov 0.0   ;;  %vm252_vm0 = vmmov 0   ;;  %vm121_vm1 = vcmask 64512   ;;  %vm136_vm2 = vcmask 1043456   ;;  %s309_s1 = inlined_call_operand.vmem [shape: bf16[1,128,8], index: 1, kind: input, shape index: {}]   ;;  %s310_s0 = inlined_call_operand.vmem [shape: bf16[1,8,128], index: 0, kind: input, shape index: {}]   ;;  %s311_s2 = inlined_call_operand.vmem [shape: bf16[1,8,128], index: 2, kind: input, shape index: {}]   ;;  %s312_s3 = inlined_call_operand.vmem [shape: bf16[1,8,128], index: 3, kind: output, shape index: {}]  }
   0x1   :  { %211 = vmatprep.subr.bf16.mxu0 %v251_v0  ;;  %v239_v1 = vld [vmem:[%s309_s1] sm:$0xff]   ;;  %227 = vmatprep.mubr.msk.bf16.mxu0 %vm252_vm0, %v251_v0  ;;  %v240_v2 = vld [vmem:[%s309_s1 + $0x8] sm:$0xff]   ;;  %v241_v3 = vld [vmem:[%s309_s1 + $0x10] sm:$0xff]  }
   0x2   :  { %231 = vmatprep.subr.bf16.mxu1 %v251_v0  ;;  %233 = vmatprep.mubr.msk.bf16.mxu1 %vm252_vm0, %v251_v0  ;;  %v242_v4 = vld [vmem:[%s309_s1 + $0x18] sm:$0xff]   ;;  %v243_v5 = vld [vmem:[%s309_s1 + $0x20] sm:$0xff]   ;;  %v244_v6 = vld [vmem:[%s309_s1 + $0x28] sm:$0xff]  }
   0x3   :  { %212 = vmatpush3.bf16.msra.mxu0 %v239_v1  ;;  %v245_v7 = vld [vmem:[%s309_s1 + $0x30] sm:$0xff]   ;;  %v246_v8 = vld [vmem:[%s309_s1 + $0x38] sm:$0xff]   ;;  %v15_v9 = vld [vmem:[%s310_s0] sm:$0xf] }
   0x4   :  { %213 = vmatprep.subr.bf16.mxu0 %v251_v0  ;;  %v132_v16 = vld [vmem:[%s311_s2] sm:$0xf] }
   0x5   :  { %v138_v17 = vsel %vm136_vm2, %v132_v16, 0 }
   0x6   :  { %232 = vmatpush3.bf16.msra.mxu1 %v138_v17 }
   0x7   :  { %214 = vmatpush3.bf16.msra.mxu0 %v240_v2 }
   0x8   :  { %215 = vmatprep.subr.bf16.mxu0 %v251_v0 }
   0xb   :  { %216 = vmatpush3.bf16.msra.mxu0 %v241_v3 }
   0xc   :  { %217 = vmatprep.subr.bf16.mxu0 %v251_v0 }
   0xf   :  { %218 = vmatpush3.bf16.msra.mxu0 %v242_v4 }
  0x10   :  { %219 = vmatprep.subr.bf16.mxu0 %v251_v0 }
  0x13   :  { %220 = vmatpush3.bf16.msra.mxu0 %v243_v5 }
  0x14   :  { %221 = vmatprep.subr.bf16.mxu0 %v251_v0 }
  0x17   :  { %222 = vmatpush3.bf16.msra.mxu0 %v244_v6 }
  0x18   :  { %223 = vmatprep.subr.bf16.mxu0 %v251_v0 }
  0x1b   :  { %224 = vmatpush3.bf16.msra.mxu0 %v245_v7 }
  0x1c   :  { %225 = vmatprep.subr.bf16.mxu0 %v251_v0 }
  0x1f   :  { %226 = vmatpush3.bf16.msra.mxu0 %v246_v8 }
  0x22   :  { %228 = vmatmul.mubr.bf16.vlgmr.msra.gmra.mrb[0].mxu0 %v15_v9 }
  0xf5   :  { %v114_v10 = vpop.f32.mrb[0].mxu0 }
  0xf6   :  { %v120_v11 = vmul.f32 0.088388346, %v114_v10  ;;  %v229_v12 = vpop.f32.mrb[1].mxu0 }
  0xf7   :  { %v117_v13 = vpop.f32.mrb[2].mxu0 }
  0xf8   :  { %v230_v14 = vpop.f32.mrb[3].mxu0  ;;  %v122_v15 = vsel %vm121_vm1, %v120_v11, -inf }
  0xf9   :  { %123 = vmax.xlane.f32.xlu0 %v122_v15 }
 0x186   :  { %v124_v18 = vpop.xlane.xlu0 %123 }
 0x187   :  { %v125_v19 = vsub.f32 %v120_v11, %v124_v18 }
 0x189   :  { %v126_v20 = vmul.f32 1.442695, %v125_v19 }
 0x18b   :  { %247 = vpow2.f32 %v126_v20 }
 0x195   :  { %v248_v21 = vpop.eup %247 }
 0x196   :  { %v128_v22 = vsel %vm121_vm1, %v248_v21, 0.0  ;;  %v131_v23 = vpack.c.bf16 %v248_v21, %v248_v21 }
 0x197   :  { %129 = vadd.xlane.f32.xlu0 %v128_v22 }
 0x198   :  { %234 = vmatmul.mubr.msk.bf16.vlgmr.msra.gmra.mrb[0].mxu1 %vm121_vm1, %v131_v23 }
 0x224   :  { %v130_v24 = vpop.xlane.xlu0 %129 }
 0x225   :  { %249 = vrcp.f32 %v130_v24 }
 0x22f   :  { %v250_v25 = vpop.eup %249 }
 0x230   :  { %v181_v26 = vmul.f32 %v250_v25, %v130_v24 }
 0x232   :  { %v182_v27 = vsub.f32 2.0, %v181_v26 }
 0x234   :  { %v183_v28 = vmul.f32 %v250_v25, %v182_v27 }
 0x26b   :  { %v174_v29 = vpop.f32.mrb[0].mxu1 }
 0x26c   :  { %v184_v30 = vmul.f32 %v183_v28, %v174_v29  ;;  %v235_v31 = vpop.f32.mrb[1].mxu1 }
 0x26d   :  { %v177_v32 = vpop.f32.mrb[2].mxu1 }
 0x26e   :  { %v185_v33 = vpack.c.bf16 %v184_v30, %v184_v30  ;;  %v236_v34 = vpop.f32.mrb[3].mxu1 }
 0x270   :  { %186 = vst [vmem:[%s312_s3] sm:$0xf] %v185_v33 }

// kernel: transzero_forward.31
= control target key start
LH: loop header
LB: loop body
LE: loop exit
PB: predicated region body
PF: predicated region fallthrough
CT: control target
= control target key end

     0   :  { %v201_v0 = vmov 0.0   ;;  %vm202_vm0 = vmmov 0   ;;  %s259_s1 = inlined_call_operand.vmem [shape: bf16[128,128], index: 1, kind: input, shape index: {}]   ;;  %s260_s0 = inlined_call_operand.vmem [shape: f32[16,128], index: 0, kind: input, shape index: {}]   ;;  %s261_s2 = inlined_call_operand.vmem [shape: f32[1,128], index: 2, kind: input, shape index: {}]   ;;  %s262_s3 = inlined_call_operand.vmem [shape: bf16[16,128], index: 3, kind: output, shape index: {}]  }
   0x1   :  { %171 = vmatprep.subr.bf16.mxu0 %v201_v0  ;;  %v193_v1 = vld [vmem:[%s259_s1] sm:$0xff]   ;;  %187 = vmatprep.mubr.msk.bf16.mxu0 %vm202_vm0, %v201_v0  ;;  %v194_v2 = vld [vmem:[%s259_s1 + $0x8] sm:$0xff]   ;;  %v195_v3 = vld [vmem:[%s259_s1 + $0x10] sm:$0xff]  }
   0x2   :  { %172 = vmatpush3.bf16.msra.mxu0 %v193_v1  ;;  %v196_v4 = vld [vmem:[%s259_s1 + $0x18] sm:$0xff]   ;;  %v197_v5 = vld [vmem:[%s259_s1 + $0x20] sm:$0xff]   ;;  %v198_v6 = vld [vmem:[%s259_s1 + $0x28] sm:$0xff]  }
   0x3   :  { %173 = vmatprep.subr.bf16.mxu0 %v201_v0  ;;  %v199_v7 = vld [vmem:[%s259_s1 + $0x30] sm:$0xff]   ;;  %v200_v8 = vld [vmem:[%s259_s1 + $0x38] sm:$0xff]   ;;  %v15_v9 = vld [vmem:[%s260_s0] sm:$0xff] }
   0x4   :  { %v16_v10 = vld [vmem:[%s260_s0 + $0x8] sm:$0xff]  ;;  %v144_v12 = vld [vmem:[%s261_s2] ss:$0 sm:$0xff] }
   0x5   :  { %v17_v11 = vpack.c.bf16 %v16_v10, %v15_v9 }
   0x6   :  { %174 = vmatpush3.bf16.msra.mxu0 %v194_v2 }
   0x7   :  { %175 = vmatprep.subr.bf16.mxu0 %v201_v0 }
   0xa   :  { %176 = vmatpush3.bf16.msra.mxu0 %v195_v3 }
   0xb   :  { %177 = vmatprep.subr.bf16.mxu0 %v201_v0 }
   0xe   :  { %178 = vmatpush3.bf16.msra.mxu0 %v196_v4 }
   0xf   :  { %179 = vmatprep.subr.bf16.mxu0 %v201_v0 }
  0x12   :  { %180 = vmatpush3.bf16.msra.mxu0 %v197_v5 }
  0x13   :  { %181 = vmatprep.subr.bf16.mxu0 %v201_v0 }
  0x16   :  { %182 = vmatpush3.bf16.msra.mxu0 %v198_v6 }
  0x17   :  { %183 = vmatprep.subr.bf16.mxu0 %v201_v0 }
  0x1a   :  { %184 = vmatpush3.bf16.msra.mxu0 %v199_v7 }
  0x1b   :  { %185 = vmatprep.subr.bf16.mxu0 %v201_v0 }
  0x1e   :  { %186 = vmatpush3.bf16.msra.mxu0 %v200_v8 }
  0x21   :  { %188 = vmatmul.mubr.bf16.vlgmr.msra.gmra.mrb[0].mxu0 %v17_v11 }
  0xf4   :  { %v123_v13 = vpop.f32.mrb[0].mxu0 }
  0xf5   :  { %v189_v14 = vpop.f32.mrb[1].mxu0  ;;  %v124_v16 = vadd.f32 %v144_v12, %v123_v13 }
  0xf6   :  { %v126_v15 = vpop.f32.mrb[2].mxu0 }
  0xf7   :  { %v127_v17 = vadd.f32 %v144_v12, %v126_v15  ;;  %v190_v18 = vpop.f32.mrb[3].mxu0 }
  0xf9   :  { %v160_v19 = vpack.c.bf16 %v127_v17, %v124_v16 }
  0xfb   :  { %161 = vst [vmem:[%s262_s3] sm:$0xff] %v160_v19  }

// kernel: transzero_forward.32
= control target key start
LH: loop header
LB: loop body
LE: loop exit
PB: predicated region body
PF: predicated region fallthrough
CT: control target
= control target key end

     0   :  { %v279_v1 = vmov 0   ;;  %v39_v23 = vlaneseq  ;;  %s375_s1 = inlined_call_operand.vmem [shape: bf16[128,256], index: 1, kind: input, shape index: {}]   ;;  %s376_s0 = inlined_call_operand.vmem [shape: f32[32,128], index: 0, kind: input, shape index: {}]   ;;  %s377_s2 = inlined_call_operand.vmem [shape: f32[1,256], index: 2, kind: input, shape index: {}]   ;;  %s378_s3 = inlined_call_operand.vmem [shape: bf16[32,256], index: 3, kind: output, shape index: {}]  }
   0x1   :  { %v255_v0 = vld [vmem:[%s375_s1 + $0x4] ss:$8 sps:$4 sm:$0xff]   ;;  %161 = vmatprep.mubr.bf16.mxu0 %v279_v1  ;;  %171 = vmatprep.mubr.bf16.mxu1 %v279_v1  ;;  %v257_v2 = vld [vmem:[%s375_s1] ss:$8 sps:$4 sm:$0xff]   ;;  %v258_v3 = vld [vmem:[%s375_s1 + $0x14] ss:$8 sps:$4 sm:$0xff]  }
   0x2   :  { %129 = vmatprep.subr.bf16.mxu0 %v255_v0  ;;  %238 = vmatprep.subr.bf16.mxu1 %v255_v0  ;;  %v260_v4 = vld [vmem:[%s375_s1 + $0x10] ss:$8 sps:$4 sm:$0xff]   ;;  %v261_v5 = vld [vmem:[%s375_s1 + $0x24] ss:$8 sps:$4 sm:$0xff]   ;;  %v263_v6 = vld [vmem:[%s375_s1 + $0x20] ss:$8 sps:$4 sm:$0xff]  }
   0x3   :  { %130 = vmatpush1.bf16.msra.mxu0 %v257_v2  ;;  %246 = vmatpush1.bf16.msra.mxu1 %v257_v2  ;;  %v264_v7 = vld [vmem:[%s375_s1 + $0x34] ss:$8 sps:$4 sm:$0xff]   ;;  %v266_v8 = vld [vmem:[%s375_s1 + $0x30] ss:$8 sps:$4 sm:$0xff]   ;;  %v267_v9 = vld [vmem:[%s375_s1 + $0x44] ss:$8 sps:$4 sm:$0xff]  }
   0x4   :  { %131 = vmatprep.subr.bf16.mxu0 %v258_v3  ;;  %239 = vmatprep.subr.bf16.mxu1 %v258_v3  ;;  %v269_v10 = vld [vmem:[%s375_s1 + $0x40] ss:$8 sps:$4 sm:$0xff]   ;;  %v270_v11 = vld [vmem:[%s375_s1 + $0x54] ss:$8 sps:$4 sm:$0xff]   ;;  %v272_v12 = vld [vmem:[%s375_s1 + $0x50] ss:$8 sps:$4 sm:$0xff]  }
   0x5   :  { %v273_v13 = vld [vmem:[%s375_s1 + $0x64] ss:$8 sps:$4 sm:$0xff]   ;;  %v275_v14 = vld [vmem:[%s375_s1 + $0x60] ss:$8 sps:$4 sm:$0xff]   ;;  %v276_v15 = vld [vmem:[%s375_s1 + $0x74] ss:$8 sps:$4 sm:$0xff]  }
   0x6   :  { %v278_v16 = vld [vmem:[%s375_s1 + $0x70] ss:$8 sps:$4 sm:$0xff]   ;;  %v15_v17 = vld [vmem:[%s376_s0] sm:$0xff]  ;;  %v16_v18 = vld [vmem:[%s376_s0 + $0x8] sm:$0xff]  ;;  %v40_v24 = vshrl.u32 %v39_v23, 7 }
   0x7   :  { %132 = vmatpush1.bf16.msra.mxu0 %v260_v4  ;;  %247 = vmatpush1.bf16.msra.mxu1 %v260_v4  ;;  %v17_v19 = vld [vmem:[%s376_s0 + $0x10] sm:$0xff]  ;;  %v18_v20 = vld [vmem:[%s376_s0 + $0x18] sm:$0xff]  ;;  %v19_v21 = vpack.c.bf16 %v16_v18, %v15_v17  ;;  %v37_v26 = vld [vmem:[%s377_s2] sm:$0x3] }
   0x8   :  { %133 = vmatprep.subr.bf16.mxu0 %v261_v5  ;;  %240 = vmatprep.subr.bf16.mxu1 %v261_v5  ;;  %v20_v22 = vpack.c.bf16 %v18_v20, %v17_v19  ;;  %v41_v25 = vsub.s32 0, %v40_v24  ;;  %v45_v27 = vsub.s32 1, %v40_v24 }
   0xa   :  { %v42_v28 = vrot.slane %v37_v26, %v41_v25  ;;  %v46_v29 = vrot.slane %v37_v26, %v45_v27 }
   0xb   :  { %134 = vmatpush1.bf16.msra.mxu0 %v263_v6  ;;  %248 = vmatpush1.bf16.msra.mxu1 %v263_v6 }
   0xc   :  { %135 = vmatprep.subr.bf16.mxu0 %v264_v7  ;;  %241 = vmatprep.subr.bf16.mxu1 %v264_v7 }
   0xf   :  { %136 = vmatpush1.bf16.msra.mxu0 %v266_v8  ;;  %249 = vmatpush1.bf16.msra.mxu1 %v266_v8 }
  0x10   :  { %137 = vmatprep.subr.bf16.mxu0 %v267_v9  ;;  %242 = vmatprep.subr.bf16.mxu1 %v267_v9 }
  0x13   :  { %138 = vmatpush1.bf16.msra.mxu0 %v269_v10  ;;  %250 = vmatpush1.bf16.msra.mxu1 %v269_v10 }
  0x14   :  { %139 = vmatprep.subr.bf16.mxu0 %v270_v11  ;;  %243 = vmatprep.subr.bf16.mxu1 %v270_v11 }
  0x17   :  { %140 = vmatpush1.bf16.msra.mxu0 %v272_v12  ;;  %251 = vmatpush1.bf16.msra.mxu1 %v272_v12 }
  0x18   :  { %141 = vmatprep.subr.bf16.mxu0 %v273_v13  ;;  %244 = vmatprep.subr.bf16.mxu1 %v273_v13 }
  0x1b   :  { %142 = vmatpush1.bf16.msra.mxu0 %v275_v14  ;;  %252 = vmatpush1.bf16.msra.mxu1 %v275_v14 }
  0x1c   :  { %143 = vmatprep.subr.bf16.mxu0 %v276_v15  ;;  %245 = vmatprep.subr.bf16.mxu1 %v276_v15 }
  0x1f   :  { %144 = vmatpush1.bf16.msra.mxu0 %v278_v16  ;;  %253 = vmatpush1.bf16.msra.mxu1 %v278_v16 }
  0x22   :  { %162 = vmatmul.mubr.bf16.vlgmr.msra.gmra.mrb[0].mxu0 %v19_v21  ;;  %172 = vmatmul.mubr.bf16.vlgmr.msra.gmra.mrb[0].mxu1 %v20_v22 }
  0xf5   :  { %v163_v30 = vpop.f32.mrb[0].mxu0  ;;  %v173_v31 = vpop.f32.mrb[0].mxu1 }
  0xf6   :  { %v164_v32 = vadd.f32 %v163_v30, %v42_v28  ;;  %v174_v33 = vadd.f32 %v173_v31, %v42_v28  ;;  %v165_v34 = vpop.f32.mrb[1].mxu0  ;;  %v175_v35 = vpop.f32.mrb[1].mxu1 }
  0xf7   :  { %v166_v36 = vadd.f32 %v165_v34, %v46_v29  ;;  %v176_v37 = vadd.f32 %v175_v35, %v46_v29  ;;  %v167_v38 = vpop.f32.mrb[2].mxu0  ;;  %v177_v39 = vpop.f32.mrb[2].mxu1 }
  0xf8   :  { %v168_v40 = vadd.f32 %v167_v38, %v42_v28  ;;  %v178_v41 = vadd.f32 %v177_v39, %v42_v28  ;;  %v169_v42 = vpop.f32.mrb[3].mxu0  ;;  %v179_v43 = vpop.f32.mrb[3].mxu1 }
  0xf9   :  { %v234_v44 = vpack.c.bf16 %v166_v36, %v164_v32  ;;  %v236_v45 = vpack.c.bf16 %v176_v37, %v174_v33  ;;  %v170_v46 = vadd.f32 %v169_v42, %v46_v29  ;;  %v180_v47 = vadd.f32 %v179_v43, %v46_v29 }
  0xfb   :  { %206 = vst [vmem:[%s378_s3] sm:$0xff] %v234_v44  ;;  %208 = vst [vmem:[%s378_s3 + $0x10] sm:$0xff] %v236_v45  ;;  %v235_v48 = vpack.c.bf16 %v170_v46, %v168_v40  ;;  %v237_v49 = vpack.c.bf16 %v180_v47, %v178_v41 }
  0xfd   :  { %207 = vst [vmem:[%s378_s3 + $0x8] sm:$0xff] %v235_v48  ;;  %209 = vst [vmem:[%s378_s3 + $0x18] sm:$0xff] %v237_v49 }

// kernel: transzero_forward.27
= control target key start
LH: loop header
LB: loop body
LE: loop exit
PB: predicated region body
PF: predicated region fallthrough
CT: control target
= control target key end

     0   :  { %s594_s1 = inlined_call_operand.vmem [shape: bf16[128,128], index: 1, kind: input, shape index: {}]   ;;  %s595_s0 = inlined_call_operand.vmem [shape: f32[32,128], index: 0, kind: input, shape index: {}]   ;;  %s596_s3 = inlined_call_operand.vmem [shape: bf16[128,128], index: 3, kind: input, shape index: {}]   ;;  %s597_s2 = inlined_call_operand.vmem [shape: f32[1,128], index: 2, kind: input, shape index: {}]   ;;  %s598_s4 = inlined_call_operand.vmem [shape: f32[1,128], index: 4, kind: input, shape index: {}]   ;;  %s599_s5 = inlined_call_operand.vmem [shape: f32[1,128], index: 5, kind: input, shape index: {}]   ;;  %s600_s6 = inlined_call_operand.vmem [shape: f32[1,128], index: 6, kind: input, shape index: {}]   ;;  %s601_s7 = inlined_call_operand.vmem [shape: f32[32,128], index: 7, kind: output, shape index: {}]  }
   0x1   :  { %v438_v0 = vld [vmem:[%s594_s1] sm:$0xff]   ;;  %v439_v1 = vld [vmem:[%s594_s1 + $0x8] sm:$0xff]   ;;  %v440_v2 = vld [vmem:[%s594_s1 + $0x10] sm:$0xff]  }
   0x2   :  { %398 = vmatprep.subr.bf16.mxu0 %v438_v0  ;;  %v441_v3 = vld [vmem:[%s594_s1 + $0x18] sm:$0xff]   ;;  %v517_v4 = vld [vmem:[%s595_s0] sm:$0xff]  ;;  %v522_v5 = vld [vmem:[%s595_s0 + $0x8] sm:$0xff] }
   0x3   :  { %399 = vmatpush3.bf16.msra.mxu0 %v438_v0  ;;  %v31_v6 = vpack.c.bf16 %v522_v5, %v517_v4  ;;  %v446_v7 = vld [vmem:[%s596_s3] sm:$0xff]   ;;  %v447_v8 = vld [vmem:[%s596_s3 + $0x8] sm:$0xff]   ;;  %v448_v10 = vld [vmem:[%s596_s3 + $0x10] sm:$0xff]  }
   0x4   :  { %400 = vmatprep.subr.bf16.mxu0 %v439_v1  ;;  %v442_v9 = vld [vmem:[%s594_s1 + $0x20] sm:$0xff]   ;;  %418 = vmatprep.subr.bf16.mxu1 %v446_v7  ;;  %v443_v11 = vld [vmem:[%s594_s1 + $0x28] sm:$0xff]   ;;  %v449_v12 = vld [vmem:[%s596_s3 + $0x18] sm:$0xff]  }
   0x5   :  { %414 = vmatprep.mubr.bf16.mxu0 %v31_v6  ;;  %419 = vmatpush3.bf16.msra.mxu1 %v446_v7  ;;  %v444_v13 = vld [vmem:[%s594_s1 + $0x30] sm:$0xff]   ;;  %v450_v14 = vld [vmem:[%s596_s3 + $0x20] sm:$0xff]   ;;  %v445_v15 = vld [vmem:[%s594_s1 + $0x38] sm:$0xff]  }
   0x6   :  { %420 = vmatprep.subr.bf16.mxu1 %v447_v8  ;;  %v451_v16 = vld [vmem:[%s596_s3 + $0x28] sm:$0xff]   ;;  %v29_v17 = vld [vmem:[%s595_s0 + $0x10] sm:$0xff]  ;;  %v30_v18 = vld [vmem:[%s595_s0 + $0x18] sm:$0xff] }
   0x7   :  { %401 = vmatpush3.bf16.msra.mxu0 %v439_v1  ;;  %v32_v19 = vpack.c.bf16 %v30_v18, %v29_v17  ;;  %v452_v20 = vld [vmem:[%s596_s3 + $0x30] sm:$0xff]   ;;  %v453_v21 = vld [vmem:[%s596_s3 + $0x38] sm:$0xff]   ;;  %v358_v22 = vld [vmem:[%s597_s2] ss:$0 sm:$0xff] }
   0x8   :  { %402 = vmatprep.subr.bf16.mxu0 %v440_v2  ;;  %v367_v37 = vld [vmem:[%s598_s4] ss:$0 sm:$0xff] }
   0x9   :  { %421 = vmatpush3.bf16.msra.mxu1 %v447_v8 }
   0xa   :  { %422 = vmatprep.subr.bf16.mxu1 %v448_v10 }
   0xb   :  { %403 = vmatpush3.bf16.msra.mxu0 %v440_v2 }
   0xc   :  { %404 = vmatprep.subr.bf16.mxu0 %v441_v3 }
   0xd   :  { %423 = vmatpush3.bf16.msra.mxu1 %v448_v10 }
   0xe   :  { %424 = vmatprep.subr.bf16.mxu1 %v449_v12 }
   0xf   :  { %405 = vmatpush3.bf16.msra.mxu0 %v441_v3 }
  0x10   :  { %406 = vmatprep.subr.bf16.mxu0 %v442_v9 }
  0x11   :  { %425 = vmatpush3.bf16.msra.mxu1 %v449_v12 }
  0x12   :  { %426 = vmatprep.subr.bf16.mxu1 %v450_v14 }
  0x13   :  { %407 = vmatpush3.bf16.msra.mxu0 %v442_v9 }
  0x14   :  { %408 = vmatprep.subr.bf16.mxu0 %v443_v11 }
  0x15   :  { %427 = vmatpush3.bf16.msra.mxu1 %v450_v14 }
  0x16   :  { %428 = vmatprep.subr.bf16.mxu1 %v451_v16 }
  0x17   :  { %409 = vmatpush3.bf16.msra.mxu0 %v443_v11 }
  0x18   :  { %410 = vmatprep.subr.bf16.mxu0 %v444_v13 }
  0x19   :  { %429 = vmatpush3.bf16.msra.mxu1 %v451_v16 }
  0x1a   :  { %430 = vmatprep.subr.bf16.mxu1 %v452_v20 }
  0x1b   :  { %411 = vmatpush3.bf16.msra.mxu0 %v444_v13 }
  0x1c   :  { %412 = vmatprep.subr.bf16.mxu0 %v445_v15 }
  0x1d   :  { %431 = vmatpush3.bf16.msra.mxu1 %v452_v20 }
  0x1e   :  { %432 = vmatprep.subr.bf16.mxu1 %v453_v21 }
  0x1f   :  { %413 = vmatpush3.bf16.msra.mxu0 %v445_v15  ;;  %v376_v15 = vld [vmem:[%s599_s5] ss:$0 sm:$0xff] }
  0x21   :  { %433 = vmatpush3.bf16.msra.mxu1 %v453_v21 }
  0x22   :  { %415 = vmatmul.mubr.bf16.vlgmr.msra.gmra.mrb[0].mxu0 %v32_v19 }
  0xf5   :  { %v416_v23 = vpop.f32.mrb[0].mxu0 }
  0xf6   :  { %v147_v24 = vadd.f32 %v416_v23, %v358_v22  ;;  %v138_v25 = vpop.f32.mrb[1].mxu0 }
  0xf7   :  { %v139_v26 = vadd.f32 %v358_v22, %v138_v25  ;;  %v417_v27 = vpop.f32.mrb[2].mxu0 }
  0xf8   :  { %v150_v28 = vadd.f32 %v417_v27, %v358_v22  ;;  %v141_v29 = vpop.f32.mrb[3].mxu0  ;;  %v155_v31 = vmax.f32 %v147_v24, 0.0 }
  0xf9   :  { %v142_v30 = vadd.f32 %v358_v22, %v141_v29  ;;  %v153_v33 = vmax.f32 %v139_v26, 0.0 }
  0xfa   :  { %v156_v32 = vmax.f32 %v150_v28, 0.0 }
  0xfb   :  { %v154_v34 = vmax.f32 %v142_v30, 0.0 }
  0xfc   :  { %v158_v35 = vpack.c.bf16 %v156_v32, %v155_v31 }
  0xfd   :  { %v157_v36 = vpack.c.bf16 %v154_v34, %v153_v33 }
  0xff   :  { %434 = vmatprep.mubr.bf16.mxu1 %v157_v36 }
 0x100   :  { %435 = vmatmul.mubr.bf16.vlgmr.msra.gmra.mrb[0].mxu1 %v158_v35 }
 0x1d3   :  { %v436_v38 = vpop.f32.mrb[0].mxu1 }
 0x1d4   :  { %v273_v39 = vadd.f32 %v436_v38, %v367_v37  ;;  %v264_v40 = vpop.f32.mrb[1].mxu1 }
 0x1d5   :  { %v265_v41 = vadd.f32 %v367_v37, %v264_v40  ;;  %v437_v42 = vpop.f32.mrb[2].mxu1 }
 0x1d6   :  { %v276_v43 = vadd.f32 %v437_v42, %v367_v37  ;;  %v267_v44 = vpop.f32.mrb[3].mxu1  ;;  %v281_v45 = vadd.f32 %v273_v39, %v29_v17  ;;  %v377_v17 = vld [vmem:[%s600_s6] ss:$0 sm:$0xff] }
 0x1d7   :  { %v268_v46 = vadd.f32 %v367_v37, %v267_v44  ;;  %v279_v47 = vadd.f32 %v265_v41, %v517_v4 }
 0x1d8   :  { %287 = vadd.xlane.f32.xlu1 %v281_v45  ;;  %v282_v48 = vadd.f32 %v276_v43, %v30_v18 }
 0x1d9   :  { %283 = vadd.xlane.f32.xlu0 %v279_v47  ;;  %v280_v49 = vadd.f32 %v268_v46, %v522_v5 }
 0x1dc   :  { %289 = vadd.xlane.f32.xlu1 %v282_v48 }
 0x1dd   :  { %285 = vadd.xlane.f32.xlu0 %v280_v49 }
 0x265   :  { %v288_v50 = vpop.xlane.xlu1 %287 }
 0x266   :  { %v284_v51 = vpop.xlane.xlu0 %283  ;;  %v294_v52 = vmul.f32 0.0078125, %v288_v50 }
 0x267   :  { %v292_v53 = vmul.f32 0.0078125, %v284_v51 }
 0x268   :  { %v298_v57 = vsub.f32 %v281_v45, %v294_v52 }
 0x269   :  { %v296_v54 = vsub.f32 %v279_v47, %v292_v53  ;;  %v290_v55 = vpop.xlane.xlu1 %289 }
 0x26a   :  { %v286_v56 = vpop.xlane.xlu0 %285  ;;  %v295_v58 = vmul.f32 0.0078125, %v290_v55  ;;  %v302_v63 = vmul.f32 %v298_v57, %v298_v57 }
 0x26b   :  { %v293_v59 = vmul.f32 0.0078125, %v286_v56  ;;  %v300_v60 = vmul.f32 %v296_v54, %v296_v54 }
 0x26c   :  { %v299_v62 = vsub.f32 %v282_v48, %v295_v58 }
 0x26d   :  { %v297_v61 = vsub.f32 %v280_v49, %v293_v59  ;;  %304 = vadd.xlane.f32.xlu0 %v300_v60 }
 0x26e   :  { %v303_v1 = vmul.f32 %v299_v62, %v299_v62 }
 0x26f   :  { %v301_v0 = vmul.f32 %v297_v61, %v297_v61 }
 0x271   :  { %308 = vadd.xlane.f32.xlu0 %v302_v63  ;;  %306 = vadd.xlane.f32.xlu1 %v301_v0 }
 0x275   :  { %310 = vadd.xlane.f32.xlu1 %v303_v1 }
 0x2fa   :  { %v305_v2 = vpop.xlane.xlu0 %304 }
 0x2fb   :  { %v312_v3 = vmul.f32 0.0078125, %v305_v2 }
 0x2fd   :  { %v316_v4 = vadd.f32 1e-05, %v312_v3 }
 0x2fe   :  { %v307_v5 = vpop.xlane.xlu1 %306  ;;  %v309_v6 = vpop.xlane.xlu0 %308 }
 0x2ff   :  { %454 = vrsqrt.f32 %v316_v4  ;;  %v313_v7 = vmul.f32 0.0078125, %v307_v5  ;;  %v314_v8 = vmul.f32 0.0078125, %v309_v6 }
 0x301   :  { %v317_v9 = vadd.f32 1e-05, %v313_v7  ;;  %v318_v10 = vadd.f32 1e-05, %v314_v8 }
 0x302   :  { %v311_v11 = vpop.xlane.xlu1 %310 }
 0x303   :  { %456 = vrsqrt.f32 %v317_v9  ;;  %v315_v12 = vmul.f32 0.0078125, %v311_v11 }
 0x304   :  { %458 = vrsqrt.f32 %v318_v10 }
 0x305   :  { %v319_v13 = vadd.f32 1e-05, %v315_v12 }
 0x307   :  { %460 = vrsqrt.f32 %v319_v13 }
 0x309   :  { %v455_v14 = vpop.eup %454 }
 0x30a   :  { %v324_v16 = vmul.f32 %v455_v14, %v296_v54 }
 0x30c   :  { %v335_v18 = vmul.f32 %v376_v15, %v324_v16 }
 0x30d   :  { %v457_v19 = vpop.eup %456 }
 0x30e   :  { %v459_v20 = vpop.eup %458  ;;  %v346_v21 = vadd.f32 %v377_v17, %v335_v18  ;;  %v325_v22 = vmul.f32 %v457_v19, %v297_v61 }
 0x30f   :  { %v326_v23 = vmul.f32 %v459_v20, %v298_v57 }
 0x310   :  { %350 = vst [vmem:[%s601_s7] sm:$0xff] %v346_v21  ;;  %v336_v24 = vmul.f32 %v376_v15, %v325_v22 }
 0x311   :  { %v461_v25 = vpop.eup %460  ;;  %v337_v26 = vmul.f32 %v376_v15, %v326_v23 }
 0x312   :  { %v347_v27 = vadd.f32 %v377_v17, %v336_v24  ;;  %v327_v28 = vmul.f32 %v461_v25, %v299_v62 }
 0x313   :  { %v348_v29 = vadd.f32 %v377_v17, %v337_v26 }
 0x314   :  { %351 = vst [vmem:[%s601_s7 + $0x8] sm:$0xff] %v347_v27  ;;  %v338_v30 = vmul.f32 %v376_v15, %v327_v28 }
 0x315   :  { %352 = vst [vmem:[%s601_s7 + $0x10] sm:$0xff] %v348_v29 }
 0x316   :  { %v349_v31 = vadd.f32 %v377_v17, %v338_v30 }
 0x318   :  { %353 = vst [vmem:[%s601_s7 + $0x18] sm:$0xff] %v349_v31 }

// kernel: transzero_forward.26
= control target key start
LH: loop header
LB: loop body
LE: loop exit
PB: predicated region body
PF: predicated region fallthrough
CT: control target
= control target key end

     0   :  { %s484_s1 = inlined_call_operand.vmem [shape: bf16[128,128], index: 1, kind: input, shape index: {}]   ;;  %s485_s0 = inlined_call_operand.vmem [shape: bf16[32,128], index: 0, kind: input, shape index: {}]   ;;  %s486_s2 = inlined_call_operand.vmem [shape: f32[1,128], index: 2, kind: input, shape index: {}]   ;;  %s487_s3 = inlined_call_operand.vmem [shape: f32[32,128], index: 3, kind: input, shape index: {}]   ;;  %s488_s4 = inlined_call_operand.vmem [shape: f32[4,128], index: 4, kind: input, shape index: {}]   ;;  %s489_s5 = inlined_call_operand.vmem [shape: f32[32,128], index: 5, kind: output, shape index: {}]  }
   0x1   :  { %v347_v0 = vld [vmem:[%s484_s1] sm:$0xff]   ;;  %v348_v1 = vld [vmem:[%s484_s1 + $0x8] sm:$0xff]   ;;  %v349_v2 = vld [vmem:[%s484_s1 + $0x10] sm:$0xff]  }
   0x2   :  { %327 = vmatprep.subr.bf16.mxu0 %v347_v0  ;;  %v350_v3 = vld [vmem:[%s484_s1 + $0x18] sm:$0xff]   ;;  %v355_v4 = vld [vmem:[%s485_s0] sm:$0xff]   ;;  %v352_v6 = vld [vmem:[%s484_s1 + $0x28] sm:$0xff]  }
   0x3   :  { %328 = vmatpush3.bf16.msra.mxu0 %v347_v0  ;;  %343 = vmatprep.mubr.bf16.mxu0 %v355_v4  ;;  %v351_v5 = vld [vmem:[%s484_s1 + $0x20] sm:$0xff]   ;;  %v353_v7 = vld [vmem:[%s484_s1 + $0x30] sm:$0xff]   ;;  %v354_v8 = vld [vmem:[%s484_s1 + $0x38] sm:$0xff]  }
   0x4   :  { %329 = vmatprep.subr.bf16.mxu0 %v348_v1  ;;  %v356_v9 = vld [vmem:[%s485_s0 + $0x8] sm:$0xff]   ;;  %v302_v10 = vld [vmem:[%s486_s2] ss:$0 sm:$0xff]  ;;  %v439_v12 = vld [vmem:[%s487_s3 + $0x10] sm:$0xff] }
   0x5   :  { %v444_v15 = vld [vmem:[%s487_s3] sm:$0xff]  ;;  %v451_v23 = vld [vmem:[%s487_s3 + $0x18] sm:$0xff]  ;;  %v158_v24 = vld [vmem:[%s487_s3 + $0x8] sm:$0xff] }
   0x6   :  { %v313_v56 = vld [vmem:[%s488_s4] ss:$0 sm:$0xff]  ;;  %v314_v58 = vld [vmem:[%s488_s4 + $0x1] ss:$0 sm:$0xff] }
   0x7   :  { %330 = vmatpush3.bf16.msra.mxu0 %v348_v1 }
   0x8   :  { %331 = vmatprep.subr.bf16.mxu0 %v349_v2 }
   0xb   :  { %332 = vmatpush3.bf16.msra.mxu0 %v349_v2 }
   0xc   :  { %333 = vmatprep.subr.bf16.mxu0 %v350_v3 }
   0xf   :  { %334 = vmatpush3.bf16.msra.mxu0 %v350_v3 }
  0x10   :  { %335 = vmatprep.subr.bf16.mxu0 %v351_v5 }
  0x13   :  { %336 = vmatpush3.bf16.msra.mxu0 %v351_v5 }
  0x14   :  { %337 = vmatprep.subr.bf16.mxu0 %v352_v6 }
  0x17   :  { %338 = vmatpush3.bf16.msra.mxu0 %v352_v6 }
  0x18   :  { %339 = vmatprep.subr.bf16.mxu0 %v353_v7 }
  0x1b   :  { %340 = vmatpush3.bf16.msra.mxu0 %v353_v7 }
  0x1c   :  { %341 = vmatprep.subr.bf16.mxu0 %v354_v8 }
  0x1f   :  { %342 = vmatpush3.bf16.msra.mxu0 %v354_v8 }
  0x22   :  { %344 = vmatmul.mubr.bf16.vlgmr.msra.gmra.mrb[0].mxu0 %v356_v9 }
  0xf5   :  { %v345_v11 = vpop.f32.mrb[0].mxu0 }
  0xf6   :  { %v151_v13 = vadd.f32 %v345_v11, %v302_v10  ;;  %v142_v14 = vpop.f32.mrb[1].mxu0 }
  0xf7   :  { %v143_v16 = vadd.f32 %v302_v10, %v142_v14  ;;  %v346_v17 = vpop.f32.mrb[2].mxu0 }
  0xf8   :  { %v154_v18 = vadd.f32 %v346_v17, %v302_v10  ;;  %v145_v19 = vpop.f32.mrb[3].mxu0  ;;  %v163_v20 = vadd.f32 %v439_v12, %v151_v13 }
  0xf9   :  { %v146_v21 = vadd.f32 %v302_v10, %v145_v19  ;;  %v161_v22 = vadd.f32 %v444_v15, %v143_v16 }
  0xfa   :  { %169 = vadd.xlane.f32.xlu1 %v163_v20  ;;  %v164_v25 = vadd.f32 %v451_v23, %v154_v18 }
  0xfb   :  { %165 = vadd.xlane.f32.xlu0 %v161_v22  ;;  %v162_v26 = vadd.f32 %v158_v24, %v146_v21 }
  0xfe   :  { %171 = vadd.xlane.f32.xlu1 %v164_v25 }
  0xff   :  { %167 = vadd.xlane.f32.xlu0 %v162_v26 }
 0x187   :  { %v170_v27 = vpop.xlane.xlu1 %169 }
 0x188   :  { %v166_v28 = vpop.xlane.xlu0 %165  ;;  %v176_v29 = vmul.f32 0.0078125, %v170_v27 }
 0x189   :  { %v174_v30 = vmul.f32 0.0078125, %v166_v28 }
 0x18a   :  { %v180_v34 = vsub.f32 %v163_v20, %v176_v29 }
 0x18b   :  { %v178_v31 = vsub.f32 %v161_v22, %v174_v30  ;;  %v172_v32 = vpop.xlane.xlu1 %171 }
 0x18c   :  { %v168_v33 = vpop.xlane.xlu0 %167  ;;  %v177_v35 = vmul.f32 0.0078125, %v172_v32  ;;  %v184_v40 = vmul.f32 %v180_v34, %v180_v34 }
 0x18d   :  { %v175_v36 = vmul.f32 0.0078125, %v168_v33  ;;  %v182_v37 = vmul.f32 %v178_v31, %v178_v31 }
 0x18e   :  { %v181_v39 = vsub.f32 %v164_v25, %v177_v35 }
 0x18f   :  { %v179_v38 = vsub.f32 %v162_v26, %v175_v36  ;;  %186 = vadd.xlane.f32.xlu0 %v182_v37 }
 0x190   :  { %v185_v42 = vmul.f32 %v181_v39, %v181_v39 }
 0x191   :  { %v183_v41 = vmul.f32 %v179_v38, %v179_v38 }
 0x193   :  { %190 = vadd.xlane.f32.xlu0 %v184_v40  ;;  %188 = vadd.xlane.f32.xlu1 %v183_v41 }
 0x197   :  { %192 = vadd.xlane.f32.xlu1 %v185_v42  ;;  %v315_v42 = vld [vmem:[%s488_s4 + $0x2] ss:$0 sm:$0xff] }
 0x21c   :  { %v187_v43 = vpop.xlane.xlu0 %186 }
 0x21d   :  { %v194_v44 = vmul.f32 0.0078125, %v187_v43 }
 0x21f   :  { %v198_v45 = vadd.f32 1e-05, %v194_v44  ;;  %v316_v44 = vld [vmem:[%s488_s4 + $0x3] ss:$0 sm:$0xff] }
 0x220   :  { %v189_v46 = vpop.xlane.xlu1 %188  ;;  %v191_v47 = vpop.xlane.xlu0 %190 }
 0x221   :  { %357 = vrsqrt.f32 %v198_v45  ;;  %v195_v48 = vmul.f32 0.0078125, %v189_v46  ;;  %v196_v49 = vmul.f32 0.0078125, %v191_v47 }
 0x223   :  { %v199_v50 = vadd.f32 1e-05, %v195_v48  ;;  %v200_v51 = vadd.f32 1e-05, %v196_v49 }
 0x224   :  { %v193_v52 = vpop.xlane.xlu1 %192 }
 0x225   :  { %359 = vrsqrt.f32 %v199_v50  ;;  %v197_v53 = vmul.f32 0.0078125, %v193_v52 }
 0x226   :  { %361 = vrsqrt.f32 %v200_v51 }
 0x227   :  { %v201_v54 = vadd.f32 1e-05, %v197_v53 }
 0x229   :  { %363 = vrsqrt.f32 %v201_v54 }
 0x22b   :  { %v358_v55 = vpop.eup %357 }
 0x22c   :  { %v206_v57 = vmul.f32 %v358_v55, %v178_v31 }
 0x22e   :  { %v215_v59 = vmul.f32 %v313_v56, %v206_v57 }
 0x22f   :  { %v360_v60 = vpop.eup %359 }
 0x230   :  { %v362_v61 = vpop.eup %361  ;;  %v224_v62 = vadd.f32 %v314_v58, %v215_v59  ;;  %v207_v63 = vmul.f32 %v360_v60, %v179_v38 }
 0x231   :  { %v208_v0 = vmul.f32 %v362_v61, %v180_v34 }
 0x232   :  { %v228_v1 = vadd.f32 %v224_v62, %v444_v15  ;;  %v216_v2 = vmul.f32 %v313_v56, %v207_v63 }
 0x233   :  { %v364_v3 = vpop.eup %363  ;;  %v217_v4 = vmul.f32 %v313_v56, %v208_v0 }
 0x234   :  { %232 = vadd.xlane.f32.xlu0 %v228_v1  ;;  %v225_v5 = vadd.f32 %v314_v58, %v216_v2  ;;  %v209_v6 = vmul.f32 %v364_v3, %v181_v39 }
 0x235   :  { %v226_v7 = vadd.f32 %v314_v58, %v217_v4 }
 0x236   :  { %v229_v8 = vadd.f32 %v225_v5, %v158_v24  ;;  %v218_v9 = vmul.f32 %v313_v56, %v209_v6 }
 0x237   :  { %v230_v10 = vadd.f32 %v226_v7, %v439_v12 }
 0x238   :  { %234 = vadd.xlane.f32.xlu1 %v229_v8  ;;  %v227_v11 = vadd.f32 %v314_v58, %v218_v9 }
 0x239   :  { %236 = vadd.xlane.f32.xlu0 %v230_v10 }
 0x23a   :  { %v231_v13 = vadd.f32 %v227_v11, %v451_v23 }
 0x23c   :  { %238 = vadd.xlane.f32.xlu1 %v231_v13 }
 0x2c1   :  { %v233_v14 = vpop.xlane.xlu0 %232 }
 0x2c2   :  { %v240_v16 = vmul.f32 0.0078125, %v233_v14 }
 0x2c4   :  { %v244_v15 = vsub.f32 %v228_v1, %v240_v16 }
 0x2c5   :  { %v235_v17 = vpop.xlane.xlu1 %234 }
 0x2c6   :  { %v241_v18 = vmul.f32 0.0078125, %v235_v17  ;;  %v237_v19 = vpop.xlane.xlu0 %236  ;;  %v248_v20 = vmul.f32 %v244_v15, %v244_v15 }
 0x2c7   :  { %v242_v21 = vmul.f32 0.0078125, %v237_v19 }
 0x2c8   :  { %v245_v22 = vsub.f32 %v229_v8, %v241_v18  ;;  %252 = vadd.xlane.f32.xlu0 %v248_v20 }
 0x2c9   :  { %v246_v24 = vsub.f32 %v230_v10, %v242_v21  ;;  %v239_v25 = vpop.xlane.xlu1 %238 }
 0x2ca   :  { %v243_v26 = vmul.f32 0.0078125, %v239_v25  ;;  %v249_v12 = vmul.f32 %v245_v22, %v245_v22 }
 0x2cb   :  { %v250_v27 = vmul.f32 %v246_v24, %v246_v24 }
 0x2cc   :  { %v247_v28 = vsub.f32 %v231_v13, %v243_v26  ;;  %254 = vadd.xlane.f32.xlu1 %v249_v12 }
 0x2cd   :  { %256 = vadd.xlane.f32.xlu0 %v250_v27 }
 0x2ce   :  { %v251_v23 = vmul.f32 %v247_v28, %v247_v28 }
 0x2d0   :  { %258 = vadd.xlane.f32.xlu1 %v251_v23 }
 0x355   :  { %v253_v29 = vpop.xlane.xlu0 %252 }
 0x356   :  { %v260_v30 = vmul.f32 0.0078125, %v253_v29 }
 0x358   :  { %v264_v31 = vadd.f32 1e-05, %v260_v30 }
 0x359   :  { %v255_v32 = vpop.xlane.xlu1 %254 }
 0x35a   :  { %365 = vrsqrt.f32 %v264_v31  ;;  %v261_v33 = vmul.f32 0.0078125, %v255_v32  ;;  %v257_v34 = vpop.xlane.xlu0 %256 }
 0x35b   :  { %v262_v35 = vmul.f32 0.0078125, %v257_v34 }
 0x35c   :  { %v265_v36 = vadd.f32 1e-05, %v261_v33 }
 0x35d   :  { %v266_v37 = vadd.f32 1e-05, %v262_v35  ;;  %v259_v38 = vpop.xlane.xlu1 %258 }
 0x35e   :  { %367 = vrsqrt.f32 %v265_v36  ;;  %v263_v39 = vmul.f32 0.0078125, %v259_v38 }
 0x35f   :  { %369 = vrsqrt.f32 %v266_v37 }
 0x360   :  { %v267_v40 = vadd.f32 1e-05, %v263_v39 }
 0x362   :  { %371 = vrsqrt.f32 %v267_v40 }
 0x364   :  { %v366_v41 = vpop.eup %365 }
 0x365   :  { %v272_v43 = vmul.f32 %v366_v41, %v244_v15 }
 0x367   :  { %v281_v45 = vmul.f32 %v315_v42, %v272_v43 }
 0x368   :  { %v368_v46 = vpop.eup %367 }
 0x369   :  { %v370_v47 = vpop.eup %369  ;;  %v290_v48 = vadd.f32 %v316_v44, %v281_v45  ;;  %v273_v49 = vmul.f32 %v368_v46, %v245_v22 }
 0x36a   :  { %v274_v50 = vmul.f32 %v370_v47, %v246_v24 }
 0x36b   :  { %294 = vst [vmem:[%s489_s5] sm:$0xff] %v290_v48  ;;  %v282_v51 = vmul.f32 %v315_v42, %v273_v49 }
 0x36c   :  { %v372_v52 = vpop.eup %371  ;;  %v283_v53 = vmul.f32 %v315_v42, %v274_v50 }
 0x36d   :  { %v291_v54 = vadd.f32 %v316_v44, %v282_v51  ;;  %v275_v55 = vmul.f32 %v372_v52, %v247_v28 }
 0x36e   :  { %v292_v56 = vadd.f32 %v316_v44, %v283_v53 }
 0x36f   :  { %295 = vst [vmem:[%s489_s5 + $0x8] sm:$0xff] %v291_v54  ;;  %v284_v57 = vmul.f32 %v315_v42, %v275_v55 }
 0x370   :  { %296 = vst [vmem:[%s489_s5 + $0x10] sm:$0xff] %v292_v56 }
 0x371   :  { %v293_v58 = vadd.f32 %v316_v44, %v284_v57 }
 0x373   :  { %297 = vst [vmem:[%s489_s5 + $0x18] sm:$0xff] %v293_v58 }

// kernel: transzero_forward.25
= control target key start
LH: loop header
LB: loop body
LE: loop exit
PB: predicated region body
PF: predicated region fallthrough
CT: control target
= control target key end

     0   :  { %s809_s15 = smov 0   ;;  %s811_s16 = smov 0   ;;  %s864_s0 = inlined_call_operand.vmem [shape: bf16[2,16,128], index: 0, kind: input, shape index: {}]   ;;  %s865_s1 = inlined_call_operand.vmem [shape: bf16[2,128,16], index: 1, kind: input, shape index: {}]   ;;  %s866_s2 = inlined_call_operand.vmem [shape: bf16[2,16,128], index: 2, kind: input, shape index: {}]   ;;  %s867_s3 = inlined_call_operand.vmem [shape: f32[16,16], index: 3, kind: input, shape index: {}]   ;;  %s868_s4 = inlined_call_operand.vmem [shape: bf16[2,16,128], index: 4, kind: output, shape index: {}]  }
   0x1   :  { %s813_s17 = smov 0  }
   0x2 LB: > { %s26_s18 = sadd.s32 1, %s776_s16  ;;  %p642_p0 = scmp.ge.s32.totalorder %s780_s17, 1  ;;  %s780_s17 = sphi %s813_s17, %s14_s17   ;;  %s776_s16 = sphi %s811_s16, %s870_s16   ;;  %s772_s15 = sphi %s809_s15, %s869_s15  }
   0x3   : > { %p28_p1 = scmp.ge.s32.totalorder %s26_s18, 2  ;;  %p214_p2 = scmp.lt.s32.totalorder %s780_s17, 3 }
   0x5   : > { %s872_s18 = smov (%p28_p1, %s26_s18), 0  ;;  %p215_p3 = pnand %p642_p0, %p214_p2 }
   0x6   : > { %p264_p4 = scmp.lt.s32.totalorder (!%p215_p3), %s772_s15, 1  ;;  %v782_v0 = vmov (!%p215_p3), 0.0   ;;  %vm783_vm0 = vmmov (!%p215_p3), 0   ;;  %v415_v11 = vld [vmem:[%s867_s3] sm:$0xff] (!%p215_p3)  ;;  %vm419_vm1 = vcmask (!%p215_p3), 130048   ;;  %v416_v15 = vld [vmem:[%s867_s3 + $0x8] sm:$0xff] (!%p215_p3) }
   0x7   : > { %218 = sbr.rel (%p215_p3) target bundleno = 648 (0x288), region = 36  ;;  %688 = vmatprep.subr.bf16.mxu0 (!%p215_p3), %v782_v0  ;;  %704 = vmatprep.mubr.msk.bf16.mxu0 (!%p215_p3), %vm783_vm0, %v782_v0 }
   0x8   : > { %708 = vmatprep.subr.bf16.mxu1 (!%p215_p3), %v782_v0  ;;  %710 = vmatprep.mubr.msk.bf16.mxu1 (!%p215_p3), %vm783_vm0, %v782_v0 }
   0xe   : > { %s874_s15 = smov (!%p264_p4, %s772_s15), 1 }
   0xf   : > { %s667_s19 = sshll.u32 %s874_s15, 6  ;;  %s830_s23 = sshll.u32 %s874_s15, 3 }
  0x10   : > { %s277_s22 = scalar_lea.vmem %s865_s1, %s667_s19  ;;  %s271_s26 = scalar_lea.vmem %s864_s0, %s830_s23 }
  0x11   : > { %v740_v1 = vld [vmem:[%s277_s22] sm:$0xff]   ;;  %v741_v2 = vld [vmem:[%s277_s22 + $0x8] sm:$0xff]   ;;  %v742_v3 = vld [vmem:[%s277_s22 + $0x10] sm:$0xff]   ;;  %s282_s7 = scalar_lea.vmem %s866_s2, %s830_s23  ;;  %s297_s10 = scalar_lea.vmem %s868_s4, %s830_s23 }
  0x12   : > { %689 = vmatpush3.bf16.msra.mxu0 %v740_v1  ;;  %v743_v4 = vld [vmem:[%s277_s22 + $0x18] sm:$0xff]   ;;  %v744_v5 = vld [vmem:[%s277_s22 + $0x20] sm:$0xff]   ;;  %v745_v6 = vld [vmem:[%s277_s22 + $0x28] sm:$0xff]  }
  0x13   : > { %690 = vmatprep.subr.bf16.mxu0 %v782_v0  ;;  %v746_v7 = vld [vmem:[%s277_s22 + $0x30] sm:$0xff]   ;;  %v747_v8 = vld [vmem:[%s277_s22 + $0x38] sm:$0xff]   ;;  %v748_v9 = vld [vmem:[%s271_s26] sm:$0xff]  }
  0x14   : > { %v749_v22 = vld [vmem:[%s282_s7] sm:$0xff]  }
  0x15   : > { %709 = vmatpush3.bf16.msra.mxu1 %v749_v22 }
  0x16   : > { %691 = vmatpush3.bf16.msra.mxu0 %v741_v2 }
  0x17   : > { %692 = vmatprep.subr.bf16.mxu0 %v782_v0 }
  0x1a   : > { %693 = vmatpush3.bf16.msra.mxu0 %v742_v3 }
  0x1b   : > { %694 = vmatprep.subr.bf16.mxu0 %v782_v0 }
  0x1e   : > { %695 = vmatpush3.bf16.msra.mxu0 %v743_v4 }
  0x1f   : > { %696 = vmatprep.subr.bf16.mxu0 %v782_v0 }
  0x22   : > { %697 = vmatpush3.bf16.msra.mxu0 %v744_v5 }
  0x23   : > { %698 = vmatprep.subr.bf16.mxu0 %v782_v0 }
  0x26   : > { %699 = vmatpush3.bf16.msra.mxu0 %v745_v6 }
  0x27   : > { %700 = vmatprep.subr.bf16.mxu0 %v782_v0 }
  0x2a   : > { %701 = vmatpush3.bf16.msra.mxu0 %v746_v7 }
  0x2b   : > { %702 = vmatprep.subr.bf16.mxu0 %v782_v0 }
  0x2e   : > { %703 = vmatpush3.bf16.msra.mxu0 %v747_v8 }
  0x31   : > { %705 = vmatmul.mubr.bf16.vlgmr.msra.gmra.mrb[0].mxu0 %v748_v9 }
 0x104   : > { %v406_v10 = vpop.f32.mrb[0].mxu0 }
 0x105   : > { %v413_v12 = vmul.f32 0.088388346, %v406_v10  ;;  %v706_v13 = vpop.f32.mrb[1].mxu0 }
 0x106   : > { %v409_v14 = vpop.f32.mrb[2].mxu0 }
 0x107   : > { %v414_v16 = vmul.f32 0.088388346, %v409_v14  ;;  %v707_v17 = vpop.f32.mrb[3].mxu0  ;;  %v417_v18 = vsub.f32 %v413_v12, %v415_v11 }
 0x109   : > { %v420_v19 = vsel %vm419_vm1, %v417_v18, -inf  ;;  %v418_v20 = vsub.f32 %v414_v16, %v416_v15 }
 0x10a   : > { %421 = vmax.xlane.f32.xlu0 %v420_v19 }
 0x10b   : > { %v423_v21 = vsel %vm419_vm1, %v418_v20, -inf }
 0x10e   : > { %424 = vmax.xlane.f32.xlu0 %v423_v21 }
 0x197   : > { %v422_v23 = vpop.xlane.xlu0 %421 }
 0x198   : > { %v426_v24 = vsub.f32 %v417_v18, %v422_v23 }
 0x19a   : > { %v428_v25 = vmul.f32 1.442695, %v426_v24 }
 0x19b   : > { %v425_v26 = vpop.xlane.xlu0 %424 }
 0x19c   : > { %750 = vpow2.f32 %v428_v25  ;;  %v427_v27 = vsub.f32 %v418_v20, %v425_v26 }
 0x19e   : > { %v430_v28 = vmul.f32 1.442695, %v427_v27 }
 0x1a0   : > { %752 = vpow2.f32 %v430_v28 }
 0x1a6   : > { %v751_v29 = vpop.eup %750 }
 0x1a7   : > { %v432_v30 = vsel %vm419_vm1, %v751_v29, 0.0 }
 0x1a8   : > { %433 = vadd.xlane.f32.xlu1 %v432_v30 }
 0x1aa   : > { %v753_v31 = vpop.eup %752 }
 0x1ab   : > { %v435_v32 = vsel %vm419_vm1, %v753_v31, 0.0  ;;  %v438_v33 = vpack.c.bf16 %v753_v31, %v751_v29 }
 0x1ac   : > { %436 = vadd.xlane.f32.xlu1 %v435_v32 }
 0x1ad   : > { %711 = vmatmul.mubr.msk.bf16.vlgmr.msra.gmra.mrb[0].mxu1 %vm419_vm1, %v438_v33 }
 0x235   : > { %v434_v34 = vpop.xlane.xlu1 %433 }
 0x236   : > { %754 = vrcp.f32 %v434_v34 }
 0x239   : > { %v437_v35 = vpop.xlane.xlu1 %436 }
 0x23a   : > { %756 = vrcp.f32 %v437_v35 }
 0x240   : > { %v755_v36 = vpop.eup %754 }
 0x241   : > { %v493_v38 = vmul.f32 %v755_v36, %v434_v34 }
 0x243   : > { %v495_v40 = vsub.f32 2.0, %v493_v38 }
 0x244   : > { %v757_v37 = vpop.eup %756 }
 0x245   : > { %v494_v39 = vmul.f32 %v757_v37, %v437_v35  ;;  %v497_v43 = vmul.f32 %v755_v36, %v495_v40 }
 0x247   : > { %v496_v41 = vsub.f32 2.0, %v494_v39 }
 0x249   : > { %v498_v45 = vmul.f32 %v757_v37, %v496_v41 }
 0x280   : > { %v484_v42 = vpop.f32.mrb[0].mxu1 }
 0x281   : > { %v712_v44 = vpop.f32.mrb[1].mxu1  ;;  %v499_v47 = vmul.f32 %v497_v43, %v484_v42 }
 0x282   : > { %v487_v46 = vpop.f32.mrb[2].mxu1 }
 0x283   : > { %v500_v48 = vmul.f32 %v498_v45, %v487_v46  ;;  %v713_v49 = vpop.f32.mrb[3].mxu1 }
 0x285   : > { %v675_v50 = vpack.c.bf16 %v500_v48, %v499_v47 }
 0x287   : > { %676 = vst [vmem:[%s297_s10] sm:$0xff] %v675_v50  }
 0x288 PF: > { %s14_s17 = sadd.s32 1, %s780_s17   ;;  %s869_s15 = smov %s776_s16 }
 0x289   : > { %p11_p5 = scmp.ge.s32.totalorder %s14_s17, 4   ;;  %s870_s16 = smov %s872_s18 }
 0x28b   :  { %13 = sbr.rel (!%p11_p5) target bundleno = 2 (0x2), region = 75 }

// kernel: transzero_forward.33
= control target key start
LH: loop header
LB: loop body
LE: loop exit
PB: predicated region body
PF: predicated region fallthrough
CT: control target
= control target key end

     0   :  { %s658_s12 = smov 0   ;;  %s660_s13 = smov 0   ;;  %s709_s0 = inlined_call_operand.vmem [shape: bf16[2,8,128], index: 0, kind: input, shape index: {}]   ;;  %s710_s1 = inlined_call_operand.vmem [shape: bf16[2,128,16], index: 1, kind: input, shape index: {}]   ;;  %s711_s2 = inlined_call_operand.vmem [shape: bf16[2,16,128], index: 2, kind: input, shape index: {}]   ;;  %s712_s3 = inlined_call_operand.vmem [shape: bf16[2,8,128], index: 3, kind: output, shape index: {}]  }
   0x1   :  { %s662_s14 = smov 0  }
   0x2 LB: > { %s25_s15 = sadd.s32 1, %s630_s13  ;;  %p515_p0 = scmp.ge.s32.totalorder %s634_s14, 1  ;;  %s634_s14 = sphi %s662_s14, %s13_s14   ;;  %s630_s13 = sphi %s660_s13, %s714_s13   ;;  %s626_s12 = sphi %s658_s12, %s713_s12  }
   0x3   : > { %p27_p1 = scmp.ge.s32.totalorder %s25_s15, 2  ;;  %p175_p2 = scmp.lt.s32.totalorder %s634_s14, 3 }
   0x5   : > { %s716_s15 = smov (%p27_p1, %s25_s15), 0  ;;  %p176_p3 = pnand %p515_p0, %p175_p2 }
   0x6   : > { %p213_p4 = scmp.lt.s32.totalorder (!%p176_p3), %s626_s12, 1  ;;  %v636_v0 = vmov (!%p176_p3), 0.0   ;;  %vm637_vm0 = vmmov (!%p176_p3), 0   ;;  %vm344_vm1 = vcmask (!%p176_p3), 130048  }
   0x7   : > { %179 = sbr.rel (%p176_p3) target bundleno = 640 (0x280), region = 32  ;;  %547 = vmatprep.subr.bf16.mxu0 (!%p176_p3), %v636_v0  ;;  %563 = vmatprep.mubr.msk.bf16.mxu0 (!%p176_p3), %vm637_vm0, %v636_v0 }
   0x8   : > { %567 = vmatprep.subr.bf16.mxu1 (!%p176_p3), %v636_v0  ;;  %569 = vmatprep.mubr.msk.bf16.mxu1 (!%p176_p3), %vm637_vm0, %v636_v0 }
   0xe   : > { %s718_s12 = smov (!%p213_p4, %s626_s12), 1 }
   0xf   : > { %s534_s16 = sshll.u32 %s718_s12, 6  ;;  %s516_s20 = sshll.u32 %s718_s12, 2 }
  0x10   : > { %s224_s19 = scalar_lea.vmem %s710_s1, %s534_s16  ;;  %s219_s23 = scalar_lea.vmem %s709_s0, %s516_s20 }
  0x11   : > { %v599_v1 = vld [vmem:[%s224_s19] sm:$0xff]   ;;  %v600_v2 = vld [vmem:[%s224_s19 + $0x8] sm:$0xff]   ;;  %v601_v3 = vld [vmem:[%s224_s19 + $0x10] sm:$0xff]   ;;  %s535_s24 = sshll.u32 %s718_s12, 3  ;;  %s236_s30 = scalar_lea.vmem %s712_s3, %s516_s20 }
  0x12   : > { %548 = vmatpush3.bf16.msra.mxu0 %v599_v1  ;;  %v602_v4 = vld [vmem:[%s224_s19 + $0x18] sm:$0xff]   ;;  %v603_v5 = vld [vmem:[%s224_s19 + $0x20] sm:$0xff]   ;;  %v604_v6 = vld [vmem:[%s224_s19 + $0x28] sm:$0xff]   ;;  %s229_s27 = scalar_lea.vmem %s711_s2, %s535_s24 }
  0x13   : > { %549 = vmatprep.subr.bf16.mxu0 %v636_v0  ;;  %v605_v7 = vld [vmem:[%s224_s19 + $0x30] sm:$0xff]   ;;  %v606_v8 = vld [vmem:[%s224_s19 + $0x38] sm:$0xff]   ;;  %v238_v9 = vld [vmem:[%s219_s23] sm:$0xf] }
  0x14   : > { %v607_v16 = vld [vmem:[%s229_s27] sm:$0xff]  }
  0x15   : > { %568 = vmatpush3.bf16.msra.mxu1 %v607_v16 }
  0x16   : > { %550 = vmatpush3.bf16.msra.mxu0 %v600_v2 }
  0x17   : > { %551 = vmatprep.subr.bf16.mxu0 %v636_v0 }
  0x1a   : > { %552 = vmatpush3.bf16.msra.mxu0 %v601_v3 }
  0x1b   : > { %553 = vmatprep.subr.bf16.mxu0 %v636_v0 }
  0x1e   : > { %554 = vmatpush3.bf16.msra.mxu0 %v602_v4 }
  0x1f   : > { %555 = vmatprep.subr.bf16.mxu0 %v636_v0 }
  0x22   : > { %556 = vmatpush3.bf16.msra.mxu0 %v603_v5 }
  0x23   : > { %557 = vmatprep.subr.bf16.mxu0 %v636_v0 }
  0x26   : > { %558 = vmatpush3.bf16.msra.mxu0 %v604_v6 }
  0x27   : > { %559 = vmatprep.subr.bf16.mxu0 %v636_v0 }
  0x2a   : > { %560 = vmatpush3.bf16.msra.mxu0 %v605_v7 }
  0x2b   : > { %561 = vmatprep.subr.bf16.mxu0 %v636_v0 }
  0x2e   : > { %562 = vmatpush3.bf16.msra.mxu0 %v606_v8 }
  0x31   : > { %564 = vmatmul.mubr.bf16.vlgmr.msra.gmra.mrb[0].mxu0 %v238_v9 }
 0x104   : > { %v337_v10 = vpop.f32.mrb[0].mxu0 }
 0x105   : > { %v343_v11 = vmul.f32 0.088388346, %v337_v10  ;;  %v565_v12 = vpop.f32.mrb[1].mxu0 }
 0x106   : > { %v340_v13 = vpop.f32.mrb[2].mxu0 }
 0x107   : > { %v566_v14 = vpop.f32.mrb[3].mxu0  ;;  %v345_v15 = vsel %vm344_vm1, %v343_v11, -inf }
 0x108   : > { %346 = vmax.xlane.f32.xlu0 %v345_v15 }
 0x195   : > { %v347_v17 = vpop.xlane.xlu0 %346 }
 0x196   : > { %v348_v18 = vsub.f32 %v343_v11, %v347_v17 }
 0x198   : > { %v349_v19 = vmul.f32 1.442695, %v348_v18 }
 0x19a   : > { %608 = vpow2.f32 %v349_v19 }
 0x1a4   : > { %v609_v20 = vpop.eup %608 }
 0x1a5   : > { %v351_v21 = vsel %vm344_vm1, %v609_v20, 0.0  ;;  %v354_v22 = vpack.c.bf16 %v609_v20, %v609_v20 }
 0x1a6   : > { %352 = vadd.xlane.f32.xlu0 %v351_v21 }
 0x1a7   : > { %570 = vmatmul.mubr.msk.bf16.vlgmr.msra.gmra.mrb[0].mxu1 %vm344_vm1, %v354_v22 }
 0x233   : > { %v353_v23 = vpop.xlane.xlu0 %352 }
 0x234   : > { %610 = vrcp.f32 %v353_v23 }
 0x23e   : > { %v611_v24 = vpop.eup %610 }
 0x23f   : > { %v407_v25 = vmul.f32 %v611_v24, %v353_v23 }
 0x241   : > { %v408_v26 = vsub.f32 2.0, %v407_v25 }
 0x243   : > { %v409_v27 = vmul.f32 %v611_v24, %v408_v26 }
 0x27a   : > { %v400_v28 = vpop.f32.mrb[0].mxu1 }
 0x27b   : > { %v410_v29 = vmul.f32 %v409_v27, %v400_v28  ;;  %v571_v30 = vpop.f32.mrb[1].mxu1 }
 0x27c   : > { %v403_v31 = vpop.f32.mrb[2].mxu1 }
 0x27d   : > { %v411_v32 = vpack.c.bf16 %v410_v29, %v410_v29  ;;  %v572_v33 = vpop.f32.mrb[3].mxu1 }
 0x27f   : > { %412 = vst [vmem:[%s236_s30] sm:$0xf] %v411_v32 }
 0x280 PF: > { %s13_s14 = sadd.s32 1, %s634_s14   ;;  %s713_s12 = smov %s630_s13 }
 0x281   : > { %p10_p5 = scmp.ge.s32.totalorder %s13_s14, 4   ;;  %s714_s13 = smov %s716_s15 }
 0x283   :  { %12 = sbr.rel (!%p10_p5) target bundleno = 2 (0x2), region = 68 }

// kernel: transzero_forward.37
= control target key start
LH: loop header
LB: loop body
LE: loop exit
PB: predicated region body
PF: predicated region fallthrough
CT: control target
= control target key end

     0   :  { %s211_s0 = inlined_call_operand.vmem [shape: f32[2,8,128], index: 0, kind: input, shape index: {}]   ;;  %s212_s1 = inlined_call_operand.vmem [shape: f32[8,128], index: 1, kind: input, shape index: {}]   ;;  %s213_s2 = inlined_call_operand.vmem [shape: bf16[8,16], index: 2, kind: input, shape index: {}]   ;;  %s214_s3 = inlined_call_operand.vmem [shape: f32[1,16], index: 3, kind: input, shape index: {}]   ;;  %s215_s4 = inlined_call_operand.hbm [shape: f32[2,16], index: 4, kind: output, shape index: {}]  }
   0x1   :  { %v19_v0 = vld [vmem:[%s211_s0] sm:$0xff]  ;;  %v20_v2 = vld [vmem:[%s211_s0 + $0x8] sm:$0xff] }
   0x2   :  { %v21_v1 = vld [vmem:[%s212_s1] sm:$0xff] }
   0x3   :  { %v22_v3 = vmul.f32 %v21_v1, %v19_v0 }
   0x4   :  { %9 = vsyncpa [#allocation3], 0  ;;  %v23_v4 = vmul.f32 %v21_v1, %v20_v2  ;;  %v30_v5 = vld [vmem:[%s213_s2] sm:$0xf]  ;;  %vm59_vm0 = vcmask 1043456   ;;  %v156_v6 = vmov 0.0   ;;  %v42_v8 = vlaneseq }
   0x5   :  { %24 = vadd.xlane.f32.xlu0 %v22_v3  ;;  %123 = vmatprep.subr.bf16.mxu0 %v156_v6  ;;  %v61_v7 = vsel %vm59_vm0, %v30_v5, 0  ;;  %vm157_vm1 = vmmov 0   ;;  %vm52_vm2 = vcmask 1041409   ;;  %vm55_vm3 = vcmask 64512   ;;  %v119_v22 = vld [vmem:[%s214_s3] ss:$0 sm:$0xff] }
   0x6   :  { %124 = vmatpush3.bf16.msra.mxu0 %v61_v7  ;;  %125 = vmatprep.mubr.msk.bf16.mxu0 %vm157_vm1, %v156_v6  ;;  %v43_v10 = vand.u32 127, %v42_v8  ;;  %v45_v11 = vshrl.u32 %v42_v8, 7  ;;  %s158_s2 = smov [#allocation2]   ;;  %vm103_vm4 = vcmask 123904  }
   0x7   :  { %s111_s23 = sshll.u32 %s158_s2, 4  ;;  %s112_s23 = int_to_ptr.vmem [resolvable:$true] %s111_s23 }
   0x8   :  { %v46_v14 = vsub.s32 %v43_v10, %v45_v11  ;;  %s132_s24 = scalar_lea.vmem %s112_s23, 32  ;;  %p137_p1 = scmp.lt.s32.totalorder %s112_s23, %s112_s23 }
   0x9   :  { %26 = vadd.xlane.f32.xlu0 %v23_v4  ;;  %p133_p0 = scmp.ne.s32.totalorder %s112_s23, %s132_s24  ;;  %p138_p2 = scmp.lt.s32.totalorder %s132_s24, %s132_s24 }
   0xb   :  { %p139_p3 = por %p138_p2, %p137_p1 }
   0xd   :  { %p140_p4 = pnand %p139_p3, %p133_p0 }
  0x92   :  { %v25_v9 = vpop.xlane.xlu0 %24 }
  0x93   :  { %v28_v12 = vpack.c.bf16 %v25_v9, %v25_v9 }
  0x95   :  { %v40_v15 = vunpack.c.l.b16 %v28_v12 }
  0x96   :  { %v27_v13 = vpop.xlane.xlu0 %26 }
  0x97   :  { %v29_v16 = vpack.c.bf16 %v27_v13, %v27_v13  ;;  %v47_v18 = vrot.slane %v40_v15, %v46_v14 }
  0x99   :  { %v41_v17 = vunpack.c.l.b16 %v29_v16 }
  0x9b   :  { %v51_v19 = vrot.slane %v41_v17, %v46_v14 }
  0x9d   :  { %v53_v20 = vsel %vm52_vm2, %v51_v19, %v47_v18 }
  0x9e   :  { %v54_v21 = vpack.c.b16 %v53_v20, %v53_v20 }
  0xa0   :  { %126 = vmatmul.mubr.msk.bf16.vlgmr.msra.gmra.mrb[0].mxu0 %vm55_vm3, %v54_v21 }
 0x173   :  { %v97_v23 = vpop.f32.mrb[0].mxu0 }
 0x174   :  { %v98_v24 = vadd.f32 %v119_v22, %v97_v23  ;;  %v127_v25 = vpop.f32.mrb[1].mxu0 }
 0x175   :  { %v100_v26 = vpop.f32.mrb[2].mxu0 }
 0x176   :  { %v128_v27 = vpop.f32.mrb[3].mxu0  ;;  %104 = vst.msk [vmem:[#allocation2] sm:$0x3] %vm103_vm4, %v98_v24 }
 0x177   :  { %143 = shalt.err (!%p140_p4)
}
 0x178   :  { %s144_s3 = scalar_lea.hbm %s215_s4, 32 }
 0x179   :  { %p145_p5 = scmp.ne.s32.totalorder %s215_s4, %s144_s3  ;;  %p148_p6 = scmp.lt.u32.totalorder %s144_s3, %s215_s4 }
 0x17b   :  { %p150_p7 = pnand %p148_p6, %p145_p5 }
 0x17d   :  { %153 = shalt.err (!%p150_p7)
}
 0x17e   :  { %114 = dma.vmem_to_hbm [thread:$0]  %s112_s23, 32, %s215_s4, [#allocation3]  }
 0x17f   :  { %154 = dma.done.wait [#allocation3], 32  }
 0x180   :  { %155 = vsyncadd [#allocation3], 4294967264 }
 0x181   :  { %118 = vsyncpa [#allocation3], 1 }

// kernel: transzero_forward.34
= control target key start
LH: loop header
LB: loop body
LE: loop exit
PB: predicated region body
PF: predicated region fallthrough
CT: control target
= control target key end

     0   :  { %v244_v0 = vmov 0.0   ;;  %vm245_vm0 = vmmov 0   ;;  %s324_s1 = inlined_call_operand.vmem [shape: bf16[128,128], index: 1, kind: input, shape index: {}]   ;;  %s325_s0 = inlined_call_operand.vmem [shape: bf16[16,128], index: 0, kind: input, shape index: {}]   ;;  %s326_s2 = inlined_call_operand.vmem [shape: f32[1,128], index: 2, kind: input, shape index: {}]   ;;  %s327_s3 = inlined_call_operand.vmem [shape: f32[16,128], index: 3, kind: input, shape index: {}]   ;;  %s328_s4 = inlined_call_operand.vmem [shape: f32[2,128], index: 4, kind: input, shape index: {}]   ;;  %s329_s5 = inlined_call_operand.vmem [shape: f32[16,128], index: 5, kind: output, shape index: {}]  }
   0x1   :  { %209 = vmatprep.subr.bf16.mxu0 %v244_v0  ;;  %v231_v1 = vld [vmem:[%s324_s1] sm:$0xff]   ;;  %225 = vmatprep.mubr.msk.bf16.mxu0 %vm245_vm0, %v244_v0  ;;  %v232_v2 = vld [vmem:[%s324_s1 + $0x8] sm:$0xff]   ;;  %v233_v3 = vld [vmem:[%s324_s1 + $0x10] sm:$0xff]  }
   0x2   :  { %210 = vmatpush3.bf16.msra.mxu0 %v231_v1  ;;  %v234_v4 = vld [vmem:[%s324_s1 + $0x18] sm:$0xff]   ;;  %v235_v5 = vld [vmem:[%s324_s1 + $0x20] sm:$0xff]   ;;  %v236_v6 = vld [vmem:[%s324_s1 + $0x28] sm:$0xff]  }
   0x3   :  { %211 = vmatprep.subr.bf16.mxu0 %v244_v0  ;;  %v237_v7 = vld [vmem:[%s324_s1 + $0x30] sm:$0xff]   ;;  %v238_v8 = vld [vmem:[%s324_s1 + $0x38] sm:$0xff]   ;;  %v239_v9 = vld [vmem:[%s325_s0] sm:$0xff]  }
   0x4   :  { %v188_v10 = vld [vmem:[%s326_s2] ss:$0 sm:$0xff]  ;;  %v142_v19 = vld [vmem:[%s327_s3 + $0x8] sm:$0xff]  ;;  %v199_v38 = vld [vmem:[%s328_s4 + $0x1] ss:$0 sm:$0xff] }
   0x5   :  { %v141_v12 = vld [vmem:[%s327_s3] sm:$0xff] }
   0x6   :  { %212 = vmatpush3.bf16.msra.mxu0 %v232_v2  ;;  %v198_v36 = vld [vmem:[%s328_s4] ss:$0 sm:$0xff] }
   0x7   :  { %213 = vmatprep.subr.bf16.mxu0 %v244_v0 }
   0xa   :  { %214 = vmatpush3.bf16.msra.mxu0 %v233_v3 }
   0xb   :  { %215 = vmatprep.subr.bf16.mxu0 %v244_v0 }
   0xe   :  { %216 = vmatpush3.bf16.msra.mxu0 %v234_v4 }
   0xf   :  { %217 = vmatprep.subr.bf16.mxu0 %v244_v0 }
  0x12   :  { %218 = vmatpush3.bf16.msra.mxu0 %v235_v5 }
  0x13   :  { %219 = vmatprep.subr.bf16.mxu0 %v244_v0 }
  0x16   :  { %220 = vmatpush3.bf16.msra.mxu0 %v236_v6 }
  0x17   :  { %221 = vmatprep.subr.bf16.mxu0 %v244_v0 }
  0x1a   :  { %222 = vmatpush3.bf16.msra.mxu0 %v237_v7 }
  0x1b   :  { %223 = vmatprep.subr.bf16.mxu0 %v244_v0 }
  0x1e   :  { %224 = vmatpush3.bf16.msra.mxu0 %v238_v8 }
  0x21   :  { %226 = vmatmul.mubr.bf16.vlgmr.msra.gmra.mrb[0].mxu0 %v239_v9 }
  0xf4   :  { %v134_v11 = vpop.f32.mrb[0].mxu0 }
  0xf5   :  { %v135_v13 = vadd.f32 %v188_v10, %v134_v11  ;;  %v227_v14 = vpop.f32.mrb[1].mxu0 }
  0xf6   :  { %v137_v15 = vpop.f32.mrb[2].mxu0 }
  0xf7   :  { %v138_v16 = vadd.f32 %v188_v10, %v137_v15  ;;  %v228_v17 = vpop.f32.mrb[3].mxu0  ;;  %v143_v18 = vadd.f32 %v141_v12, %v135_v13 }
  0xf9   :  { %145 = vadd.xlane.f32.xlu0 %v143_v18  ;;  %v144_v20 = vadd.f32 %v142_v19, %v138_v16 }
  0xfd   :  { %147 = vadd.xlane.f32.xlu0 %v144_v20 }
 0x186   :  { %v146_v21 = vpop.xlane.xlu0 %145 }
 0x187   :  { %v150_v22 = vmul.f32 0.0078125, %v146_v21 }
 0x189   :  { %v152_v23 = vsub.f32 %v143_v18, %v150_v22 }
 0x18a   :  { %v148_v24 = vpop.xlane.xlu0 %147 }
 0x18b   :  { %v151_v25 = vmul.f32 0.0078125, %v148_v24  ;;  %v154_v26 = vmul.f32 %v152_v23, %v152_v23 }
 0x18d   :  { %v153_v27 = vsub.f32 %v144_v20, %v151_v25  ;;  %156 = vadd.xlane.f32.xlu1 %v154_v26 }
 0x18f   :  { %v155_v28 = vmul.f32 %v153_v27, %v153_v27 }
 0x191   :  { %158 = vadd.xlane.f32.xlu1 %v155_v28 }
 0x21a   :  { %v157_v29 = vpop.xlane.xlu1 %156 }
 0x21b   :  { %v160_v30 = vmul.f32 0.0078125, %v157_v29 }
 0x21d   :  { %v162_v31 = vadd.f32 1e-05, %v160_v30 }
 0x21e   :  { %v159_v32 = vpop.xlane.xlu1 %158 }
 0x21f   :  { %240 = vrsqrt.f32 %v162_v31  ;;  %v161_v33 = vmul.f32 0.0078125, %v159_v32 }
 0x221   :  { %v163_v34 = vadd.f32 1e-05, %v161_v33 }
 0x223   :  { %242 = vrsqrt.f32 %v163_v34 }
 0x229   :  { %v241_v35 = vpop.eup %240 }
 0x22a   :  { %v166_v37 = vmul.f32 %v241_v35, %v152_v23 }
 0x22c   :  { %v173_v39 = vmul.f32 %v198_v36, %v166_v37 }
 0x22d   :  { %v243_v40 = vpop.eup %242 }
 0x22e   :  { %v180_v41 = vadd.f32 %v199_v38, %v173_v39  ;;  %v167_v42 = vmul.f32 %v243_v40, %v153_v27 }
 0x230   :  { %182 = vst [vmem:[%s329_s5] sm:$0xff] %v180_v41  ;;  %v174_v43 = vmul.f32 %v198_v36, %v167_v42 }
 0x232   :  { %v181_v44 = vadd.f32 %v199_v38, %v174_v43 }
 0x234   :  { %183 = vst [vmem:[%s329_s5 + $0x8] sm:$0xff] %v181_v44 }

// kernel: transzero_forward.35
= control target key start
LH: loop header
LB: loop body
LE: loop exit
PB: predicated region body
PF: predicated region fallthrough
CT: control target
= control target key end

     0   :  { %v406_v0 = vmov 0.0   ;;  %vm407_vm0 = vmmov 0   ;;  %s520_s1 = inlined_call_operand.vmem [shape: bf16[128,128], index: 1, kind: input, shape index: {}]   ;;  %s521_s3 = inlined_call_operand.vmem [shape: bf16[128,128], index: 3, kind: input, shape index: {}]   ;;  %s522_s0 = inlined_call_operand.vmem [shape: f32[16,128], index: 0, kind: input, shape index: {}]   ;;  %s523_s2 = inlined_call_operand.vmem [shape: f32[1,128], index: 2, kind: input, shape index: {}]   ;;  %s524_s4 = inlined_call_operand.vmem [shape: f32[1,128], index: 4, kind: input, shape index: {}]   ;;  %s525_s5 = inlined_call_operand.vmem [shape: f32[1,128], index: 5, kind: input, shape index: {}]   ;;  %s526_s6 = inlined_call_operand.vmem [shape: f32[1,128], index: 6, kind: input, shape index: {}]   ;;  %s527_s7 = inlined_call_operand.vmem [shape: f32[16,128], index: 7, kind: output, shape index: {}]  }
   0x1   :  { %344 = vmatprep.subr.bf16.mxu0 %v406_v0  ;;  %v386_v1 = vld [vmem:[%s520_s1] sm:$0xff]   ;;  %360 = vmatprep.mubr.msk.bf16.mxu0 %vm407_vm0, %v406_v0  ;;  %v387_v2 = vld [vmem:[%s520_s1 + $0x8] sm:$0xff]   ;;  %v388_v3 = vld [vmem:[%s520_s1 + $0x10] sm:$0xff]  }
   0x2   :  { %364 = vmatprep.subr.bf16.mxu1 %v406_v0  ;;  %380 = vmatprep.mubr.msk.bf16.mxu1 %vm407_vm0, %v406_v0  ;;  %v394_v4 = vld [vmem:[%s521_s3] sm:$0xff]   ;;  %v389_v5 = vld [vmem:[%s520_s1 + $0x18] sm:$0xff]   ;;  %v395_v6 = vld [vmem:[%s521_s3 + $0x8] sm:$0xff]  }
   0x3   :  { %345 = vmatpush3.bf16.msra.mxu0 %v386_v1  ;;  %365 = vmatpush3.bf16.msra.mxu1 %v394_v4  ;;  %v390_v7 = vld [vmem:[%s520_s1 + $0x20] sm:$0xff]   ;;  %v396_v8 = vld [vmem:[%s521_s3 + $0x10] sm:$0xff]   ;;  %v391_v9 = vld [vmem:[%s520_s1 + $0x28] sm:$0xff]  }
   0x4   :  { %346 = vmatprep.subr.bf16.mxu0 %v406_v0  ;;  %366 = vmatprep.subr.bf16.mxu1 %v406_v0  ;;  %v397_v10 = vld [vmem:[%s521_s3 + $0x18] sm:$0xff]   ;;  %v392_v11 = vld [vmem:[%s520_s1 + $0x30] sm:$0xff]   ;;  %v398_v12 = vld [vmem:[%s521_s3 + $0x20] sm:$0xff]  }
   0x5   :  { %v393_v13 = vld [vmem:[%s520_s1 + $0x38] sm:$0xff]   ;;  %v27_v14 = vld [vmem:[%s522_s0] sm:$0xff]  ;;  %v28_v15 = vld [vmem:[%s522_s0 + $0x8] sm:$0xff] }
   0x6   :  { %v399_v16 = vld [vmem:[%s521_s3 + $0x28] sm:$0xff]   ;;  %v29_v17 = vpack.c.bf16 %v28_v15, %v27_v14  ;;  %v400_v18 = vld [vmem:[%s521_s3 + $0x30] sm:$0xff]   ;;  %v401_v19 = vld [vmem:[%s521_s3 + $0x38] sm:$0xff]  }
   0x7   :  { %347 = vmatpush3.bf16.msra.mxu0 %v387_v2  ;;  %367 = vmatpush3.bf16.msra.mxu1 %v395_v6  ;;  %v306_v20 = vld [vmem:[%s523_s2] ss:$0 sm:$0xff] }
   0x8   :  { %348 = vmatprep.subr.bf16.mxu0 %v406_v0  ;;  %368 = vmatprep.subr.bf16.mxu1 %v406_v0  ;;  %v315_v30 = vld [vmem:[%s524_s4] ss:$0 sm:$0xff] }
   0x9   :  { %v324_v54 = vld [vmem:[%s525_s5] ss:$0 sm:$0xff] }
   0xa   :  { %v325_v56 = vld [vmem:[%s526_s6] ss:$0 sm:$0xff] }
   0xb   :  { %349 = vmatpush3.bf16.msra.mxu0 %v388_v3  ;;  %369 = vmatpush3.bf16.msra.mxu1 %v396_v8 }
   0xc   :  { %350 = vmatprep.subr.bf16.mxu0 %v406_v0  ;;  %370 = vmatprep.subr.bf16.mxu1 %v406_v0 }
   0xf   :  { %351 = vmatpush3.bf16.msra.mxu0 %v389_v5  ;;  %371 = vmatpush3.bf16.msra.mxu1 %v397_v10 }
  0x10   :  { %352 = vmatprep.subr.bf16.mxu0 %v406_v0  ;;  %372 = vmatprep.subr.bf16.mxu1 %v406_v0 }
  0x13   :  { %353 = vmatpush3.bf16.msra.mxu0 %v390_v7  ;;  %373 = vmatpush3.bf16.msra.mxu1 %v398_v12 }
  0x14   :  { %354 = vmatprep.subr.bf16.mxu0 %v406_v0  ;;  %374 = vmatprep.subr.bf16.mxu1 %v406_v0 }
  0x17   :  { %355 = vmatpush3.bf16.msra.mxu0 %v391_v9  ;;  %375 = vmatpush3.bf16.msra.mxu1 %v399_v16 }
  0x18   :  { %356 = vmatprep.subr.bf16.mxu0 %v406_v0  ;;  %376 = vmatprep.subr.bf16.mxu1 %v406_v0 }
  0x1b   :  { %357 = vmatpush3.bf16.msra.mxu0 %v392_v11  ;;  %377 = vmatpush3.bf16.msra.mxu1 %v400_v18 }
  0x1c   :  { %358 = vmatprep.subr.bf16.mxu0 %v406_v0  ;;  %378 = vmatprep.subr.bf16.mxu1 %v406_v0 }
  0x1f   :  { %359 = vmatpush3.bf16.msra.mxu0 %v393_v13  ;;  %379 = vmatpush3.bf16.msra.mxu1 %v401_v19 }
  0x22   :  { %361 = vmatmul.mubr.bf16.vlgmr.msra.gmra.mrb[0].mxu0 %v29_v17 }
  0xf5   :  { %v135_v21 = vpop.f32.mrb[0].mxu0 }
  0xf6   :  { %v136_v22 = vadd.f32 %v306_v20, %v135_v21  ;;  %v362_v23 = vpop.f32.mrb[1].mxu0 }
  0xf7   :  { %v138_v24 = vpop.f32.mrb[2].mxu0 }
  0xf8   :  { %v139_v25 = vadd.f32 %v306_v20, %v138_v24  ;;  %v363_v26 = vpop.f32.mrb[3].mxu0  ;;  %v142_v27 = vmax.f32 %v136_v22, 0.0 }
  0xfa   :  { %v143_v28 = vmax.f32 %v139_v25, 0.0 }
  0xfc   :  { %v144_v29 = vpack.c.bf16 %v143_v28, %v142_v27 }
  0xfe   :  { %381 = vmatmul.mubr.bf16.vlgmr.msra.gmra.mrb[0].mxu1 %v144_v29 }
 0x1d1   :  { %v250_v31 = vpop.f32.mrb[0].mxu1 }
 0x1d2   :  { %v251_v32 = vadd.f32 %v315_v30, %v250_v31  ;;  %v382_v33 = vpop.f32.mrb[1].mxu1 }
 0x1d3   :  { %v253_v34 = vpop.f32.mrb[2].mxu1 }
 0x1d4   :  { %v254_v35 = vadd.f32 %v315_v30, %v253_v34  ;;  %v383_v36 = vpop.f32.mrb[3].mxu1  ;;  %v257_v37 = vadd.f32 %v251_v32, %v27_v14 }
 0x1d6   :  { %259 = vadd.xlane.f32.xlu0 %v257_v37  ;;  %v258_v38 = vadd.f32 %v254_v35, %v28_v15 }
 0x1da   :  { %261 = vadd.xlane.f32.xlu0 %v258_v38 }
 0x263   :  { %v260_v39 = vpop.xlane.xlu0 %259 }
 0x264   :  { %v264_v40 = vmul.f32 0.0078125, %v260_v39 }
 0x266   :  { %v266_v41 = vsub.f32 %v257_v37, %v264_v40 }
 0x267   :  { %v262_v42 = vpop.xlane.xlu0 %261 }
 0x268   :  { %v265_v43 = vmul.f32 0.0078125, %v262_v42  ;;  %v268_v44 = vmul.f32 %v266_v41, %v266_v41 }
 0x26a   :  { %v267_v45 = vsub.f32 %v258_v38, %v265_v43  ;;  %270 = vadd.xlane.f32.xlu1 %v268_v44 }
 0x26c   :  { %v269_v46 = vmul.f32 %v267_v45, %v267_v45 }
 0x26e   :  { %272 = vadd.xlane.f32.xlu1 %v269_v46 }
 0x2f7   :  { %v271_v47 = vpop.xlane.xlu1 %270 }
 0x2f8   :  { %v274_v48 = vmul.f32 0.0078125, %v271_v47 }
 0x2fa   :  { %v276_v49 = vadd.f32 1e-05, %v274_v48 }
 0x2fb   :  { %v273_v50 = vpop.xlane.xlu1 %272 }
 0x2fc   :  { %402 = vrsqrt.f32 %v276_v49  ;;  %v275_v51 = vmul.f32 0.0078125, %v273_v50 }
 0x2fe   :  { %v277_v52 = vadd.f32 1e-05, %v275_v51 }
 0x300   :  { %404 = vrsqrt.f32 %v277_v52 }
 0x306   :  { %v403_v53 = vpop.eup %402 }
 0x307   :  { %v280_v55 = vmul.f32 %v403_v53, %v266_v41 }
 0x309   :  { %v289_v57 = vmul.f32 %v324_v54, %v280_v55 }
 0x30a   :  { %v405_v58 = vpop.eup %404 }
 0x30b   :  { %v298_v59 = vadd.f32 %v325_v56, %v289_v57  ;;  %v281_v60 = vmul.f32 %v405_v58, %v267_v45 }
 0x30d   :  { %300 = vst [vmem:[%s527_s7] sm:$0xff] %v298_v59  ;;  %v290_v61 = vmul.f32 %v324_v54, %v281_v60 }
 0x30f   :  { %v299_v62 = vadd.f32 %v325_v56, %v290_v61 }
 0x311   :  { %301 = vst [vmem:[%s527_s7 + $0x8] sm:$0xff] %v299_v62 }

</bundles_post_ra>
